<compile_context>
chip_gen: v7x
topology: tpu7x:2x2x1
jax: 0.10.0
libtpu: 0.0.40
codegen_flags: <defaults>
</compile_context>

<pallas_src>
import math
from functools import partial

import jax
import jax.numpy as jnp
from jax.experimental import pallas as pl
from jax.experimental.pallas import tpu as pltpu

# ----------------------------- "config" -------------------------------------
VOCAB_SIZE = 50
PAD_TOKEN_ID = 0
DEC_NUM_LAYERS = 2
HIDDEN_DIM = 32
FFN_DIM = 64
NUM_HEADS = 4
MAX_LEN = 16
LAYERNORM_EPS = 1e-5

# packed-bias row layout (per layer; row width = 3 * HIDDEN_DIM)
_R_BQKV1, _R_BQKV2, _R_BF1 = 0, 1, 2
_R_BO1, _R_BO2, _R_BF2 = 3, 4, 5
_R_G1, _R_BE1, _R_G2, _R_BE2, _R_G3, _R_BE3 = 6, 7, 8, 9, 10, 11
_N_BIAS_ROWS = 12


# ----------------------------- kernel helpers --------------------------------
def _layernorm(x, g, b, eps):
    mu = jnp.mean(x, axis=-1, keepdims=True)
    var = jnp.mean((x - mu) ** 2, axis=-1, keepdims=True)
    return (x - mu) * jax.lax.rsqrt(var + eps) * g + b


def _mha(x_q, x_kv, mask, wqkv, bqkv, wo, bo, num_heads, return_probs):
    """Multi-head attention on one batch element.

    wqkv is the packed (D, 3D) projection [Wq | Wk | Wv]; bqkv is (1, 3D).
    Returns (out (Sq, D), probs (Sq, H*Skv) or None)."""
    Sq, D = x_q.shape
    hd = D // num_heads
    scale = 1.0 / math.sqrt(hd)

    if x_q is x_kv:
        # self-attention: one packed matmul for q, k, v
        qkv = jnp.dot(x_q, wqkv, preferred_element_type=jnp.float32) + bqkv
        q, k, v = qkv[:, :D], qkv[:, D:2 * D], qkv[:, 2 * D:]
    else:
        # cross-attention: q from decoder stream, k/v from encoder output
        q = jnp.dot(x_q, wqkv[:, :D], preferred_element_type=jnp.float32) + bqkv[:, :D]
        kv = jnp.dot(x_kv, wqkv[:, D:], preferred_element_type=jnp.float32) + bqkv[:, D:]
        k, v = kv[:, :D], kv[:, D:]

    ctx_heads = []
    prob_heads = []
    for h in range(num_heads):              # static python loop over heads
        sl = slice(h * hd, (h + 1) * hd)
        sc = jnp.dot(q[:, sl], k[:, sl].T,
                     preferred_element_type=jnp.float32) * scale + mask
        sc = sc - jnp.max(sc, axis=-1, keepdims=True)
        e = jnp.exp(sc)
        p = e * pl.reciprocal(jnp.sum(e, axis=-1, keepdims=True), approx=True)
        if return_probs:
            prob_heads.append(p)
        ctx_heads.append(jnp.dot(p, v[:, sl], preferred_element_type=jnp.float32))

    ctx = jnp.concatenate(ctx_heads, axis=-1)                     # (Sq, D)
    out = jnp.dot(ctx, wo, preferred_element_type=jnp.float32) + bo
    probs = jnp.concatenate(prob_heads, axis=-1) if return_probs else None
    return out, probs


# ----------------------------- fused decoder-stack kernel ---------------------
def decoder_stack_kernel(num_layers, num_heads, eps,
                         x_ref, enc_ref, cmask_ref, xmask_ref,
                         wqkv1_ref, wo1_ref, wqkv2_ref, wo2_ref,
                         wf1_ref, wf2_ref, bias_ref,
                         out_ref, cross_ref):
    x = x_ref[0]            # (S, D)  — stays resident across all layers
    enc = enc_ref[0]        # (Se, D)
    cmask = cmask_ref[...]  # (S, S) batch-invariant causal mask
    xmask = xmask_ref[0]    # (S, Se) per-batch enc-dec mask

    D = x.shape[-1]
    F = wf1_ref.shape[-1]

    for l in range(num_layers):             # static unroll, L = 2
        b = bias_ref[l]                     # (12, 3D) packed vector params
        bqkv1 = b[_R_BQKV1:_R_BQKV1 + 1, :]
        bqkv2 = b[_R_BQKV2:_R_BQKV2 + 1, :]
        bf1 = b[_R_BF1:_R_BF1 + 1, :F]
        bo1 = b[_R_BO1:_R_BO1 + 1, :D]
        bo2 = b[_R_BO2:_R_BO2 + 1, :D]
        bf2 = b[_R_BF2:_R_BF2 + 1, :D]
        g1, be1 = b[_R_G1:_R_G1 + 1, :D], b[_R_BE1:_R_BE1 + 1, :D]
        g2, be2 = b[_R_G2:_R_G2 + 1, :D], b[_R_BE2:_R_BE2 + 1, :D]
        g3, be3 = b[_R_G3:_R_G3 + 1, :D], b[_R_BE3:_R_BE3 + 1, :D]

        # masked causal self-attention + residual + layernorm (post-LN)
        sa, _ = _mha(x, x, cmask, wqkv1_ref[l], bqkv1, wo1_ref[l], bo1,
                     num_heads, return_probs=False)
        x = _layernorm(x + sa, g1, be1, eps)

        # encoder-decoder cross-attention + residual + layernorm
        ca, p_cross = _mha(x, enc, xmask, wqkv2_ref[l], bqkv2, wo2_ref[l], bo2,
                           num_heads, return_probs=True)
        x = _layernorm(x + ca, g2, be2, eps)

        # position-wise feed-forward + residual + layernorm
        h = jnp.dot(x, wf1_ref[l], preferred_element_type=jnp.float32) + bf1
        h = jnp.maximum(h, 0.0)
        ff = jnp.dot(h, wf2_ref[l], preferred_element_type=jnp.float32) + bf2
        x = _layernorm(x + ff, g3, be3, eps)

        # one lane-packed store of the cross-attn probs per layer: (S, H*Se)
        cross_ref[0, l] = p_cross

    out_ref[0] = x


def decoder_stack(x, enc, cmask, xmask, params):
    B, S, D = x.shape
    Se = enc.shape[1]
    L = DEC_NUM_LAYERS
    H = NUM_HEADS

    weights = (params["wqkv1"], params["wo1"], params["wqkv2"], params["wo2"],
               params["wf1"], params["wf2"], params["bias"])

    def batch_spec(shape):
        nd = len(shape)
        return pl.BlockSpec((1,) + tuple(shape[1:]),
                            lambda b, _nd=nd: (b,) + (0,) * (_nd - 1))

    def full_spec(shape):
        nd = len(shape)
        return pl.BlockSpec(tuple(shape), lambda b, _nd=nd: (0,) * _nd)

    in_specs = ([batch_spec(x.shape), batch_spec(enc.shape),
                 full_spec(cmask.shape), batch_spec(xmask.shape)]
                + [full_spec(w.shape) for w in weights])
    out_shape = (jax.ShapeDtypeStruct((B, S, D), jnp.float32),
                 jax.ShapeDtypeStruct((B, L, S, H * Se), jnp.float32))
    out_specs = (batch_spec((B, S, D)),
                 batch_spec((B, L, S, H * Se)))

    out, cross_packed = pl.pallas_call(
        partial(decoder_stack_kernel, L, H, LAYERNORM_EPS),
        grid=(B,),
        in_specs=in_specs,
        out_specs=out_specs,
        out_shape=out_shape,
        compiler_params=pltpu.CompilerParams(
            dimension_semantics=("parallel",)),   # shards batch across v7x TCs
    )(x, enc, cmask, xmask, *weights)
    return out, cross_packed


# ----------------------------- params / embeddings ----------------------------
def init_params(key):
    D, F, L = HIDDEN_DIM, FFN_DIM, DEC_NUM_LAYERS
    keys = jax.random.split(key, 7)

    def w(k, shape):
        return jax.random.normal(k, shape, jnp.float32) * 0.02

    emb = w(keys[0], (VOCAB_SIZE, D)).at[PAD_TOKEN_ID].set(0.0)  # zero pad row

    params = {
        "emb": emb,
        "wqkv1": w(keys[1], (L, D, 3 * D)),   # packed [Wq|Wk|Wv] self-attn
        "wo1":   w(keys[2], (L, D, D)),
        "wqkv2": w(keys[3], (L, D, 3 * D)),   # packed [Wq|Wk|Wv] cross-attn
        "wo2":   w(keys[4], (L, D, D)),
        "wf1":   w(keys[5], (L, D, F)),
        "wf2":   w(keys[6], (L, F, D)),
    }
    # packed bias / layernorm slab: (L, 12, 3D); biases zero, gammas one
    bias = jnp.zeros((L, _N_BIAS_ROWS, 3 * D), jnp.float32)
    bias = bias.at[:, _R_G1, :].set(1.0)
    bias = bias.at[:, _R_G2, :].set(1.0)
    bias = bias.at[:, _R_G3, :].set(1.0)
    params["bias"] = bias
    return params


def sinusoidal_pos_encoding(max_len, dim):
    pos = jnp.arange(max_len, dtype=jnp.float32)[:, None]
    i = jnp.arange(dim // 2, dtype=jnp.float32)[None, :]
    angle = pos / jnp.power(10000.0, 2.0 * i / dim)
    pe = jnp.zeros((max_len, dim), jnp.float32)
    pe = pe.at[:, 0::2].set(jnp.sin(angle))
    pe = pe.at[:, 1::2].set(jnp.cos(angle))
    return pe


# ----------------------------- forward (matches Decoder.forward) --------------
def decoder_forward(tokens, enc_output, params, dec_causal_mask, enc_dec_mask):
    # TODO(synk): TokenEmbeddings scaling (e.g. *sqrt(d_model)) unknown from
    # source; using a plain embedding lookup with zeroed pad row.
    emb = params["emb"][tokens]                                   # (B, S, D)
    S = tokens.shape[1]
    pe = sinusoidal_pos_encoding(MAX_LEN, HIDDEN_DIM)[:S]
    x = emb + pe[None]                                            # pos encoding
    # dropout_layer: identity (eval mode)

    out, cross_packed = decoder_stack(x, enc_output, dec_causal_mask,
                                      enc_dec_mask, params)

    # un-pack lane-packed cross-attn weights: (B, L, S, H*Se) -> per-layer (B, H, S, Se)
    B, L, S2, HSe = cross_packed.shape
    Se = HSe // NUM_HEADS
    cross = cross_packed.reshape(B, L, S2, NUM_HEADS, Se)
    cross = jnp.transpose(cross, (1, 0, 3, 2, 4))                 # (L, B, H, S, Se)
    all_cross_attn_wts = [cross[l] for l in range(L)]
    return all_cross_attn_wts, out


# ----------------------------- main -------------------------------------------
if __name__ == "__main__":
    key = jax.random.PRNGKey(0)
    kp, kt, ke = jax.random.split(key, 3)
    params = init_params(kp)

    B, S_DEC, S_ENC = 2, 8, 8
    tokens = jax.random.randint(kt, (B, S_DEC), 1, VOCAB_SIZE)
    enc_output = jax.random.normal(ke, (B, S_ENC, HIDDEN_DIM), jnp.float32)

    # additive masks: 0.0 keep, -1e9 masked
    dec_causal_mask = jnp.where(jnp.tril(jnp.ones((S_DEC, S_DEC), bool)),
                                0.0, -1e9).astype(jnp.float32)    # (S, S), batch-invariant
    enc_dec_mask = jnp.zeros((B, S_DEC, S_ENC), jnp.float32)      # per-batch padding mask

    all_cross_attn_wts, output = decoder_forward(
        tokens, enc_output, params, dec_causal_mask, enc_dec_mask)

    jax.block_until_ready(output)
    for wts in all_cross_attn_wts:
        jax.block_until_ready(wts)

    assert output.shape == (B, S_DEC, HIDDEN_DIM)
    assert all(w.shape == (B, NUM_HEADS, S_DEC, S_ENC) for w in all_cross_attn_wts)
    print("KERNEL_OK")
</pallas_src>

<mosaic_0001>
module attributes {stable_mosaic.version = 11 : i64} {
  func.func @decoder_stack_kernel(%arg0: i32, %arg1: memref<1x8x32xf32, #tpu.memory_space<vmem>>, %arg2: memref<1x8x32xf32, #tpu.memory_space<vmem>>, %arg3: memref<8x8xf32, #tpu.memory_space<vmem>>, %arg4: memref<1x8x8xf32, #tpu.memory_space<vmem>>, %arg5: memref<2x32x96xf32, #tpu.memory_space<vmem>>, %arg6: memref<2x32x32xf32, #tpu.memory_space<vmem>>, %arg7: memref<2x32x96xf32, #tpu.memory_space<vmem>>, %arg8: memref<2x32x32xf32, #tpu.memory_space<vmem>>, %arg9: memref<2x32x64xf32, #tpu.memory_space<vmem>>, %arg10: memref<2x64x32xf32, #tpu.memory_space<vmem>>, %arg11: memref<2x12x96xf32, #tpu.memory_space<vmem>>, %arg12: memref<1x8x32xf32, #tpu.memory_space<vmem>>, %arg13: memref<1x2x8x32xf32, #tpu.memory_space<vmem>>) attributes {dimension_semantics = [#tpu.dimension_semantics<parallel>], iteration_bounds = array<i64: 2>, scalar_prefetch = 0 : i64, scratch_operands = 0 : i64, tpu.core_type = #tpu.core_type<tc>, window_params = [{transform_indices = @transform_0, window_bounds = array<i64: 1, 8, 32>}, {transform_indices = @transform_1, window_bounds = array<i64: 1, 8, 32>}, {pipeline_mode = #tpu.pipeline_mode<synchronous>, transform_indices = @transform_2, window_bounds = array<i64: 8, 8>}, {transform_indices = @transform_3, window_bounds = array<i64: 1, 8, 8>}, {pipeline_mode = #tpu.pipeline_mode<synchronous>, transform_indices = @transform_4, window_bounds = array<i64: 2, 32, 96>}, {pipeline_mode = #tpu.pipeline_mode<synchronous>, transform_indices = @transform_5, window_bounds = array<i64: 2, 32, 32>}, {pipeline_mode = #tpu.pipeline_mode<synchronous>, transform_indices = @transform_6, window_bounds = array<i64: 2, 32, 96>}, {pipeline_mode = #tpu.pipeline_mode<synchronous>, transform_indices = @transform_7, window_bounds = array<i64: 2, 32, 32>}, {pipeline_mode = #tpu.pipeline_mode<synchronous>, transform_indices = @transform_8, window_bounds = array<i64: 2, 32, 64>}, {pipeline_mode = #tpu.pipeline_mode<synchronous>, transform_indices = @transform_9, window_bounds = array<i64: 2, 64, 32>}, {pipeline_mode = #tpu.pipeline_mode<synchronous>, transform_indices = @transform_10, window_bounds = array<i64: 2, 12, 96>}, {transform_indices = @transform_11, window_bounds = array<i64: 1, 8, 32>}, {transform_indices = @transform_12, window_bounds = array<i64: 1, 2, 8, 32>}]} {
    %c0 = arith.constant 0 : index
    %c0_0 = arith.constant 0 : index
    %c0_1 = arith.constant 0 : index
    %0 = vector.load %arg1[%c0, %c0_0, %c0_1] : memref<1x8x32xf32, #tpu.memory_space<vmem>>, vector<1x8x32xf32>
    %1 = vector.shape_cast %0 : vector<1x8x32xf32> to vector<8x32xf32>
    %c0_2 = arith.constant 0 : index
    %c0_3 = arith.constant 0 : index
    %c0_4 = arith.constant 0 : index
    %2 = vector.load %arg2[%c0_2, %c0_3, %c0_4] : memref<1x8x32xf32, #tpu.memory_space<vmem>>, vector<1x8x32xf32>
    %3 = vector.shape_cast %2 : vector<1x8x32xf32> to vector<8x32xf32>
    %c0_5 = arith.constant 0 : index
    %c0_6 = arith.constant 0 : index
    %4 = vector.load %arg3[%c0_5, %c0_6] : memref<8x8xf32, #tpu.memory_space<vmem>>, vector<8x8xf32>
    %c0_7 = arith.constant 0 : index
    %c0_8 = arith.constant 0 : index
    %c0_9 = arith.constant 0 : index
    %5 = vector.load %arg4[%c0_7, %c0_8, %c0_9] : memref<1x8x8xf32, #tpu.memory_space<vmem>>, vector<1x8x8xf32>
    %6 = vector.shape_cast %5 : vector<1x8x8xf32> to vector<8x8xf32>
    %c0_10 = arith.constant 0 : index
    %c0_11 = arith.constant 0 : index
    %c0_12 = arith.constant 0 : index
    %7 = vector.load %arg11[%c0_10, %c0_11, %c0_12] : memref<2x12x96xf32, #tpu.memory_space<vmem>>, vector<1x12x96xf32>
    %8 = vector.shape_cast %7 : vector<1x12x96xf32> to vector<12x96xf32>
    %9 = vector.extract_strided_slice %8 {offsets = [0, 0], sizes = [1, 96], strides = [1, 1]} : vector<12x96xf32> to vector<1x96xf32>
    %10 = vector.extract_strided_slice %8 {offsets = [1, 0], sizes = [1, 96], strides = [1, 1]} : vector<12x96xf32> to vector<1x96xf32>
    %11 = vector.extract_strided_slice %8 {offsets = [2, 0], sizes = [1, 64], strides = [1, 1]} : vector<12x96xf32> to vector<1x64xf32>
    %12 = vector.extract_strided_slice %8 {offsets = [3, 0], sizes = [1, 32], strides = [1, 1]} : vector<12x96xf32> to vector<1x32xf32>
    %13 = vector.extract_strided_slice %8 {offsets = [4, 0], sizes = [1, 32], strides = [1, 1]} : vector<12x96xf32> to vector<1x32xf32>
    %14 = vector.extract_strided_slice %8 {offsets = [5, 0], sizes = [1, 32], strides = [1, 1]} : vector<12x96xf32> to vector<1x32xf32>
    %15 = vector.extract_strided_slice %8 {offsets = [6, 0], sizes = [1, 32], strides = [1, 1]} : vector<12x96xf32> to vector<1x32xf32>
    %16 = vector.extract_strided_slice %8 {offsets = [7, 0], sizes = [1, 32], strides = [1, 1]} : vector<12x96xf32> to vector<1x32xf32>
    %17 = vector.extract_strided_slice %8 {offsets = [8, 0], sizes = [1, 32], strides = [1, 1]} : vector<12x96xf32> to vector<1x32xf32>
    %18 = vector.extract_strided_slice %8 {offsets = [9, 0], sizes = [1, 32], strides = [1, 1]} : vector<12x96xf32> to vector<1x32xf32>
    %19 = vector.extract_strided_slice %8 {offsets = [10, 0], sizes = [1, 32], strides = [1, 1]} : vector<12x96xf32> to vector<1x32xf32>
    %20 = vector.extract_strided_slice %8 {offsets = [11, 0], sizes = [1, 32], strides = [1, 1]} : vector<12x96xf32> to vector<1x32xf32>
    %c0_13 = arith.constant 0 : index
    %c0_14 = arith.constant 0 : index
    %c0_15 = arith.constant 0 : index
    %21 = vector.load %arg5[%c0_13, %c0_14, %c0_15] : memref<2x32x96xf32, #tpu.memory_space<vmem>>, vector<1x32x96xf32>
    %22 = vector.shape_cast %21 : vector<1x32x96xf32> to vector<32x96xf32>
    %c0_16 = arith.constant 0 : index
    %c0_17 = arith.constant 0 : index
    %c0_18 = arith.constant 0 : index
    %23 = vector.load %arg6[%c0_16, %c0_17, %c0_18] : memref<2x32x32xf32, #tpu.memory_space<vmem>>, vector<1x32x32xf32>
    %24 = vector.shape_cast %23 : vector<1x32x32xf32> to vector<32x32xf32>
    %cst = arith.constant dense<0.000000e+00> : vector<8x96xf32>
    %25 = tpu.matmul %1, %22, %cst {dimension_numbers = #tpu.dot_dimension_numbers<[1], [0], [0], [1], [0, 0, 1, 1], [], []>} : vector<8x32xf32>, vector<32x96xf32>, vector<8x96xf32> -> vector<8x96xf32>
    %26 = vector.broadcast %9 : vector<1x96xf32> to vector<8x96xf32>
    %27 = arith.addf %25, %26 : vector<8x96xf32>
    %28 = vector.extract_strided_slice %27 {offsets = [0, 0], sizes = [8, 32], strides = [1, 1]} : vector<8x96xf32> to vector<8x32xf32>
    %29 = vector.extract_strided_slice %27 {offsets = [0, 32], sizes = [8, 32], strides = [1, 1]} : vector<8x96xf32> to vector<8x32xf32>
    %30 = vector.extract_strided_slice %27 {offsets = [0, 64], sizes = [8, 32], strides = [1, 1]} : vector<8x96xf32> to vector<8x32xf32>
    %31 = vector.extract_strided_slice %28 {offsets = [0, 0], sizes = [8, 8], strides = [1, 1]} : vector<8x32xf32> to vector<8x8xf32>
    %32 = vector.extract_strided_slice %29 {offsets = [0, 0], sizes = [8, 8], strides = [1, 1]} : vector<8x32xf32> to vector<8x8xf32>
    %33 = tpu.transpose %32, [1, 0] : vector<8x8xf32> -> vector<8x8xf32>
    %cst_19 = arith.constant dense<0.000000e+00> : vector<8x8xf32>
    %34 = tpu.matmul %31, %33, %cst_19 {dimension_numbers = #tpu.dot_dimension_numbers<[1], [0], [0], [1], [0, 0, 1, 1], [], []>} : vector<8x8xf32>, vector<8x8xf32>, vector<8x8xf32> -> vector<8x8xf32>
    %cst_20 = arith.constant 0.353553385 : f32
    %35 = vector.broadcast %cst_20 : f32 to vector<8x8xf32>
    %36 = arith.mulf %34, %35 : vector<8x8xf32>
    %37 = arith.addf %36, %4 : vector<8x8xf32>
    %cst_21 = arith.constant dense<0xFF800000> : vector<8xf32>
    %38 = vector.multi_reduction <maximumf>, %37, %cst_21 [1] : vector<8x8xf32> to vector<8xf32>
    %39 = vector.shape_cast %38 : vector<8xf32> to vector<8x1xf32>
    %40 = vector.broadcast %39 : vector<8x1xf32> to vector<8x8xf32>
    %41 = arith.subf %37, %40 : vector<8x8xf32>
    %42 = math.exp %41 : vector<8x8xf32>
    %cst_22 = arith.constant dense<0.000000e+00> : vector<8xf32>
    %43 = vector.multi_reduction <add>, %42, %cst_22 [1] : vector<8x8xf32> to vector<8xf32>
    %44 = vector.shape_cast %43 : vector<8xf32> to vector<8x1xf32>
    %45 = tpu.reciprocal %44 {approx = true} : vector<8x1xf32> -> vector<8x1xf32>
    %46 = vector.broadcast %45 : vector<8x1xf32> to vector<8x8xf32>
    %47 = arith.mulf %42, %46 : vector<8x8xf32>
    %48 = vector.extract_strided_slice %30 {offsets = [0, 0], sizes = [8, 8], strides = [1, 1]} : vector<8x32xf32> to vector<8x8xf32>
    %cst_23 = arith.constant dense<0.000000e+00> : vector<8x8xf32>
    %49 = tpu.matmul %47, %48, %cst_23 {dimension_numbers = #tpu.dot_dimension_numbers<[1], [0], [0], [1], [0, 0, 1, 1], [], []>} : vector<8x8xf32>, vector<8x8xf32>, vector<8x8xf32> -> vector<8x8xf32>
    %50 = vector.extract_strided_slice %28 {offsets = [0, 8], sizes = [8, 8], strides = [1, 1]} : vector<8x32xf32> to vector<8x8xf32>
    %51 = vector.extract_strided_slice %29 {offsets = [0, 8], sizes = [8, 8], strides = [1, 1]} : vector<8x32xf32> to vector<8x8xf32>
    %52 = tpu.transpose %51, [1, 0] : vector<8x8xf32> -> vector<8x8xf32>
    %cst_24 = arith.constant dense<0.000000e+00> : vector<8x8xf32>
    %53 = tpu.matmul %50, %52, %cst_24 {dimension_numbers = #tpu.dot_dimension_numbers<[1], [0], [0], [1], [0, 0, 1, 1], [], []>} : vector<8x8xf32>, vector<8x8xf32>, vector<8x8xf32> -> vector<8x8xf32>
    %cst_25 = arith.constant 0.353553385 : f32
    %54 = vector.broadcast %cst_25 : f32 to vector<8x8xf32>
    %55 = arith.mulf %53, %54 : vector<8x8xf32>
    %56 = arith.addf %55, %4 : vector<8x8xf32>
    %cst_26 = arith.constant dense<0xFF800000> : vector<8xf32>
    %57 = vector.multi_reduction <maximumf>, %56, %cst_26 [1] : vector<8x8xf32> to vector<8xf32>
    %58 = vector.shape_cast %57 : vector<8xf32> to vector<8x1xf32>
    %59 = vector.broadcast %58 : vector<8x1xf32> to vector<8x8xf32>
    %60 = arith.subf %56, %59 : vector<8x8xf32>
    %61 = math.exp %60 : vector<8x8xf32>
    %cst_27 = arith.constant dense<0.000000e+00> : vector<8xf32>
    %62 = vector.multi_reduction <add>, %61, %cst_27 [1] : vector<8x8xf32> to vector<8xf32>
    %63 = vector.shape_cast %62 : vector<8xf32> to vector<8x1xf32>
    %64 = tpu.reciprocal %63 {approx = true} : vector<8x1xf32> -> vector<8x1xf32>
    %65 = vector.broadcast %64 : vector<8x1xf32> to vector<8x8xf32>
    %66 = arith.mulf %61, %65 : vector<8x8xf32>
    %67 = vector.extract_strided_slice %30 {offsets = [0, 8], sizes = [8, 8], strides = [1, 1]} : vector<8x32xf32> to vector<8x8xf32>
    %cst_28 = arith.constant dense<0.000000e+00> : vector<8x8xf32>
    %68 = tpu.matmul %66, %67, %cst_28 {dimension_numbers = #tpu.dot_dimension_numbers<[1], [0], [0], [1], [0, 0, 1, 1], [], []>} : vector<8x8xf32>, vector<8x8xf32>, vector<8x8xf32> -> vector<8x8xf32>
    %69 = vector.extract_strided_slice %28 {offsets = [0, 16], sizes = [8, 8], strides = [1, 1]} : vector<8x32xf32> to vector<8x8xf32>
    %70 = vector.extract_strided_slice %29 {offsets = [0, 16], sizes = [8, 8], strides = [1, 1]} : vector<8x32xf32> to vector<8x8xf32>
    %71 = tpu.transpose %70, [1, 0] : vector<8x8xf32> -> vector<8x8xf32>
    %cst_29 = arith.constant dense<0.000000e+00> : vector<8x8xf32>
    %72 = tpu.matmul %69, %71, %cst_29 {dimension_numbers = #tpu.dot_dimension_numbers<[1], [0], [0], [1], [0, 0, 1, 1], [], []>} : vector<8x8xf32>, vector<8x8xf32>, vector<8x8xf32> -> vector<8x8xf32>
    %cst_30 = arith.constant 0.353553385 : f32
    %73 = vector.broadcast %cst_30 : f32 to vector<8x8xf32>
    %74 = arith.mulf %72, %73 : vector<8x8xf32>
    %75 = arith.addf %74, %4 : vector<8x8xf32>
    %cst_31 = arith.constant dense<0xFF800000> : vector<8xf32>
    %76 = vector.multi_reduction <maximumf>, %75, %cst_31 [1] : vector<8x8xf32> to vector<8xf32>
    %77 = vector.shape_cast %76 : vector<8xf32> to vector<8x1xf32>
    %78 = vector.broadcast %77 : vector<8x1xf32> to vector<8x8xf32>
    %79 = arith.subf %75, %78 : vector<8x8xf32>
    %80 = math.exp %79 : vector<8x8xf32>
    %cst_32 = arith.constant dense<0.000000e+00> : vector<8xf32>
    %81 = vector.multi_reduction <add>, %80, %cst_32 [1] : vector<8x8xf32> to vector<8xf32>
    %82 = vector.shape_cast %81 : vector<8xf32> to vector<8x1xf32>
    %83 = tpu.reciprocal %82 {approx = true} : vector<8x1xf32> -> vector<8x1xf32>
    %84 = vector.broadcast %83 : vector<8x1xf32> to vector<8x8xf32>
    %85 = arith.mulf %80, %84 : vector<8x8xf32>
    %86 = vector.extract_strided_slice %30 {offsets = [0, 16], sizes = [8, 8], strides = [1, 1]} : vector<8x32xf32> to vector<8x8xf32>
    %cst_33 = arith.constant dense<0.000000e+00> : vector<8x8xf32>
    %87 = tpu.matmul %85, %86, %cst_33 {dimension_numbers = #tpu.dot_dimension_numbers<[1], [0], [0], [1], [0, 0, 1, 1], [], []>} : vector<8x8xf32>, vector<8x8xf32>, vector<8x8xf32> -> vector<8x8xf32>
    %88 = vector.extract_strided_slice %28 {offsets = [0, 24], sizes = [8, 8], strides = [1, 1]} : vector<8x32xf32> to vector<8x8xf32>
    %89 = vector.extract_strided_slice %29 {offsets = [0, 24], sizes = [8, 8], strides = [1, 1]} : vector<8x32xf32> to vector<8x8xf32>
    %90 = tpu.transpose %89, [1, 0] : vector<8x8xf32> -> vector<8x8xf32>
    %cst_34 = arith.constant dense<0.000000e+00> : vector<8x8xf32>
    %91 = tpu.matmul %88, %90, %cst_34 {dimension_numbers = #tpu.dot_dimension_numbers<[1], [0], [0], [1], [0, 0, 1, 1], [], []>} : vector<8x8xf32>, vector<8x8xf32>, vector<8x8xf32> -> vector<8x8xf32>
    %cst_35 = arith.constant 0.353553385 : f32
    %92 = vector.broadcast %cst_35 : f32 to vector<8x8xf32>
    %93 = arith.mulf %91, %92 : vector<8x8xf32>
    %94 = arith.addf %93, %4 : vector<8x8xf32>
    %cst_36 = arith.constant dense<0xFF800000> : vector<8xf32>
    %95 = vector.multi_reduction <maximumf>, %94, %cst_36 [1] : vector<8x8xf32> to vector<8xf32>
    %96 = vector.shape_cast %95 : vector<8xf32> to vector<8x1xf32>
    %97 = vector.broadcast %96 : vector<8x1xf32> to vector<8x8xf32>
    %98 = arith.subf %94, %97 : vector<8x8xf32>
    %99 = math.exp %98 : vector<8x8xf32>
    %cst_37 = arith.constant dense<0.000000e+00> : vector<8xf32>
    %100 = vector.multi_reduction <add>, %99, %cst_37 [1] : vector<8x8xf32> to vector<8xf32>
    %101 = vector.shape_cast %100 : vector<8xf32> to vector<8x1xf32>
    %102 = tpu.reciprocal %101 {approx = true} : vector<8x1xf32> -> vector<8x1xf32>
    %103 = vector.broadcast %102 : vector<8x1xf32> to vector<8x8xf32>
    %104 = arith.mulf %99, %103 : vector<8x8xf32>
    %105 = vector.extract_strided_slice %30 {offsets = [0, 24], sizes = [8, 8], strides = [1, 1]} : vector<8x32xf32> to vector<8x8xf32>
    %cst_38 = arith.constant dense<0.000000e+00> : vector<8x8xf32>
    %106 = tpu.matmul %104, %105, %cst_38 {dimension_numbers = #tpu.dot_dimension_numbers<[1], [0], [0], [1], [0, 0, 1, 1], [], []>} : vector<8x8xf32>, vector<8x8xf32>, vector<8x8xf32> -> vector<8x8xf32>
    %107 = tpu.concatenate %49, %68, %87, %106 in 1 : vector<8x8xf32>, vector<8x8xf32>, vector<8x8xf32>, vector<8x8xf32> -> vector<8x32xf32>
    %cst_39 = arith.constant dense<0.000000e+00> : vector<8x32xf32>
    %108 = tpu.matmul %107, %24, %cst_39 {dimension_numbers = #tpu.dot_dimension_numbers<[1], [0], [0], [1], [0, 0, 1, 1], [], []>} : vector<8x32xf32>, vector<32x32xf32>, vector<8x32xf32> -> vector<8x32xf32>
    %109 = vector.broadcast %12 : vector<1x32xf32> to vector<8x32xf32>
    %110 = arith.addf %108, %109 : vector<8x32xf32>
    %111 = arith.addf %1, %110 : vector<8x32xf32>
    %cst_40 = arith.constant dense<0.000000e+00> : vector<8xf32>
    %112 = vector.multi_reduction <add>, %111, %cst_40 [1] : vector<8x32xf32> to vector<8xf32>
    %113 = vector.shape_cast %112 : vector<8xf32> to vector<8x1xf32>
    %cst_41 = arith.constant 3.200000e+01 : f32
    %114 = vector.broadcast %cst_41 : f32 to vector<8x1xf32>
    %115 = arith.divf %113, %114 : vector<8x1xf32>
    %116 = vector.broadcast %115 : vector<8x1xf32> to vector<8x32xf32>
    %117 = arith.subf %111, %116 : vector<8x32xf32>
    %118 = arith.mulf %117, %117 : vector<8x32xf32>
    %cst_42 = arith.constant dense<0.000000e+00> : vector<8xf32>
    %119 = vector.multi_reduction <add>, %118, %cst_42 [1] : vector<8x32xf32> to vector<8xf32>
    %120 = vector.shape_cast %119 : vector<8xf32> to vector<8x1xf32>
    %cst_43 = arith.constant 3.200000e+01 : f32
    %121 = vector.broadcast %cst_43 : f32 to vector<8x1xf32>
    %122 = arith.divf %120, %121 : vector<8x1xf32>
    %123 = vector.broadcast %115 : vector<8x1xf32> to vector<8x32xf32>
    %124 = arith.subf %111, %123 : vector<8x32xf32>
    %cst_44 = arith.constant 9.99999974E-6 : f32
    %125 = vector.broadcast %cst_44 : f32 to vector<8x1xf32>
    %126 = arith.addf %122, %125 : vector<8x1xf32>
    %127 = math.rsqrt %126 : vector<8x1xf32>
    %128 = vector.broadcast %127 : vector<8x1xf32> to vector<8x32xf32>
    %129 = arith.mulf %124, %128 : vector<8x32xf32>
    %130 = vector.broadcast %15 : vector<1x32xf32> to vector<8x32xf32>
    %131 = arith.mulf %129, %130 : vector<8x32xf32>
    %132 = vector.broadcast %16 : vector<1x32xf32> to vector<8x32xf32>
    %133 = arith.addf %131, %132 : vector<8x32xf32>
    %c0_45 = arith.constant 0 : index
    %c0_46 = arith.constant 0 : index
    %c0_47 = arith.constant 0 : index
    %134 = vector.load %arg7[%c0_45, %c0_46, %c0_47] : memref<2x32x96xf32, #tpu.memory_space<vmem>>, vector<1x32x96xf32>
    %135 = vector.shape_cast %134 : vector<1x32x96xf32> to vector<32x96xf32>
    %c0_48 = arith.constant 0 : index
    %c0_49 = arith.constant 0 : index
    %c0_50 = arith.constant 0 : index
    %136 = vector.load %arg8[%c0_48, %c0_49, %c0_50] : memref<2x32x32xf32, #tpu.memory_space<vmem>>, vector<1x32x32xf32>
    %137 = vector.shape_cast %136 : vector<1x32x32xf32> to vector<32x32xf32>
    %138 = vector.extract_strided_slice %135 {offsets = [0, 0], sizes = [32, 32], strides = [1, 1]} : vector<32x96xf32> to vector<32x32xf32>
    %cst_51 = arith.constant dense<0.000000e+00> : vector<8x32xf32>
    %139 = tpu.matmul %133, %138, %cst_51 {dimension_numbers = #tpu.dot_dimension_numbers<[1], [0], [0], [1], [0, 0, 1, 1], [], []>} : vector<8x32xf32>, vector<32x32xf32>, vector<8x32xf32> -> vector<8x32xf32>
    %140 = vector.extract_strided_slice %10 {offsets = [0, 0], sizes = [1, 32], strides = [1, 1]} : vector<1x96xf32> to vector<1x32xf32>
    %141 = vector.broadcast %140 : vector<1x32xf32> to vector<8x32xf32>
    %142 = arith.addf %139, %141 : vector<8x32xf32>
    %143 = vector.extract_strided_slice %135 {offsets = [0, 32], sizes = [32, 64], strides = [1, 1]} : vector<32x96xf32> to vector<32x64xf32>
    %cst_52 = arith.constant dense<0.000000e+00> : vector<8x64xf32>
    %144 = tpu.matmul %3, %143, %cst_52 {dimension_numbers = #tpu.dot_dimension_numbers<[1], [0], [0], [1], [0, 0, 1, 1], [], []>} : vector<8x32xf32>, vector<32x64xf32>, vector<8x64xf32> -> vector<8x64xf32>
    %145 = vector.extract_strided_slice %10 {offsets = [0, 32], sizes = [1, 64], strides = [1, 1]} : vector<1x96xf32> to vector<1x64xf32>
    %146 = vector.broadcast %145 : vector<1x64xf32> to vector<8x64xf32>
    %147 = arith.addf %144, %146 : vector<8x64xf32>
    %148 = vector.extract_strided_slice %147 {offsets = [0, 0], sizes = [8, 32], strides = [1, 1]} : vector<8x64xf32> to vector<8x32xf32>
    %149 = vector.extract_strided_slice %147 {offsets = [0, 32], sizes = [8, 32], strides = [1, 1]} : vector<8x64xf32> to vector<8x32xf32>
    %150 = vector.extract_strided_slice %142 {offsets = [0, 0], sizes = [8, 8], strides = [1, 1]} : vector<8x32xf32> to vector<8x8xf32>
    %151 = vector.extract_strided_slice %148 {offsets = [0, 0], sizes = [8, 8], strides = [1, 1]} : vector<8x32xf32> to vector<8x8xf32>
    %152 = tpu.transpose %151, [1, 0] : vector<8x8xf32> -> vector<8x8xf32>
    %cst_53 = arith.constant dense<0.000000e+00> : vector<8x8xf32>
    %153 = tpu.matmul %150, %152, %cst_53 {dimension_numbers = #tpu.dot_dimension_numbers<[1], [0], [0], [1], [0, 0, 1, 1], [], []>} : vector<8x8xf32>, vector<8x8xf32>, vector<8x8xf32> -> vector<8x8xf32>
    %cst_54 = arith.constant 0.353553385 : f32
    %154 = vector.broadcast %cst_54 : f32 to vector<8x8xf32>
    %155 = arith.mulf %153, %154 : vector<8x8xf32>
    %156 = arith.addf %155, %6 : vector<8x8xf32>
    %cst_55 = arith.constant dense<0xFF800000> : vector<8xf32>
    %157 = vector.multi_reduction <maximumf>, %156, %cst_55 [1] : vector<8x8xf32> to vector<8xf32>
    %158 = vector.shape_cast %157 : vector<8xf32> to vector<8x1xf32>
    %159 = vector.broadcast %158 : vector<8x1xf32> to vector<8x8xf32>
    %160 = arith.subf %156, %159 : vector<8x8xf32>
    %161 = math.exp %160 : vector<8x8xf32>
    %cst_56 = arith.constant dense<0.000000e+00> : vector<8xf32>
    %162 = vector.multi_reduction <add>, %161, %cst_56 [1] : vector<8x8xf32> to vector<8xf32>
    %163 = vector.shape_cast %162 : vector<8xf32> to vector<8x1xf32>
    %164 = tpu.reciprocal %163 {approx = true} : vector<8x1xf32> -> vector<8x1xf32>
    %165 = vector.broadcast %164 : vector<8x1xf32> to vector<8x8xf32>
    %166 = arith.mulf %161, %165 : vector<8x8xf32>
    %167 = vector.extract_strided_slice %149 {offsets = [0, 0], sizes = [8, 8], strides = [1, 1]} : vector<8x32xf32> to vector<8x8xf32>
    %cst_57 = arith.constant dense<0.000000e+00> : vector<8x8xf32>
    %168 = tpu.matmul %166, %167, %cst_57 {dimension_numbers = #tpu.dot_dimension_numbers<[1], [0], [0], [1], [0, 0, 1, 1], [], []>} : vector<8x8xf32>, vector<8x8xf32>, vector<8x8xf32> -> vector<8x8xf32>
    %169 = vector.extract_strided_slice %142 {offsets = [0, 8], sizes = [8, 8], strides = [1, 1]} : vector<8x32xf32> to vector<8x8xf32>
    %170 = vector.extract_strided_slice %148 {offsets = [0, 8], sizes = [8, 8], strides = [1, 1]} : vector<8x32xf32> to vector<8x8xf32>
    %171 = tpu.transpose %170, [1, 0] : vector<8x8xf32> -> vector<8x8xf32>
    %cst_58 = arith.constant dense<0.000000e+00> : vector<8x8xf32>
    %172 = tpu.matmul %169, %171, %cst_58 {dimension_numbers = #tpu.dot_dimension_numbers<[1], [0], [0], [1], [0, 0, 1, 1], [], []>} : vector<8x8xf32>, vector<8x8xf32>, vector<8x8xf32> -> vector<8x8xf32>
    %cst_59 = arith.constant 0.353553385 : f32
    %173 = vector.broadcast %cst_59 : f32 to vector<8x8xf32>
    %174 = arith.mulf %172, %173 : vector<8x8xf32>
    %175 = arith.addf %174, %6 : vector<8x8xf32>
    %cst_60 = arith.constant dense<0xFF800000> : vector<8xf32>
    %176 = vector.multi_reduction <maximumf>, %175, %cst_60 [1] : vector<8x8xf32> to vector<8xf32>
    %177 = vector.shape_cast %176 : vector<8xf32> to vector<8x1xf32>
    %178 = vector.broadcast %177 : vector<8x1xf32> to vector<8x8xf32>
    %179 = arith.subf %175, %178 : vector<8x8xf32>
    %180 = math.exp %179 : vector<8x8xf32>
    %cst_61 = arith.constant dense<0.000000e+00> : vector<8xf32>
    %181 = vector.multi_reduction <add>, %180, %cst_61 [1] : vector<8x8xf32> to vector<8xf32>
    %182 = vector.shape_cast %181 : vector<8xf32> to vector<8x1xf32>
    %183 = tpu.reciprocal %182 {approx = true} : vector<8x1xf32> -> vector<8x1xf32>
    %184 = vector.broadcast %183 : vector<8x1xf32> to vector<8x8xf32>
    %185 = arith.mulf %180, %184 : vector<8x8xf32>
    %186 = vector.extract_strided_slice %149 {offsets = [0, 8], sizes = [8, 8], strides = [1, 1]} : vector<8x32xf32> to vector<8x8xf32>
    %cst_62 = arith.constant dense<0.000000e+00> : vector<8x8xf32>
    %187 = tpu.matmul %185, %186, %cst_62 {dimension_numbers = #tpu.dot_dimension_numbers<[1], [0], [0], [1], [0, 0, 1, 1], [], []>} : vector<8x8xf32>, vector<8x8xf32>, vector<8x8xf32> -> vector<8x8xf32>
    %188 = vector.extract_strided_slice %142 {offsets = [0, 16], sizes = [8, 8], strides = [1, 1]} : vector<8x32xf32> to vector<8x8xf32>
    %189 = vector.extract_strided_slice %148 {offsets = [0, 16], sizes = [8, 8], strides = [1, 1]} : vector<8x32xf32> to vector<8x8xf32>
    %190 = tpu.transpose %189, [1, 0] : vector<8x8xf32> -> vector<8x8xf32>
    %cst_63 = arith.constant dense<0.000000e+00> : vector<8x8xf32>
    %191 = tpu.matmul %188, %190, %cst_63 {dimension_numbers = #tpu.dot_dimension_numbers<[1], [0], [0], [1], [0, 0, 1, 1], [], []>} : vector<8x8xf32>, vector<8x8xf32>, vector<8x8xf32> -> vector<8x8xf32>
    %cst_64 = arith.constant 0.353553385 : f32
    %192 = vector.broadcast %cst_64 : f32 to vector<8x8xf32>
    %193 = arith.mulf %191, %192 : vector<8x8xf32>
    %194 = arith.addf %193, %6 : vector<8x8xf32>
    %cst_65 = arith.constant dense<0xFF800000> : vector<8xf32>
    %195 = vector.multi_reduction <maximumf>, %194, %cst_65 [1] : vector<8x8xf32> to vector<8xf32>
    %196 = vector.shape_cast %195 : vector<8xf32> to vector<8x1xf32>
    %197 = vector.broadcast %196 : vector<8x1xf32> to vector<8x8xf32>
    %198 = arith.subf %194, %197 : vector<8x8xf32>
    %199 = math.exp %198 : vector<8x8xf32>
    %cst_66 = arith.constant dense<0.000000e+00> : vector<8xf32>
    %200 = vector.multi_reduction <add>, %199, %cst_66 [1] : vector<8x8xf32> to vector<8xf32>
    %201 = vector.shape_cast %200 : vector<8xf32> to vector<8x1xf32>
    %202 = tpu.reciprocal %201 {approx = true} : vector<8x1xf32> -> vector<8x1xf32>
    %203 = vector.broadcast %202 : vector<8x1xf32> to vector<8x8xf32>
    %204 = arith.mulf %199, %203 : vector<8x8xf32>
    %205 = vector.extract_strided_slice %149 {offsets = [0, 16], sizes = [8, 8], strides = [1, 1]} : vector<8x32xf32> to vector<8x8xf32>
    %cst_67 = arith.constant dense<0.000000e+00> : vector<8x8xf32>
    %206 = tpu.matmul %204, %205, %cst_67 {dimension_numbers = #tpu.dot_dimension_numbers<[1], [0], [0], [1], [0, 0, 1, 1], [], []>} : vector<8x8xf32>, vector<8x8xf32>, vector<8x8xf32> -> vector<8x8xf32>
    %207 = vector.extract_strided_slice %142 {offsets = [0, 24], sizes = [8, 8], strides = [1, 1]} : vector<8x32xf32> to vector<8x8xf32>
    %208 = vector.extract_strided_slice %148 {offsets = [0, 24], sizes = [8, 8], strides = [1, 1]} : vector<8x32xf32> to vector<8x8xf32>
    %209 = tpu.transpose %208, [1, 0] : vector<8x8xf32> -> vector<8x8xf32>
    %cst_68 = arith.constant dense<0.000000e+00> : vector<8x8xf32>
    %210 = tpu.matmul %207, %209, %cst_68 {dimension_numbers = #tpu.dot_dimension_numbers<[1], [0], [0], [1], [0, 0, 1, 1], [], []>} : vector<8x8xf32>, vector<8x8xf32>, vector<8x8xf32> -> vector<8x8xf32>
    %cst_69 = arith.constant 0.353553385 : f32
    %211 = vector.broadcast %cst_69 : f32 to vector<8x8xf32>
    %212 = arith.mulf %210, %211 : vector<8x8xf32>
    %213 = arith.addf %212, %6 : vector<8x8xf32>
    %cst_70 = arith.constant dense<0xFF800000> : vector<8xf32>
    %214 = vector.multi_reduction <maximumf>, %213, %cst_70 [1] : vector<8x8xf32> to vector<8xf32>
    %215 = vector.shape_cast %214 : vector<8xf32> to vector<8x1xf32>
    %216 = vector.broadcast %215 : vector<8x1xf32> to vector<8x8xf32>
    %217 = arith.subf %213, %216 : vector<8x8xf32>
    %218 = math.exp %217 : vector<8x8xf32>
    %cst_71 = arith.constant dense<0.000000e+00> : vector<8xf32>
    %219 = vector.multi_reduction <add>, %218, %cst_71 [1] : vector<8x8xf32> to vector<8xf32>
    %220 = vector.shape_cast %219 : vector<8xf32> to vector<8x1xf32>
    %221 = tpu.reciprocal %220 {approx = true} : vector<8x1xf32> -> vector<8x1xf32>
    %222 = vector.broadcast %221 : vector<8x1xf32> to vector<8x8xf32>
    %223 = arith.mulf %218, %222 : vector<8x8xf32>
    %224 = vector.extract_strided_slice %149 {offsets = [0, 24], sizes = [8, 8], strides = [1, 1]} : vector<8x32xf32> to vector<8x8xf32>
    %cst_72 = arith.constant dense<0.000000e+00> : vector<8x8xf32>
    %225 = tpu.matmul %223, %224, %cst_72 {dimension_numbers = #tpu.dot_dimension_numbers<[1], [0], [0], [1], [0, 0, 1, 1], [], []>} : vector<8x8xf32>, vector<8x8xf32>, vector<8x8xf32> -> vector<8x8xf32>
    %226 = tpu.concatenate %168, %187, %206, %225 in 1 : vector<8x8xf32>, vector<8x8xf32>, vector<8x8xf32>, vector<8x8xf32> -> vector<8x32xf32>
    %cst_73 = arith.constant dense<0.000000e+00> : vector<8x32xf32>
    %227 = tpu.matmul %226, %137, %cst_73 {dimension_numbers = #tpu.dot_dimension_numbers<[1], [0], [0], [1], [0, 0, 1, 1], [], []>} : vector<8x32xf32>, vector<32x32xf32>, vector<8x32xf32> -> vector<8x32xf32>
    %228 = vector.broadcast %13 : vector<1x32xf32> to vector<8x32xf32>
    %229 = arith.addf %227, %228 : vector<8x32xf32>
    %230 = tpu.concatenate %166, %185, %204, %223 in 1 : vector<8x8xf32>, vector<8x8xf32>, vector<8x8xf32>, vector<8x8xf32> -> vector<8x32xf32>
    %231 = arith.addf %133, %229 : vector<8x32xf32>
    %cst_74 = arith.constant dense<0.000000e+00> : vector<8xf32>
    %232 = vector.multi_reduction <add>, %231, %cst_74 [1] : vector<8x32xf32> to vector<8xf32>
    %233 = vector.shape_cast %232 : vector<8xf32> to vector<8x1xf32>
    %cst_75 = arith.constant 3.200000e+01 : f32
    %234 = vector.broadcast %cst_75 : f32 to vector<8x1xf32>
    %235 = arith.divf %233, %234 : vector<8x1xf32>
    %236 = vector.broadcast %235 : vector<8x1xf32> to vector<8x32xf32>
    %237 = arith.subf %231, %236 : vector<8x32xf32>
    %238 = arith.mulf %237, %237 : vector<8x32xf32>
    %cst_76 = arith.constant dense<0.000000e+00> : vector<8xf32>
    %239 = vector.multi_reduction <add>, %238, %cst_76 [1] : vector<8x32xf32> to vector<8xf32>
    %240 = vector.shape_cast %239 : vector<8xf32> to vector<8x1xf32>
    %cst_77 = arith.constant 3.200000e+01 : f32
    %241 = vector.broadcast %cst_77 : f32 to vector<8x1xf32>
    %242 = arith.divf %240, %241 : vector<8x1xf32>
    %243 = vector.broadcast %235 : vector<8x1xf32> to vector<8x32xf32>
    %244 = arith.subf %231, %243 : vector<8x32xf32>
    %cst_78 = arith.constant 9.99999974E-6 : f32
    %245 = vector.broadcast %cst_78 : f32 to vector<8x1xf32>
    %246 = arith.addf %242, %245 : vector<8x1xf32>
    %247 = math.rsqrt %246 : vector<8x1xf32>
    %248 = vector.broadcast %247 : vector<8x1xf32> to vector<8x32xf32>
    %249 = arith.mulf %244, %248 : vector<8x32xf32>
    %250 = vector.broadcast %17 : vector<1x32xf32> to vector<8x32xf32>
    %251 = arith.mulf %249, %250 : vector<8x32xf32>
    %252 = vector.broadcast %18 : vector<1x32xf32> to vector<8x32xf32>
    %253 = arith.addf %251, %252 : vector<8x32xf32>
    %c0_79 = arith.constant 0 : index
    %c0_80 = arith.constant 0 : index
    %c0_81 = arith.constant 0 : index
    %254 = vector.load %arg9[%c0_79, %c0_80, %c0_81] : memref<2x32x64xf32, #tpu.memory_space<vmem>>, vector<1x32x64xf32>
    %255 = vector.shape_cast %254 : vector<1x32x64xf32> to vector<32x64xf32>
    %cst_82 = arith.constant dense<0.000000e+00> : vector<8x64xf32>
    %256 = tpu.matmul %253, %255, %cst_82 {dimension_numbers = #tpu.dot_dimension_numbers<[1], [0], [0], [1], [0, 0, 1, 1], [], []>} : vector<8x32xf32>, vector<32x64xf32>, vector<8x64xf32> -> vector<8x64xf32>
    %257 = vector.broadcast %11 : vector<1x64xf32> to vector<8x64xf32>
    %258 = arith.addf %256, %257 : vector<8x64xf32>
    %cst_83 = arith.constant 0.000000e+00 : f32
    %259 = vector.broadcast %cst_83 : f32 to vector<8x64xf32>
    %260 = arith.maximumf %258, %259 : vector<8x64xf32>
    %c0_84 = arith.constant 0 : index
    %c0_85 = arith.constant 0 : index
    %c0_86 = arith.constant 0 : index
    %261 = vector.load %arg10[%c0_84, %c0_85, %c0_86] : memref<2x64x32xf32, #tpu.memory_space<vmem>>, vector<1x64x32xf32>
    %262 = vector.shape_cast %261 : vector<1x64x32xf32> to vector<64x32xf32>
    %cst_87 = arith.constant dense<0.000000e+00> : vector<8x32xf32>
    %263 = tpu.matmul %260, %262, %cst_87 {dimension_numbers = #tpu.dot_dimension_numbers<[1], [0], [0], [1], [0, 0, 1, 1], [], []>} : vector<8x64xf32>, vector<64x32xf32>, vector<8x32xf32> -> vector<8x32xf32>
    %264 = vector.broadcast %14 : vector<1x32xf32> to vector<8x32xf32>
    %265 = arith.addf %263, %264 : vector<8x32xf32>
    %266 = arith.addf %253, %265 : vector<8x32xf32>
    %cst_88 = arith.constant dense<0.000000e+00> : vector<8xf32>
    %267 = vector.multi_reduction <add>, %266, %cst_88 [1] : vector<8x32xf32> to vector<8xf32>
    %268 = vector.shape_cast %267 : vector<8xf32> to vector<8x1xf32>
    %cst_89 = arith.constant 3.200000e+01 : f32
    %269 = vector.broadcast %cst_89 : f32 to vector<8x1xf32>
    %270 = arith.divf %268, %269 : vector<8x1xf32>
    %271 = vector.broadcast %270 : vector<8x1xf32> to vector<8x32xf32>
    %272 = arith.subf %266, %271 : vector<8x32xf32>
    %273 = arith.mulf %272, %272 : vector<8x32xf32>
    %cst_90 = arith.constant dense<0.000000e+00> : vector<8xf32>
    %274 = vector.multi_reduction <add>, %273, %cst_90 [1] : vector<8x32xf32> to vector<8xf32>
    %275 = vector.shape_cast %274 : vector<8xf32> to vector<8x1xf32>
    %cst_91 = arith.constant 3.200000e+01 : f32
    %276 = vector.broadcast %cst_91 : f32 to vector<8x1xf32>
    %277 = arith.divf %275, %276 : vector<8x1xf32>
    %278 = vector.broadcast %270 : vector<8x1xf32> to vector<8x32xf32>
    %279 = arith.subf %266, %278 : vector<8x32xf32>
    %cst_92 = arith.constant 9.99999974E-6 : f32
    %280 = vector.broadcast %cst_92 : f32 to vector<8x1xf32>
    %281 = arith.addf %277, %280 : vector<8x1xf32>
    %282 = math.rsqrt %281 : vector<8x1xf32>
    %283 = vector.broadcast %282 : vector<8x1xf32> to vector<8x32xf32>
    %284 = arith.mulf %279, %283 : vector<8x32xf32>
    %285 = vector.broadcast %19 : vector<1x32xf32> to vector<8x32xf32>
    %286 = arith.mulf %284, %285 : vector<8x32xf32>
    %287 = vector.broadcast %20 : vector<1x32xf32> to vector<8x32xf32>
    %288 = arith.addf %286, %287 : vector<8x32xf32>
    %c0_93 = arith.constant 0 : index
    %c0_94 = arith.constant 0 : index
    %c0_95 = arith.constant 0 : index
    %c0_96 = arith.constant 0 : index
    %289 = vector.load %arg13[%c0_93, %c0_94, %c0_95, %c0_96] : memref<1x2x8x32xf32, #tpu.memory_space<vmem>>, vector<1x1x8x32xf32>
    %290 = vector.shape_cast %289 : vector<1x1x8x32xf32> to vector<8x32xf32>
    %291 = vector.shape_cast %230 : vector<8x32xf32> to vector<1x1x8x32xf32>
    tpu.vector_store %arg13[%c0_93, %c0_94, %c0_95, %c0_96], %291 {strides = array<i32>} : memref<1x2x8x32xf32, #tpu.memory_space<vmem>>, vector<1x1x8x32xf32>,
    %c1 = arith.constant 1 : index
    %c0_97 = arith.constant 0 : index
    %c0_98 = arith.constant 0 : index
    %292 = vector.load %arg11[%c1, %c0_97, %c0_98] : memref<2x12x96xf32, #tpu.memory_space<vmem>>, vector<1x12x96xf32>
    %293 = vector.shape_cast %292 : vector<1x12x96xf32> to vector<12x96xf32>
    %294 = vector.extract_strided_slice %293 {offsets = [0, 0], sizes = [1, 96], strides = [1, 1]} : vector<12x96xf32> to vector<1x96xf32>
    %295 = vector.extract_strided_slice %293 {offsets = [1, 0], sizes = [1, 96], strides = [1, 1]} : vector<12x96xf32> to vector<1x96xf32>
    %296 = vector.extract_strided_slice %293 {offsets = [2, 0], sizes = [1, 64], strides = [1, 1]} : vector<12x96xf32> to vector<1x64xf32>
    %297 = vector.extract_strided_slice %293 {offsets = [3, 0], sizes = [1, 32], strides = [1, 1]} : vector<12x96xf32> to vector<1x32xf32>
    %298 = vector.extract_strided_slice %293 {offsets = [4, 0], sizes = [1, 32], strides = [1, 1]} : vector<12x96xf32> to vector<1x32xf32>
    %299 = vector.extract_strided_slice %293 {offsets = [5, 0], sizes = [1, 32], strides = [1, 1]} : vector<12x96xf32> to vector<1x32xf32>
    %300 = vector.extract_strided_slice %293 {offsets = [6, 0], sizes = [1, 32], strides = [1, 1]} : vector<12x96xf32> to vector<1x32xf32>
    %301 = vector.extract_strided_slice %293 {offsets = [7, 0], sizes = [1, 32], strides = [1, 1]} : vector<12x96xf32> to vector<1x32xf32>
    %302 = vector.extract_strided_slice %293 {offsets = [8, 0], sizes = [1, 32], strides = [1, 1]} : vector<12x96xf32> to vector<1x32xf32>
    %303 = vector.extract_strided_slice %293 {offsets = [9, 0], sizes = [1, 32], strides = [1, 1]} : vector<12x96xf32> to vector<1x32xf32>
    %304 = vector.extract_strided_slice %293 {offsets = [10, 0], sizes = [1, 32], strides = [1, 1]} : vector<12x96xf32> to vector<1x32xf32>
    %305 = vector.extract_strided_slice %293 {offsets = [11, 0], sizes = [1, 32], strides = [1, 1]} : vector<12x96xf32> to vector<1x32xf32>
    %c1_99 = arith.constant 1 : index
    %c0_100 = arith.constant 0 : index
    %c0_101 = arith.constant 0 : index
    %306 = vector.load %arg5[%c1_99, %c0_100, %c0_101] : memref<2x32x96xf32, #tpu.memory_space<vmem>>, vector<1x32x96xf32>
    %307 = vector.shape_cast %306 : vector<1x32x96xf32> to vector<32x96xf32>
    %c1_102 = arith.constant 1 : index
    %c0_103 = arith.constant 0 : index
    %c0_104 = arith.constant 0 : index
    %308 = vector.load %arg6[%c1_102, %c0_103, %c0_104] : memref<2x32x32xf32, #tpu.memory_space<vmem>>, vector<1x32x32xf32>
    %309 = vector.shape_cast %308 : vector<1x32x32xf32> to vector<32x32xf32>
    %cst_105 = arith.constant dense<0.000000e+00> : vector<8x96xf32>
    %310 = tpu.matmul %288, %307, %cst_105 {dimension_numbers = #tpu.dot_dimension_numbers<[1], [0], [0], [1], [0, 0, 1, 1], [], []>} : vector<8x32xf32>, vector<32x96xf32>, vector<8x96xf32> -> vector<8x96xf32>
    %311 = vector.broadcast %294 : vector<1x96xf32> to vector<8x96xf32>
    %312 = arith.addf %310, %311 : vector<8x96xf32>
    %313 = vector.extract_strided_slice %312 {offsets = [0, 0], sizes = [8, 32], strides = [1, 1]} : vector<8x96xf32> to vector<8x32xf32>
    %314 = vector.extract_strided_slice %312 {offsets = [0, 32], sizes = [8, 32], strides = [1, 1]} : vector<8x96xf32> to vector<8x32xf32>
    %315 = vector.extract_strided_slice %312 {offsets = [0, 64], sizes = [8, 32], strides = [1, 1]} : vector<8x96xf32> to vector<8x32xf32>
    %316 = vector.extract_strided_slice %313 {offsets = [0, 0], sizes = [8, 8], strides = [1, 1]} : vector<8x32xf32> to vector<8x8xf32>
    %317 = vector.extract_strided_slice %314 {offsets = [0, 0], sizes = [8, 8], strides = [1, 1]} : vector<8x32xf32> to vector<8x8xf32>
    %318 = tpu.transpose %317, [1, 0] : vector<8x8xf32> -> vector<8x8xf32>
    %cst_106 = arith.constant dense<0.000000e+00> : vector<8x8xf32>
    %319 = tpu.matmul %316, %318, %cst_106 {dimension_numbers = #tpu.dot_dimension_numbers<[1], [0], [0], [1], [0, 0, 1, 1], [], []>} : vector<8x8xf32>, vector<8x8xf32>, vector<8x8xf32> -> vector<8x8xf32>
    %cst_107 = arith.constant 0.353553385 : f32
    %320 = vector.broadcast %cst_107 : f32 to vector<8x8xf32>
    %321 = arith.mulf %319, %320 : vector<8x8xf32>
    %322 = arith.addf %321, %4 : vector<8x8xf32>
    %cst_108 = arith.constant dense<0xFF800000> : vector<8xf32>
    %323 = vector.multi_reduction <maximumf>, %322, %cst_108 [1] : vector<8x8xf32> to vector<8xf32>
    %324 = vector.shape_cast %323 : vector<8xf32> to vector<8x1xf32>
    %325 = vector.broadcast %324 : vector<8x1xf32> to vector<8x8xf32>
    %326 = arith.subf %322, %325 : vector<8x8xf32>
    %327 = math.exp %326 : vector<8x8xf32>
    %cst_109 = arith.constant dense<0.000000e+00> : vector<8xf32>
    %328 = vector.multi_reduction <add>, %327, %cst_109 [1] : vector<8x8xf32> to vector<8xf32>
    %329 = vector.shape_cast %328 : vector<8xf32> to vector<8x1xf32>
    %330 = tpu.reciprocal %329 {approx = true} : vector<8x1xf32> -> vector<8x1xf32>
    %331 = vector.broadcast %330 : vector<8x1xf32> to vector<8x8xf32>
    %332 = arith.mulf %327, %331 : vector<8x8xf32>
    %333 = vector.extract_strided_slice %315 {offsets = [0, 0], sizes = [8, 8], strides = [1, 1]} : vector<8x32xf32> to vector<8x8xf32>
    %cst_110 = arith.constant dense<0.000000e+00> : vector<8x8xf32>
    %334 = tpu.matmul %332, %333, %cst_110 {dimension_numbers = #tpu.dot_dimension_numbers<[1], [0], [0], [1], [0, 0, 1, 1], [], []>} : vector<8x8xf32>, vector<8x8xf32>, vector<8x8xf32> -> vector<8x8xf32>
    %335 = vector.extract_strided_slice %313 {offsets = [0, 8], sizes = [8, 8], strides = [1, 1]} : vector<8x32xf32> to vector<8x8xf32>
    %336 = vector.extract_strided_slice %314 {offsets = [0, 8], sizes = [8, 8], strides = [1, 1]} : vector<8x32xf32> to vector<8x8xf32>
    %337 = tpu.transpose %336, [1, 0] : vector<8x8xf32> -> vector<8x8xf32>
    %cst_111 = arith.constant dense<0.000000e+00> : vector<8x8xf32>
    %338 = tpu.matmul %335, %337, %cst_111 {dimension_numbers = #tpu.dot_dimension_numbers<[1], [0], [0], [1], [0, 0, 1, 1], [], []>} : vector<8x8xf32>, vector<8x8xf32>, vector<8x8xf32> -> vector<8x8xf32>
    %cst_112 = arith.constant 0.353553385 : f32
    %339 = vector.broadcast %cst_112 : f32 to vector<8x8xf32>
    %340 = arith.mulf %338, %339 : vector<8x8xf32>
    %341 = arith.addf %340, %4 : vector<8x8xf32>
    %cst_113 = arith.constant dense<0xFF800000> : vector<8xf32>
    %342 = vector.multi_reduction <maximumf>, %341, %cst_113 [1] : vector<8x8xf32> to vector<8xf32>
    %343 = vector.shape_cast %342 : vector<8xf32> to vector<8x1xf32>
    %344 = vector.broadcast %343 : vector<8x1xf32> to vector<8x8xf32>
    %345 = arith.subf %341, %344 : vector<8x8xf32>
    %346 = math.exp %345 : vector<8x8xf32>
    %cst_114 = arith.constant dense<0.000000e+00> : vector<8xf32>
    %347 = vector.multi_reduction <add>, %346, %cst_114 [1] : vector<8x8xf32> to vector<8xf32>
    %348 = vector.shape_cast %347 : vector<8xf32> to vector<8x1xf32>
    %349 = tpu.reciprocal %348 {approx = true} : vector<8x1xf32> -> vector<8x1xf32>
    %350 = vector.broadcast %349 : vector<8x1xf32> to vector<8x8xf32>
    %351 = arith.mulf %346, %350 : vector<8x8xf32>
    %352 = vector.extract_strided_slice %315 {offsets = [0, 8], sizes = [8, 8], strides = [1, 1]} : vector<8x32xf32> to vector<8x8xf32>
    %cst_115 = arith.constant dense<0.000000e+00> : vector<8x8xf32>
    %353 = tpu.matmul %351, %352, %cst_115 {dimension_numbers = #tpu.dot_dimension_numbers<[1], [0], [0], [1], [0, 0, 1, 1], [], []>} : vector<8x8xf32>, vector<8x8xf32>, vector<8x8xf32> -> vector<8x8xf32>
    %354 = vector.extract_strided_slice %313 {offsets = [0, 16], sizes = [8, 8], strides = [1, 1]} : vector<8x32xf32> to vector<8x8xf32>
    %355 = vector.extract_strided_slice %314 {offsets = [0, 16], sizes = [8, 8], strides = [1, 1]} : vector<8x32xf32> to vector<8x8xf32>
    %356 = tpu.transpose %355, [1, 0] : vector<8x8xf32> -> vector<8x8xf32>
    %cst_116 = arith.constant dense<0.000000e+00> : vector<8x8xf32>
    %357 = tpu.matmul %354, %356, %cst_116 {dimension_numbers = #tpu.dot_dimension_numbers<[1], [0], [0], [1], [0, 0, 1, 1], [], []>} : vector<8x8xf32>, vector<8x8xf32>, vector<8x8xf32> -> vector<8x8xf32>
    %cst_117 = arith.constant 0.353553385 : f32
    %358 = vector.broadcast %cst_117 : f32 to vector<8x8xf32>
    %359 = arith.mulf %357, %358 : vector<8x8xf32>
    %360 = arith.addf %359, %4 : vector<8x8xf32>
    %cst_118 = arith.constant dense<0xFF800000> : vector<8xf32>
    %361 = vector.multi_reduction <maximumf>, %360, %cst_118 [1] : vector<8x8xf32> to vector<8xf32>
    %362 = vector.shape_cast %361 : vector<8xf32> to vector<8x1xf32>
    %363 = vector.broadcast %362 : vector<8x1xf32> to vector<8x8xf32>
    %364 = arith.subf %360, %363 : vector<8x8xf32>
    %365 = math.exp %364 : vector<8x8xf32>
    %cst_119 = arith.constant dense<0.000000e+00> : vector<8xf32>
    %366 = vector.multi_reduction <add>, %365, %cst_119 [1] : vector<8x8xf32> to vector<8xf32>
    %367 = vector.shape_cast %366 : vector<8xf32> to vector<8x1xf32>
    %368 = tpu.reciprocal %367 {approx = true} : vector<8x1xf32> -> vector<8x1xf32>
    %369 = vector.broadcast %368 : vector<8x1xf32> to vector<8x8xf32>
    %370 = arith.mulf %365, %369 : vector<8x8xf32>
    %371 = vector.extract_strided_slice %315 {offsets = [0, 16], sizes = [8, 8], strides = [1, 1]} : vector<8x32xf32> to vector<8x8xf32>
    %cst_120 = arith.constant dense<0.000000e+00> : vector<8x8xf32>
    %372 = tpu.matmul %370, %371, %cst_120 {dimension_numbers = #tpu.dot_dimension_numbers<[1], [0], [0], [1], [0, 0, 1, 1], [], []>} : vector<8x8xf32>, vector<8x8xf32>, vector<8x8xf32> -> vector<8x8xf32>
    %373 = vector.extract_strided_slice %313 {offsets = [0, 24], sizes = [8, 8], strides = [1, 1]} : vector<8x32xf32> to vector<8x8xf32>
    %374 = vector.extract_strided_slice %314 {offsets = [0, 24], sizes = [8, 8], strides = [1, 1]} : vector<8x32xf32> to vector<8x8xf32>
    %375 = tpu.transpose %374, [1, 0] : vector<8x8xf32> -> vector<8x8xf32>
    %cst_121 = arith.constant dense<0.000000e+00> : vector<8x8xf32>
    %376 = tpu.matmul %373, %375, %cst_121 {dimension_numbers = #tpu.dot_dimension_numbers<[1], [0], [0], [1], [0, 0, 1, 1], [], []>} : vector<8x8xf32>, vector<8x8xf32>, vector<8x8xf32> -> vector<8x8xf32>
    %cst_122 = arith.constant 0.353553385 : f32
    %377 = vector.broadcast %cst_122 : f32 to vector<8x8xf32>
    %378 = arith.mulf %376, %377 : vector<8x8xf32>
    %379 = arith.addf %378, %4 : vector<8x8xf32>
    %cst_123 = arith.constant dense<0xFF800000> : vector<8xf32>
    %380 = vector.multi_reduction <maximumf>, %379, %cst_123 [1] : vector<8x8xf32> to vector<8xf32>
    %381 = vector.shape_cast %380 : vector<8xf32> to vector<8x1xf32>
    %382 = vector.broadcast %381 : vector<8x1xf32> to vector<8x8xf32>
    %383 = arith.subf %379, %382 : vector<8x8xf32>
    %384 = math.exp %383 : vector<8x8xf32>
    %cst_124 = arith.constant dense<0.000000e+00> : vector<8xf32>
    %385 = vector.multi_reduction <add>, %384, %cst_124 [1] : vector<8x8xf32> to vector<8xf32>
    %386 = vector.shape_cast %385 : vector<8xf32> to vector<8x1xf32>
    %387 = tpu.reciprocal %386 {approx = true} : vector<8x1xf32> -> vector<8x1xf32>
    %388 = vector.broadcast %387 : vector<8x1xf32> to vector<8x8xf32>
    %389 = arith.mulf %384, %388 : vector<8x8xf32>
    %390 = vector.extract_strided_slice %315 {offsets = [0, 24], sizes = [8, 8], strides = [1, 1]} : vector<8x32xf32> to vector<8x8xf32>
    %cst_125 = arith.constant dense<0.000000e+00> : vector<8x8xf32>
    %391 = tpu.matmul %389, %390, %cst_125 {dimension_numbers = #tpu.dot_dimension_numbers<[1], [0], [0], [1], [0, 0, 1, 1], [], []>} : vector<8x8xf32>, vector<8x8xf32>, vector<8x8xf32> -> vector<8x8xf32>
    %392 = tpu.concatenate %334, %353, %372, %391 in 1 : vector<8x8xf32>, vector<8x8xf32>, vector<8x8xf32>, vector<8x8xf32> -> vector<8x32xf32>
    %cst_126 = arith.constant dense<0.000000e+00> : vector<8x32xf32>
    %393 = tpu.matmul %392, %309, %cst_126 {dimension_numbers = #tpu.dot_dimension_numbers<[1], [0], [0], [1], [0, 0, 1, 1], [], []>} : vector<8x32xf32>, vector<32x32xf32>, vector<8x32xf32> -> vector<8x32xf32>
    %394 = vector.broadcast %297 : vector<1x32xf32> to vector<8x32xf32>
    %395 = arith.addf %393, %394 : vector<8x32xf32>
    %396 = arith.addf %288, %395 : vector<8x32xf32>
    %cst_127 = arith.constant dense<0.000000e+00> : vector<8xf32>
    %397 = vector.multi_reduction <add>, %396, %cst_127 [1] : vector<8x32xf32> to vector<8xf32>
    %398 = vector.shape_cast %397 : vector<8xf32> to vector<8x1xf32>
    %cst_128 = arith.constant 3.200000e+01 : f32
    %399 = vector.broadcast %cst_128 : f32 to vector<8x1xf32>
    %400 = arith.divf %398, %399 : vector<8x1xf32>
    %401 = vector.broadcast %400 : vector<8x1xf32> to vector<8x32xf32>
    %402 = arith.subf %396, %401 : vector<8x32xf32>
    %403 = arith.mulf %402, %402 : vector<8x32xf32>
    %cst_129 = arith.constant dense<0.000000e+00> : vector<8xf32>
    %404 = vector.multi_reduction <add>, %403, %cst_129 [1] : vector<8x32xf32> to vector<8xf32>
    %405 = vector.shape_cast %404 : vector<8xf32> to vector<8x1xf32>
    %cst_130 = arith.constant 3.200000e+01 : f32
    %406 = vector.broadcast %cst_130 : f32 to vector<8x1xf32>
    %407 = arith.divf %405, %406 : vector<8x1xf32>
    %408 = vector.broadcast %400 : vector<8x1xf32> to vector<8x32xf32>
    %409 = arith.subf %396, %408 : vector<8x32xf32>
    %cst_131 = arith.constant 9.99999974E-6 : f32
    %410 = vector.broadcast %cst_131 : f32 to vector<8x1xf32>
    %411 = arith.addf %407, %410 : vector<8x1xf32>
    %412 = math.rsqrt %411 : vector<8x1xf32>
    %413 = vector.broadcast %412 : vector<8x1xf32> to vector<8x32xf32>
    %414 = arith.mulf %409, %413 : vector<8x32xf32>
    %415 = vector.broadcast %300 : vector<1x32xf32> to vector<8x32xf32>
    %416 = arith.mulf %414, %415 : vector<8x32xf32>
    %417 = vector.broadcast %301 : vector<1x32xf32> to vector<8x32xf32>
    %418 = arith.addf %416, %417 : vector<8x32xf32>
    %c1_132 = arith.constant 1 : index
    %c0_133 = arith.constant 0 : index
    %c0_134 = arith.constant 0 : index
    %419 = vector.load %arg7[%c1_132, %c0_133, %c0_134] : memref<2x32x96xf32, #tpu.memory_space<vmem>>, vector<1x32x96xf32>
    %420 = vector.shape_cast %419 : vector<1x32x96xf32> to vector<32x96xf32>
    %c1_135 = arith.constant 1 : index
    %c0_136 = arith.constant 0 : index
    %c0_137 = arith.constant 0 : index
    %421 = vector.load %arg8[%c1_135, %c0_136, %c0_137] : memref<2x32x32xf32, #tpu.memory_space<vmem>>, vector<1x32x32xf32>
    %422 = vector.shape_cast %421 : vector<1x32x32xf32> to vector<32x32xf32>
    %423 = vector.extract_strided_slice %420 {offsets = [0, 0], sizes = [32, 32], strides = [1, 1]} : vector<32x96xf32> to vector<32x32xf32>
    %cst_138 = arith.constant dense<0.000000e+00> : vector<8x32xf32>
    %424 = tpu.matmul %418, %423, %cst_138 {dimension_numbers = #tpu.dot_dimension_numbers<[1], [0], [0], [1], [0, 0, 1, 1], [], []>} : vector<8x32xf32>, vector<32x32xf32>, vector<8x32xf32> -> vector<8x32xf32>
    %425 = vector.extract_strided_slice %295 {offsets = [0, 0], sizes = [1, 32], strides = [1, 1]} : vector<1x96xf32> to vector<1x32xf32>
    %426 = vector.broadcast %425 : vector<1x32xf32> to vector<8x32xf32>
    %427 = arith.addf %424, %426 : vector<8x32xf32>
    %428 = vector.extract_strided_slice %420 {offsets = [0, 32], sizes = [32, 64], strides = [1, 1]} : vector<32x96xf32> to vector<32x64xf32>
    %cst_139 = arith.constant dense<0.000000e+00> : vector<8x64xf32>
    %429 = tpu.matmul %3, %428, %cst_139 {dimension_numbers = #tpu.dot_dimension_numbers<[1], [0], [0], [1], [0, 0, 1, 1], [], []>} : vector<8x32xf32>, vector<32x64xf32>, vector<8x64xf32> -> vector<8x64xf32>
    %430 = vector.extract_strided_slice %295 {offsets = [0, 32], sizes = [1, 64], strides = [1, 1]} : vector<1x96xf32> to vector<1x64xf32>
    %431 = vector.broadcast %430 : vector<1x64xf32> to vector<8x64xf32>
    %432 = arith.addf %429, %431 : vector<8x64xf32>
    %433 = vector.extract_strided_slice %432 {offsets = [0, 0], sizes = [8, 32], strides = [1, 1]} : vector<8x64xf32> to vector<8x32xf32>
    %434 = vector.extract_strided_slice %432 {offsets = [0, 32], sizes = [8, 32], strides = [1, 1]} : vector<8x64xf32> to vector<8x32xf32>
    %435 = vector.extract_strided_slice %427 {offsets = [0, 0], sizes = [8, 8], strides = [1, 1]} : vector<8x32xf32> to vector<8x8xf32>
    %436 = vector.extract_strided_slice %433 {offsets = [0, 0], sizes = [8, 8], strides = [1, 1]} : vector<8x32xf32> to vector<8x8xf32>
    %437 = tpu.transpose %436, [1, 0] : vector<8x8xf32> -> vector<8x8xf32>
    %cst_140 = arith.constant dense<0.000000e+00> : vector<8x8xf32>
    %438 = tpu.matmul %435, %437, %cst_140 {dimension_numbers = #tpu.dot_dimension_numbers<[1], [0], [0], [1], [0, 0, 1, 1], [], []>} : vector<8x8xf32>, vector<8x8xf32>, vector<8x8xf32> -> vector<8x8xf32>
    %cst_141 = arith.constant 0.353553385 : f32
    %439 = vector.broadcast %cst_141 : f32 to vector<8x8xf32>
    %440 = arith.mulf %438, %439 : vector<8x8xf32>
    %441 = arith.addf %440, %6 : vector<8x8xf32>
    %cst_142 = arith.constant dense<0xFF800000> : vector<8xf32>
    %442 = vector.multi_reduction <maximumf>, %441, %cst_142 [1] : vector<8x8xf32> to vector<8xf32>
    %443 = vector.shape_cast %442 : vector<8xf32> to vector<8x1xf32>
    %444 = vector.broadcast %443 : vector<8x1xf32> to vector<8x8xf32>
    %445 = arith.subf %441, %444 : vector<8x8xf32>
    %446 = math.exp %445 : vector<8x8xf32>
    %cst_143 = arith.constant dense<0.000000e+00> : vector<8xf32>
    %447 = vector.multi_reduction <add>, %446, %cst_143 [1] : vector<8x8xf32> to vector<8xf32>
    %448 = vector.shape_cast %447 : vector<8xf32> to vector<8x1xf32>
    %449 = tpu.reciprocal %448 {approx = true} : vector<8x1xf32> -> vector<8x1xf32>
    %450 = vector.broadcast %449 : vector<8x1xf32> to vector<8x8xf32>
    %451 = arith.mulf %446, %450 : vector<8x8xf32>
    %452 = vector.extract_strided_slice %434 {offsets = [0, 0], sizes = [8, 8], strides = [1, 1]} : vector<8x32xf32> to vector<8x8xf32>
    %cst_144 = arith.constant dense<0.000000e+00> : vector<8x8xf32>
    %453 = tpu.matmul %451, %452, %cst_144 {dimension_numbers = #tpu.dot_dimension_numbers<[1], [0], [0], [1], [0, 0, 1, 1], [], []>} : vector<8x8xf32>, vector<8x8xf32>, vector<8x8xf32> -> vector<8x8xf32>
    %454 = vector.extract_strided_slice %427 {offsets = [0, 8], sizes = [8, 8], strides = [1, 1]} : vector<8x32xf32> to vector<8x8xf32>
    %455 = vector.extract_strided_slice %433 {offsets = [0, 8], sizes = [8, 8], strides = [1, 1]} : vector<8x32xf32> to vector<8x8xf32>
    %456 = tpu.transpose %455, [1, 0] : vector<8x8xf32> -> vector<8x8xf32>
    %cst_145 = arith.constant dense<0.000000e+00> : vector<8x8xf32>
    %457 = tpu.matmul %454, %456, %cst_145 {dimension_numbers = #tpu.dot_dimension_numbers<[1], [0], [0], [1], [0, 0, 1, 1], [], []>} : vector<8x8xf32>, vector<8x8xf32>, vector<8x8xf32> -> vector<8x8xf32>
    %cst_146 = arith.constant 0.353553385 : f32
    %458 = vector.broadcast %cst_146 : f32 to vector<8x8xf32>
    %459 = arith.mulf %457, %458 : vector<8x8xf32>
    %460 = arith.addf %459, %6 : vector<8x8xf32>
    %cst_147 = arith.constant dense<0xFF800000> : vector<8xf32>
    %461 = vector.multi_reduction <maximumf>, %460, %cst_147 [1] : vector<8x8xf32> to vector<8xf32>
    %462 = vector.shape_cast %461 : vector<8xf32> to vector<8x1xf32>
    %463 = vector.broadcast %462 : vector<8x1xf32> to vector<8x8xf32>
    %464 = arith.subf %460, %463 : vector<8x8xf32>
    %465 = math.exp %464 : vector<8x8xf32>
    %cst_148 = arith.constant dense<0.000000e+00> : vector<8xf32>
    %466 = vector.multi_reduction <add>, %465, %cst_148 [1] : vector<8x8xf32> to vector<8xf32>
    %467 = vector.shape_cast %466 : vector<8xf32> to vector<8x1xf32>
    %468 = tpu.reciprocal %467 {approx = true} : vector<8x1xf32> -> vector<8x1xf32>
    %469 = vector.broadcast %468 : vector<8x1xf32> to vector<8x8xf32>
    %470 = arith.mulf %465, %469 : vector<8x8xf32>
    %471 = vector.extract_strided_slice %434 {offsets = [0, 8], sizes = [8, 8], strides = [1, 1]} : vector<8x32xf32> to vector<8x8xf32>
    %cst_149 = arith.constant dense<0.000000e+00> : vector<8x8xf32>
    %472 = tpu.matmul %470, %471, %cst_149 {dimension_numbers = #tpu.dot_dimension_numbers<[1], [0], [0], [1], [0, 0, 1, 1], [], []>} : vector<8x8xf32>, vector<8x8xf32>, vector<8x8xf32> -> vector<8x8xf32>
    %473 = vector.extract_strided_slice %427 {offsets = [0, 16], sizes = [8, 8], strides = [1, 1]} : vector<8x32xf32> to vector<8x8xf32>
    %474 = vector.extract_strided_slice %433 {offsets = [0, 16], sizes = [8, 8], strides = [1, 1]} : vector<8x32xf32> to vector<8x8xf32>
    %475 = tpu.transpose %474, [1, 0] : vector<8x8xf32> -> vector<8x8xf32>
    %cst_150 = arith.constant dense<0.000000e+00> : vector<8x8xf32>
    %476 = tpu.matmul %473, %475, %cst_150 {dimension_numbers = #tpu.dot_dimension_numbers<[1], [0], [0], [1], [0, 0, 1, 1], [], []>} : vector<8x8xf32>, vector<8x8xf32>, vector<8x8xf32> -> vector<8x8xf32>
    %cst_151 = arith.constant 0.353553385 : f32
    %477 = vector.broadcast %cst_151 : f32 to vector<8x8xf32>
    %478 = arith.mulf %476, %477 : vector<8x8xf32>
    %479 = arith.addf %478, %6 : vector<8x8xf32>
    %cst_152 = arith.constant dense<0xFF800000> : vector<8xf32>
    %480 = vector.multi_reduction <maximumf>, %479, %cst_152 [1] : vector<8x8xf32> to vector<8xf32>
    %481 = vector.shape_cast %480 : vector<8xf32> to vector<8x1xf32>
    %482 = vector.broadcast %481 : vector<8x1xf32> to vector<8x8xf32>
    %483 = arith.subf %479, %482 : vector<8x8xf32>
    %484 = math.exp %483 : vector<8x8xf32>
    %cst_153 = arith.constant dense<0.000000e+00> : vector<8xf32>
    %485 = vector.multi_reduction <add>, %484, %cst_153 [1] : vector<8x8xf32> to vector<8xf32>
    %486 = vector.shape_cast %485 : vector<8xf32> to vector<8x1xf32>
    %487 = tpu.reciprocal %486 {approx = true} : vector<8x1xf32> -> vector<8x1xf32>
    %488 = vector.broadcast %487 : vector<8x1xf32> to vector<8x8xf32>
    %489 = arith.mulf %484, %488 : vector<8x8xf32>
    %490 = vector.extract_strided_slice %434 {offsets = [0, 16], sizes = [8, 8], strides = [1, 1]} : vector<8x32xf32> to vector<8x8xf32>
    %cst_154 = arith.constant dense<0.000000e+00> : vector<8x8xf32>
    %491 = tpu.matmul %489, %490, %cst_154 {dimension_numbers = #tpu.dot_dimension_numbers<[1], [0], [0], [1], [0, 0, 1, 1], [], []>} : vector<8x8xf32>, vector<8x8xf32>, vector<8x8xf32> -> vector<8x8xf32>
    %492 = vector.extract_strided_slice %427 {offsets = [0, 24], sizes = [8, 8], strides = [1, 1]} : vector<8x32xf32> to vector<8x8xf32>
    %493 = vector.extract_strided_slice %433 {offsets = [0, 24], sizes = [8, 8], strides = [1, 1]} : vector<8x32xf32> to vector<8x8xf32>
    %494 = tpu.transpose %493, [1, 0] : vector<8x8xf32> -> vector<8x8xf32>
    %cst_155 = arith.constant dense<0.000000e+00> : vector<8x8xf32>
    %495 = tpu.matmul %492, %494, %cst_155 {dimension_numbers = #tpu.dot_dimension_numbers<[1], [0], [0], [1], [0, 0, 1, 1], [], []>} : vector<8x8xf32>, vector<8x8xf32>, vector<8x8xf32> -> vector<8x8xf32>
    %cst_156 = arith.constant 0.353553385 : f32
    %496 = vector.broadcast %cst_156 : f32 to vector<8x8xf32>
    %497 = arith.mulf %495, %496 : vector<8x8xf32>
    %498 = arith.addf %497, %6 : vector<8x8xf32>
    %cst_157 = arith.constant dense<0xFF800000> : vector<8xf32>
    %499 = vector.multi_reduction <maximumf>, %498, %cst_157 [1] : vector<8x8xf32> to vector<8xf32>
    %500 = vector.shape_cast %499 : vector<8xf32> to vector<8x1xf32>
    %501 = vector.broadcast %500 : vector<8x1xf32> to vector<8x8xf32>
    %502 = arith.subf %498, %501 : vector<8x8xf32>
    %503 = math.exp %502 : vector<8x8xf32>
    %cst_158 = arith.constant dense<0.000000e+00> : vector<8xf32>
    %504 = vector.multi_reduction <add>, %503, %cst_158 [1] : vector<8x8xf32> to vector<8xf32>
    %505 = vector.shape_cast %504 : vector<8xf32> to vector<8x1xf32>
    %506 = tpu.reciprocal %505 {approx = true} : vector<8x1xf32> -> vector<8x1xf32>
    %507 = vector.broadcast %506 : vector<8x1xf32> to vector<8x8xf32>
    %508 = arith.mulf %503, %507 : vector<8x8xf32>
    %509 = vector.extract_strided_slice %434 {offsets = [0, 24], sizes = [8, 8], strides = [1, 1]} : vector<8x32xf32> to vector<8x8xf32>
    %cst_159 = arith.constant dense<0.000000e+00> : vector<8x8xf32>
    %510 = tpu.matmul %508, %509, %cst_159 {dimension_numbers = #tpu.dot_dimension_numbers<[1], [0], [0], [1], [0, 0, 1, 1], [], []>} : vector<8x8xf32>, vector<8x8xf32>, vector<8x8xf32> -> vector<8x8xf32>
    %511 = tpu.concatenate %453, %472, %491, %510 in 1 : vector<8x8xf32>, vector<8x8xf32>, vector<8x8xf32>, vector<8x8xf32> -> vector<8x32xf32>
    %cst_160 = arith.constant dense<0.000000e+00> : vector<8x32xf32>
    %512 = tpu.matmul %511, %422, %cst_160 {dimension_numbers = #tpu.dot_dimension_numbers<[1], [0], [0], [1], [0, 0, 1, 1], [], []>} : vector<8x32xf32>, vector<32x32xf32>, vector<8x32xf32> -> vector<8x32xf32>
    %513 = vector.broadcast %298 : vector<1x32xf32> to vector<8x32xf32>
    %514 = arith.addf %512, %513 : vector<8x32xf32>
    %515 = tpu.concatenate %451, %470, %489, %508 in 1 : vector<8x8xf32>, vector<8x8xf32>, vector<8x8xf32>, vector<8x8xf32> -> vector<8x32xf32>
    %516 = arith.addf %418, %514 : vector<8x32xf32>
    %cst_161 = arith.constant dense<0.000000e+00> : vector<8xf32>
    %517 = vector.multi_reduction <add>, %516, %cst_161 [1] : vector<8x32xf32> to vector<8xf32>
    %518 = vector.shape_cast %517 : vector<8xf32> to vector<8x1xf32>
    %cst_162 = arith.constant 3.200000e+01 : f32
    %519 = vector.broadcast %cst_162 : f32 to vector<8x1xf32>
    %520 = arith.divf %518, %519 : vector<8x1xf32>
    %521 = vector.broadcast %520 : vector<8x1xf32> to vector<8x32xf32>
    %522 = arith.subf %516, %521 : vector<8x32xf32>
    %523 = arith.mulf %522, %522 : vector<8x32xf32>
    %cst_163 = arith.constant dense<0.000000e+00> : vector<8xf32>
    %524 = vector.multi_reduction <add>, %523, %cst_163 [1] : vector<8x32xf32> to vector<8xf32>
    %525 = vector.shape_cast %524 : vector<8xf32> to vector<8x1xf32>
    %cst_164 = arith.constant 3.200000e+01 : f32
    %526 = vector.broadcast %cst_164 : f32 to vector<8x1xf32>
    %527 = arith.divf %525, %526 : vector<8x1xf32>
    %528 = vector.broadcast %520 : vector<8x1xf32> to vector<8x32xf32>
    %529 = arith.subf %516, %528 : vector<8x32xf32>
    %cst_165 = arith.constant 9.99999974E-6 : f32
    %530 = vector.broadcast %cst_165 : f32 to vector<8x1xf32>
    %531 = arith.addf %527, %530 : vector<8x1xf32>
    %532 = math.rsqrt %531 : vector<8x1xf32>
    %533 = vector.broadcast %532 : vector<8x1xf32> to vector<8x32xf32>
    %534 = arith.mulf %529, %533 : vector<8x32xf32>
    %535 = vector.broadcast %302 : vector<1x32xf32> to vector<8x32xf32>
    %536 = arith.mulf %534, %535 : vector<8x32xf32>
    %537 = vector.broadcast %303 : vector<1x32xf32> to vector<8x32xf32>
    %538 = arith.addf %536, %537 : vector<8x32xf32>
    %c1_166 = arith.constant 1 : index
    %c0_167 = arith.constant 0 : index
    %c0_168 = arith.constant 0 : index
    %539 = vector.load %arg9[%c1_166, %c0_167, %c0_168] : memref<2x32x64xf32, #tpu.memory_space<vmem>>, vector<1x32x64xf32>
    %540 = vector.shape_cast %539 : vector<1x32x64xf32> to vector<32x64xf32>
    %cst_169 = arith.constant dense<0.000000e+00> : vector<8x64xf32>
    %541 = tpu.matmul %538, %540, %cst_169 {dimension_numbers = #tpu.dot_dimension_numbers<[1], [0], [0], [1], [0, 0, 1, 1], [], []>} : vector<8x32xf32>, vector<32x64xf32>, vector<8x64xf32> -> vector<8x64xf32>
    %542 = vector.broadcast %296 : vector<1x64xf32> to vector<8x64xf32>
    %543 = arith.addf %541, %542 : vector<8x64xf32>
    %cst_170 = arith.constant 0.000000e+00 : f32
    %544 = vector.broadcast %cst_170 : f32 to vector<8x64xf32>
    %545 = arith.maximumf %543, %544 : vector<8x64xf32>
    %c1_171 = arith.constant 1 : index
    %c0_172 = arith.constant 0 : index
    %c0_173 = arith.constant 0 : index
    %546 = vector.load %arg10[%c1_171, %c0_172, %c0_173] : memref<2x64x32xf32, #tpu.memory_space<vmem>>, vector<1x64x32xf32>
    %547 = vector.shape_cast %546 : vector<1x64x32xf32> to vector<64x32xf32>
    %cst_174 = arith.constant dense<0.000000e+00> : vector<8x32xf32>
    %548 = tpu.matmul %545, %547, %cst_174 {dimension_numbers = #tpu.dot_dimension_numbers<[1], [0], [0], [1], [0, 0, 1, 1], [], []>} : vector<8x64xf32>, vector<64x32xf32>, vector<8x32xf32> -> vector<8x32xf32>
    %549 = vector.broadcast %299 : vector<1x32xf32> to vector<8x32xf32>
    %550 = arith.addf %548, %549 : vector<8x32xf32>
    %551 = arith.addf %538, %550 : vector<8x32xf32>
    %cst_175 = arith.constant dense<0.000000e+00> : vector<8xf32>
    %552 = vector.multi_reduction <add>, %551, %cst_175 [1] : vector<8x32xf32> to vector<8xf32>
    %553 = vector.shape_cast %552 : vector<8xf32> to vector<8x1xf32>
    %cst_176 = arith.constant 3.200000e+01 : f32
    %554 = vector.broadcast %cst_176 : f32 to vector<8x1xf32>
    %555 = arith.divf %553, %554 : vector<8x1xf32>
    %556 = vector.broadcast %555 : vector<8x1xf32> to vector<8x32xf32>
    %557 = arith.subf %551, %556 : vector<8x32xf32>
    %558 = arith.mulf %557, %557 : vector<8x32xf32>
    %cst_177 = arith.constant dense<0.000000e+00> : vector<8xf32>
    %559 = vector.multi_reduction <add>, %558, %cst_177 [1] : vector<8x32xf32> to vector<8xf32>
    %560 = vector.shape_cast %559 : vector<8xf32> to vector<8x1xf32>
    %cst_178 = arith.constant 3.200000e+01 : f32
    %561 = vector.broadcast %cst_178 : f32 to vector<8x1xf32>
    %562 = arith.divf %560, %561 : vector<8x1xf32>
    %563 = vector.broadcast %555 : vector<8x1xf32> to vector<8x32xf32>
    %564 = arith.subf %551, %563 : vector<8x32xf32>
    %cst_179 = arith.constant 9.99999974E-6 : f32
    %565 = vector.broadcast %cst_179 : f32 to vector<8x1xf32>
    %566 = arith.addf %562, %565 : vector<8x1xf32>
    %567 = math.rsqrt %566 : vector<8x1xf32>
    %568 = vector.broadcast %567 : vector<8x1xf32> to vector<8x32xf32>
    %569 = arith.mulf %564, %568 : vector<8x32xf32>
    %570 = vector.broadcast %304 : vector<1x32xf32> to vector<8x32xf32>
    %571 = arith.mulf %569, %570 : vector<8x32xf32>
    %572 = vector.broadcast %305 : vector<1x32xf32> to vector<8x32xf32>
    %573 = arith.addf %571, %572 : vector<8x32xf32>
    %c0_180 = arith.constant 0 : index
    %c1_181 = arith.constant 1 : index
    %c0_182 = arith.constant 0 : index
    %c0_183 = arith.constant 0 : index
    %574 = vector.load %arg13[%c0_180, %c1_181, %c0_182, %c0_183] : memref<1x2x8x32xf32, #tpu.memory_space<vmem>>, vector<1x1x8x32xf32>
    %575 = vector.shape_cast %574 : vector<1x1x8x32xf32> to vector<8x32xf32>
    %576 = vector.shape_cast %515 : vector<8x32xf32> to vector<1x1x8x32xf32>
    tpu.vector_store %arg13[%c0_180, %c1_181, %c0_182, %c0_183], %576 {strides = array<i32>} : memref<1x2x8x32xf32, #tpu.memory_space<vmem>>, vector<1x1x8x32xf32>,
    %c0_184 = arith.constant 0 : index
    %c0_185 = arith.constant 0 : index
    %c0_186 = arith.constant 0 : index
    %577 = vector.load %arg12[%c0_184, %c0_185, %c0_186] : memref<1x8x32xf32, #tpu.memory_space<vmem>>, vector<1x8x32xf32>
    %578 = vector.shape_cast %577 : vector<1x8x32xf32> to vector<8x32xf32>
    %579 = vector.shape_cast %573 : vector<8x32xf32> to vector<1x8x32xf32>
    tpu.vector_store %arg12[%c0_184, %c0_185, %c0_186], %579 {strides = array<i32>} : memref<1x8x32xf32, #tpu.memory_space<vmem>>, vector<1x8x32xf32>,
    return
  }
  func.func @transform_0(%arg0: i32) -> (i32, i32, i32) {
    %c0_i32 = arith.constant 0 : i32
    %c0_i32_0 = arith.constant 0 : i32
    %c0_i32_1 = arith.constant 0 : i32
    return %arg0, %c0_i32, %c0_i32_0 : i32, i32, i32
  }
  func.func @transform_1(%arg0: i32) -> (i32, i32, i32) {
    %c0_i32 = arith.constant 0 : i32
    %c0_i32_0 = arith.constant 0 : i32
    %c0_i32_1 = arith.constant 0 : i32
    return %arg0, %c0_i32, %c0_i32_0 : i32, i32, i32
  }
  func.func @transform_2(%arg0: i32) -> (i32, i32) {
    %c0_i32 = arith.constant 0 : i32
    %c0_i32_0 = arith.constant 0 : i32
    %c0_i32_1 = arith.constant 0 : i32
    return %c0_i32, %c0_i32_0 : i32, i32
  }
  func.func @transform_3(%arg0: i32) -> (i32, i32, i32) {
    %c0_i32 = arith.constant 0 : i32
    %c0_i32_0 = arith.constant 0 : i32
    %c0_i32_1 = arith.constant 0 : i32
    return %arg0, %c0_i32, %c0_i32_0 : i32, i32, i32
  }
  func.func @transform_4(%arg0: i32) -> (i32, i32, i32) {
    %c0_i32 = arith.constant 0 : i32
    %c0_i32_0 = arith.constant 0 : i32
    %c0_i32_1 = arith.constant 0 : i32
    %c0_i32_2 = arith.constant 0 : i32
    return %c0_i32, %c0_i32_0, %c0_i32_1 : i32, i32, i32
  }
  func.func @transform_5(%arg0: i32) -> (i32, i32, i32) {
    %c0_i32 = arith.constant 0 : i32
    %c0_i32_0 = arith.constant 0 : i32
    %c0_i32_1 = arith.constant 0 : i32
    %c0_i32_2 = arith.constant 0 : i32
    return %c0_i32, %c0_i32_0, %c0_i32_1 : i32, i32, i32
  }
  func.func @transform_6(%arg0: i32) -> (i32, i32, i32) {
    %c0_i32 = arith.constant 0 : i32
    %c0_i32_0 = arith.constant 0 : i32
    %c0_i32_1 = arith.constant 0 : i32
    %c0_i32_2 = arith.constant 0 : i32
    return %c0_i32, %c0_i32_0, %c0_i32_1 : i32, i32, i32
  }
  func.func @transform_7(%arg0: i32) -> (i32, i32, i32) {
    %c0_i32 = arith.constant 0 : i32
    %c0_i32_0 = arith.constant 0 : i32
    %c0_i32_1 = arith.constant 0 : i32
    %c0_i32_2 = arith.constant 0 : i32
    return %c0_i32, %c0_i32_0, %c0_i32_1 : i32, i32, i32
  }
  func.func @transform_8(%arg0: i32) -> (i32, i32, i32) {
    %c0_i32 = arith.constant 0 : i32
    %c0_i32_0 = arith.constant 0 : i32
    %c0_i32_1 = arith.constant 0 : i32
    %c0_i32_2 = arith.constant 0 : i32
    return %c0_i32, %c0_i32_0, %c0_i32_1 : i32, i32, i32
  }
  func.func @transform_9(%arg0: i32) -> (i32, i32, i32) {
    %c0_i32 = arith.constant 0 : i32
    %c0_i32_0 = arith.constant 0 : i32
    %c0_i32_1 = arith.constant 0 : i32
    %c0_i32_2 = arith.constant 0 : i32
    return %c0_i32, %c0_i32_0, %c0_i32_1 : i32, i32, i32
  }
  func.func @transform_10(%arg0: i32) -> (i32, i32, i32) {
    %c0_i32 = arith.constant 0 : i32
    %c0_i32_0 = arith.constant 0 : i32
    %c0_i32_1 = arith.constant 0 : i32
    %c0_i32_2 = arith.constant 0 : i32
    return %c0_i32, %c0_i32_0, %c0_i32_1 : i32, i32, i32
  }
  func.func @transform_11(%arg0: i32) -> (i32, i32, i32) {
    %c0_i32 = arith.constant 0 : i32
    %c0_i32_0 = arith.constant 0 : i32
    %c0_i32_1 = arith.constant 0 : i32
    return %arg0, %c0_i32, %c0_i32_0 : i32, i32, i32
  }
  func.func @transform_12(%arg0: i32) -> (i32, i32, i32, i32) {
    %c0_i32 = arith.constant 0 : i32
    %c0_i32_0 = arith.constant 0 : i32
    %c0_i32_1 = arith.constant 0 : i32
    %c0_i32_2 = arith.constant 0 : i32
    return %arg0, %c0_i32, %c0_i32_0, %c0_i32_1 : i32, i32, i32, i32
  }
}

</mosaic_0001>

<bundles_post_ra>
// kernel: tpu_custom_call.1
= control target key start
LH: loop header
LB: loop body
LE: loop exit
PB: predicated region body
PF: predicated region fallthrough
CT: control target
= control target key end

     0   :  { %s7164_s0 = inlined_call_operand.hbm [shape: f32[2,8,32], index: 0, kind: input, shape index: {}]   ;;  %s7165_s1 = inlined_call_operand.hbm [shape: f32[2,8,32], index: 1, kind: input, shape index: {}]   ;;  %s7166_s2 = inlined_call_operand.hbm [shape: f32[8,8], index: 2, kind: input, shape index: {}]   ;;  %s7167_s3 = inlined_call_operand.hbm [shape: f32[2,8,8], index: 3, kind: input, shape index: {}]   ;;  %s7168_s4 = inlined_call_operand.vmem [shape: f32[2,32,96], index: 4, kind: input, shape index: {}]   ;;  %s7169_s5 = inlined_call_operand.vmem [shape: f32[2,32,32], index: 5, kind: input, shape index: {}]   ;;  %s7170_s6 = inlined_call_operand.vmem [shape: f32[2,32,96], index: 6, kind: input, shape index: {}]   ;;  %s7171_s7 = inlined_call_operand.hbm [shape: f32[2,32,32], index: 7, kind: input, shape index: {}]   ;;  %s7172_s8 = inlined_call_operand.hbm [shape: f32[2,32,64], index: 8, kind: input, shape index: {}]   ;;  %s7173_s9 = inlined_call_operand.vmem [shape: f32[2,64,32], index: 9, kind: input, shape index: {}]   ;;  %s7174_s10 = inlined_call_operand.vmem [shape: f32[2,12,96], index: 10, kind: input, shape index: {}]   ;;  %s7175_s11 = inlined_call_operand.hbm [shape: f32[2,8,32], index: 11, kind: output, shape index: {0}]   ;;  %s7176_s12 = inlined_call_operand.hbm [shape: f32[2,2,8,32], index: 12, kind: output, shape index: {1}]  }
   0x1   :  { %7209 = sst [smem:[#allocation27_spill]] %s7164_s0 }
   0x2   :  { %7210 = sst [smem:[#allocation28_spill]] %s7166_s2 }
   0x3   :  { %7211 = sst [smem:[#allocation29_spill]] %s7171_s7 }
   0x4   :  { %7212 = sst [smem:[#allocation30_spill]] %s7172_s8 }
   0x5   :  { %7213 = sst [smem:[#allocation31_spill]] %s7175_s11 }
   0x6   :  { %7214 = sst [smem:[#allocation32_spill]] %s7176_s12 }
   0x7   :  { %18 = vsyncpa [#allocation3], 0 }
   0x8   :  { %20 = vsyncpa [#allocation3 + $0x1], 0 }
   0x9   :  { %21 = vsyncpa [#allocation6], 0 }
   0xa   :  { %23 = vsyncpa [#allocation6 + $0x1], 0 }
   0xb   :  { %24 = vsyncpa [#allocation9], 0 }
   0xc   :  { %26 = vsyncpa [#allocation9 + $0x1], 0 }
   0xd   :  { %27 = vsyncpa [#allocation12], 0 }
   0xe   :  { %28 = vsyncpa [#allocation4], 0 }
   0xf   :  { %30 = vsyncpa [#allocation4 + $0x1], 0 }
  0x10   :  { %31 = vsyncpa [#allocation15], 0 }
  0x11   :  { %33 = vsyncpa [#allocation15 + $0x1], 0  ;;  %s6127_s21 = smov 0   ;;  %s6129_s22 = smov 0  }
  0x12   :  { %s6131_s23 = smov 0   ;;  %s6133_s24 = smov 0  }
  0x13 LB: > { %7215 = sst [smem:[#allocation24_spill]] %s6020_s21  ;;  %s6148_s25 = sadd.s32 4294967295, %s6032_s24   ;;  %s6032_s24 = sphi %s6133_s24, %s7266_s24   ;;  %s6028_s23 = sphi %s6131_s23, %s7265_s23   ;;  %s6024_s22 = sphi %s6129_s22, %s7264_s22   ;;  %s6020_s21 = sphi %s6127_s21, %s7263_s21  }
  0x14   : > { %s4850_s26 = sadd.s32 4294967294, %s6032_s24   ;;  %p59_p0 = scmp.ne.s32.totalorder %s6024_s22, %s6020_s21 }
  0x15   : > { %p7179_p1 = scmp.eq.s32.totalorder %s6148_s25, 0  ;;  %p309_p3 = scmp.eq.s32.totalorder %s4850_s26, 1 }
  0x16   : > { %p4851_p5 = scmp.ge.s32.totalorder %s6032_s24, 1  ;;  %p342_p7 = scmp.lt.s32.totalorder %s6032_s24, 3 }
  0x17   : > { %p6157_p4 = por %p7179_p1, %p59_p0  ;;  %p6162_p6 = por %p309_p3, %p59_p0 }
  0x18   : > { %p6167_p8 = pnand %p4851_p5, %p342_p7  ;;  %s6034_s30 = smov [#allocation7]  }
  0x19   : > { %s7216_s27 = scalar_select %p6157_p4, 1, 0 }
  0x1a   : > { %s7217_s28 = scalar_select %p6162_p6, 1, 0 }
  0x1b   : > { %s7219_s29 = scalar_select %p6167_p8, 1, 0 }
  0x1c   : > { %7218 = sst [smem:[#allocation25_spill]] %s7217_s28  ;;  %s355_s13 = sshll.u32 %s6034_s30, 4  ;;  %s356_s13 = int_to_ptr.vmem [resolvable:$true] %s355_s13 }
  0x1d   : > { %p5554_p10 = pneg %p6167_p8  ;;  %s6035_s14 = smov [#allocation10]  }
  0x1e   : > { %s374_s15 = sshll.u32 %s6035_s14, 4  ;;  %s6036_s17 = smov [#allocation11]   ;;  %s6180_s15 = int_to_ptr.vmem [resolvable:$true] %s374_s15 }
  0x1f   : > { %p6176_p11 = pnand %p5554_p10, %p7179_p1  ;;  %s6182_s18 = sshll.u32 %s6036_s17, 4  ;;  %s388_s18 = int_to_ptr.vmem [resolvable:$true] %s6182_s18 }
  0x20   : > { %s7221_s2 = sld [smem:[#allocation28_spill]] }
  0x21   : > { %p6192_p13 = pneg %p6176_p11 }
  0x26   : > { %s5740_s26 = scalar_lea.hbm %s7221_s2, 128 }
  0x27   : > { %p5741_p12 = scmp.ne.s32.totalorder %s7221_s2, %s5740_s26  ;;  %p5747_p5 = scmp.lt.u32.totalorder %s5740_s26, %s7221_s2 }
  0x29   : > { %p5743_p0 = pnand %p6192_p13, %p5741_p12 }
  0x2b   : > { %p5744_p3 = pneg %p5743_p0 }
  0x2d   : > { %p5749_p7 = pnand %p5747_p5, %p5744_p3 }
  0x2f   : > { %5752 = shalt.err (!%p5749_p7)
}
  0x30   : > { %s5753_s19 = scalar_lea.vmem %s356_s13, 128  ;;  %p5761_p2 = scmp.lt.s32.totalorder %s356_s13, %s356_s13 }
  0x31   : > { %p5754_p10 = scmp.ne.s32.totalorder %s356_s13, %s5753_s19  ;;  %p5762_p6 = scmp.lt.s32.totalorder %s5753_s19, %s5753_s19 }
  0x33   : > { %p5756_p9 = pnand %p5754_p10, %p6192_p13  ;;  %p5763_p4 = por %p5762_p6, %p5761_p2 }
  0x35   : > { %p5757_p1 = pneg %p5756_p9 }
  0x37   : > { %p5764_p8 = pnand %p5763_p4, %p5757_p1 }
  0x39   : > { %5767 = shalt.err (!%p5764_p8)
}
  0x3a   : > { %5557 = dma.hbm_to_vmem [thread:$0]  (!%p6176_p11), %s7221_s2, 128, %s356_s13, [#allocation6]  }
  0x3b   : > { %s7223_s7 = sld [smem:[#allocation29_spill]] }
  0x41   : > { %s5768_s30 = scalar_lea.hbm %s7223_s7, 1024 }
  0x42   : > { %p5769_p9 = scmp.ne.s32.totalorder %s7223_s7, %s5768_s30  ;;  %p5775_p1 = scmp.lt.u32.totalorder %s5768_s30, %s7223_s7 }
  0x44   : > { %p5771_p12 = pnand %p5769_p9, %p6192_p13 }
  0x46   : > { %p5772_p2 = pneg %p5771_p12 }
  0x48   : > { %p5777_p4 = pnand %p5775_p1, %p5772_p2 }
  0x4a   : > { %5780 = shalt.err (!%p5777_p4)
}
  0x4b   : > { %s5781_s13 = scalar_lea.vmem %s6180_s15, 1024  ;;  %p5789_p3 = scmp.lt.s32.totalorder %s6180_s15, %s6180_s15 }
  0x4c   : > { %p5782_p6 = scmp.ne.s32.totalorder %s6180_s15, %s5781_s13  ;;  %p5790_p5 = scmp.lt.s32.totalorder %s5781_s13, %s5781_s13 }
  0x4e   : > { %p5784_p8 = pnand %p5782_p6, %p6192_p13  ;;  %p5791_p7 = por %p5790_p5, %p5789_p3 }
  0x50   : > { %p5785_p0 = pneg %p5784_p8 }
  0x52   : > { %p5792_p10 = pnand %p5791_p7, %p5785_p0 }
  0x54   : > { %5795 = shalt.err (!%p5792_p10)
}
  0x55   : > { %s6037_s11 = smov 128   ;;  %s6038_s12 = smov 8  }
  0x56   : > { %5560 = dma.hbm_to_vmem [thread:$0]  (!%p6176_p11), %s7223_s7, 1024, %s6180_s15, [#allocation9], %s6037_s11, %s6037_s11, %s6038_s12  }
  0x57   : > { %s7224_s8 = sld [smem:[#allocation30_spill]] }
  0x5d   : > { %s5796_s30 = scalar_lea.hbm %s7224_s8, 1024 }
  0x5e   : > { %p5797_p9 = scmp.ne.s32.totalorder %s7224_s8, %s5796_s30  ;;  %p5803_p1 = scmp.lt.u32.totalorder %s5796_s30, %s7224_s8 }
  0x60   : > { %p5799_p12 = pnand %p5797_p9, %p6192_p13 }
  0x62   : > { %p5800_p2 = pneg %p5799_p12 }
  0x64   : > { %p5805_p4 = pnand %p5803_p1, %p5800_p2 }
  0x66   : > { %5808 = shalt.err (!%p5805_p4)
}
  0x67   : > { %s5809_s28 = scalar_lea.vmem %s388_s18, 1024  ;;  %p5817_p3 = scmp.lt.s32.totalorder %s388_s18, %s388_s18 }
  0x68   : > { %p5810_p6 = scmp.ne.s32.totalorder %s388_s18, %s5809_s28  ;;  %p5818_p5 = scmp.lt.s32.totalorder %s5809_s28, %s5809_s28 }
  0x6a   : > { %p5812_p8 = pnand %p5810_p6, %p6192_p13  ;;  %p5819_p7 = por %p5818_p5, %p5817_p3 }
  0x6c   : > { %p5813_p0 = pneg %p5812_p8 }
  0x6e   : > { %p5820_p10 = pnand %p5819_p7, %p5813_p0 }
  0x70   : > { %5823 = shalt.err (!%p5820_p10)
}
  0x71   : > { %5563 = dma.hbm_to_vmem [thread:$0]  (!%p6176_p11), %s7224_s8, 1024, %s388_s18, [#allocation12], %s6037_s11, %s6037_s11, %s6038_s12  }
  0x72   : > { %s6251_s2 = sadd.s32 1, %s6032_s24   ;;  %s46_s16 = sadd.s32 1, %s6028_s23 }
  0x73   : > { %s43_s14 = ssub.s32 %s6032_s24, %s6251_s2  ;;  %p53_p9 = scmp.ne.s32.totalorder %s6028_s23, %s6024_s22 }
  0x74   : > { %p44_p13 = scmp.eq.s32.totalorder %s43_s14, 0  ;;  %p54_p12 = scmp.eq.s32.totalorder %s6032_s24, 0 }
  0x75   : > { %p5584_p2 = scmp.lt.s32.totalorder %s6032_s24, 2  ;;  %p7226_p4 = scmp.eq.s32.totalorder %s6148_s25, 1 }
  0x76   : > { %s6261_s21 = scalar_select %p44_p13, %s6028_s23, %s46_s16  }
  0x77   : > { %p55_p1 = por %p54_p12, %p53_p9  ;;  %p6265_p6 = por %p7226_p4, %p53_p9 }
  0x78   : > { %7225 = sst [smem:[#allocation26_spill]] %s6261_s21  ;;  %s407_s30 = sand.u32 1, %s6028_s23  }
  0x79   : > { %s7227_s26 = scalar_select %p6265_p6, 1, 0 }
  0x7a   : > { %s6271_s18 = sshll.u32 %s6032_s24, 7  ;;  %s6273_s11 = sshll.u32 %s407_s30, 3 }
  0x7b   : > { %s7228_s0 = sld [smem:[#allocation27_spill]]  ;;  %s411_s13 = scalar_lea.vmem [#allocation2], %s6273_s11 }
  0x7c   : > { %s418_s28 = sshll.u32 %s411_s13, 4  ;;  %p6282_p11 = pnand %p5584_p2, %p55_p1  ;;  %s6286_s28 = int_to_ptr.vmem [resolvable:$true] %s418_s28 }
  0x7d   : > { %s7185_s20 = sand.u32 1, %s6032_s24   ;;  %s408_s14 = scalar_lea.sflag [#allocation3], %s407_s30 }
  0x7e   : > { %s7229_s15 = scalar_select %p6282_p11, 1, 0 }
  0x7f   : > { %p6293_p0 = pneg %p6282_p11 }
  0x81   : > { %s6279_s19 = scalar_lea.hbm %s7228_s0, %s6271_s18  ;;  %s5829_s7 = scalar_lea.hbm %s7228_s0, 256 }
  0x82   : > { %s5824_s16 = scalar_lea.hbm %s6279_s19, 128  ;;  %p5830_p7 = scmp.lt.u32.totalorder %s6279_s19, %s7228_s0 }
  0x83   : > { %p5825_p8 = scmp.ne.s32.totalorder %s6279_s19, %s5824_s16  ;;  %p5831_p10 = scmp.lt.u32.totalorder %s5829_s7, %s5824_s16 }
  0x84   : > { %p5833_p9 = scmp.lt.u32.totalorder %s5824_s16, %s6279_s19 }
  0x85   : > { %p5827_p3 = pnand %p6293_p0, %p5825_p8  ;;  %p5832_p13 = por %p5831_p10, %p5830_p7 }
  0x87   : > { %p5828_p5 = pneg %p5827_p3  ;;  %p5834_p12 = por %p5833_p9, %p5832_p13 }
  0x89   : > { %p5835_p2 = pnand %p5834_p12, %p5828_p5 }
  0x8b   : > { %5838 = shalt.err (!%p5835_p2)
}
  0x8c   : > { %s5839_s30 = scalar_lea.vmem %s6286_s28, 128  ;;  %s6039_s17 = smov [#allocation2]  }
  0x8d   : > { %p5840_p1 = scmp.ne.s32.totalorder %s6286_s28, %s5839_s30  ;;  %s5844_s13 = sshll.u32 %s6039_s17, 4  ;;  %s5845_s13 = int_to_ptr.vmem [resolvable:$false] %s5844_s13 }
  0x8e   : > { %s5846_s8 = scalar_lea.vmem %s5845_s13, 256  ;;  %p5847_p3 = scmp.lt.s32.totalorder %s6286_s28, %s5845_s13 }
  0x8f   : > { %p5842_p4 = pnand %p5840_p1, %p6293_p0  ;;  %p5848_p6 = scmp.lt.s32.totalorder %s5846_s8, %s5839_s30 }
  0x91   : > { %p5843_p8 = pneg %p5842_p4  ;;  %p5849_p7 = por %p5848_p6, %p5847_p3 }
  0x93   : > { %p5850_p10 = pnand %p5849_p7, %p5843_p8 }
  0x95   : > { %5853 = shalt.err (!%p5850_p10)
}
  0x96   : > { %5567 = dma.hbm_to_vmem [thread:$0]  (!%p6282_p11), %s6279_s19, 128, %s6286_s28, %s408_s14  }
  0x97   : > { %s6320_s16 = scalar_lea.hbm %s7165_s1, %s6271_s18  ;;  %s429_s30 = scalar_lea.vmem [#allocation5], %s6273_s11 }
  0x98   : > { %s436_s17 = sshll.u32 %s429_s30, 4  ;;  %s426_s13 = scalar_lea.sflag [#allocation6], %s7185_s20  ;;  %s437_s17 = int_to_ptr.vmem [resolvable:$true] %s436_s17 }
  0x99   : > { %s5854_s8 = scalar_lea.hbm %s6320_s16, 128  ;;  %s5859_s14 = scalar_lea.hbm %s7165_s1, 256 }
  0x9a   : > { %p5855_p6 = scmp.ne.s32.totalorder %s6320_s16, %s5854_s8  ;;  %p5860_p9 = scmp.lt.u32.totalorder %s6320_s16, %s7165_s1 }
  0x9b   : > { %p5861_p12 = scmp.lt.u32.totalorder %s5859_s14, %s5854_s8  ;;  %p5863_p1 = scmp.lt.u32.totalorder %s5854_s8, %s6320_s16 }
  0x9c   : > { %p5857_p5 = pnand %p5855_p6, %p6293_p0 }
  0x9d   : > { %p5862_p2 = por %p5861_p12, %p5860_p9 }
  0x9e   : > { %p5858_p13 = pneg %p5857_p5 }
  0x9f   : > { %p5864_p4 = por %p5863_p1, %p5862_p2 }
  0xa1   : > { %p5865_p8 = pnand %p5864_p4, %p5858_p13 }
  0xa3   : > { %5868 = shalt.err (!%p5865_p8)
}
  0xa4   : > { %s5869_s30 = scalar_lea.vmem %s437_s17, 128  ;;  %s6040_s20 = smov [#allocation5]  }
  0xa5   : > { %p5870_p3 = scmp.ne.s32.totalorder %s437_s17, %s5869_s30  ;;  %s5874_s0 = sshll.u32 %s6040_s20, 4  ;;  %s5875_s0 = int_to_ptr.vmem [resolvable:$false] %s5874_s0 }
  0xa6   : > { %s5876_s19 = scalar_lea.vmem %s5875_s0, 256  ;;  %p5877_p6 = scmp.lt.s32.totalorder %s437_s17, %s5875_s0 }
  0xa7   : > { %p5872_p7 = pnand %p5870_p3, %p6293_p0  ;;  %p5878_p5 = scmp.lt.s32.totalorder %s5876_s19, %s5869_s30 }
  0xa9   : > { %p5873_p10 = pneg %p5872_p7  ;;  %p5879_p11 = por %p5878_p5, %p5877_p6 }
  0xab   : > { %p5880_p9 = pnand %p5879_p11, %p5873_p10 }
  0xad   : > { %5883 = shalt.err (!%p5880_p9)
}
  0xae   : > { %p7231_p12 = scmp.ne.s32.totalorder %s7229_s15, 0  ;;  %s6346_s14 = scalar_lea.hbm %s7167_s3, %s6271_s18 }
  0xaf   : > { %s447_s0 = scalar_lea.vmem [#allocation8], %s6273_s11  ;;  %s7232_s7 = sand.u32 1, %s6032_s24  }
  0xb0   : > { %5570 = dma.hbm_to_vmem [thread:$0]  (!%p7231_p12), %s6320_s16, 128, %s437_s17, %s426_s13  }
  0xb1   : > { %s454_s20 = sshll.u32 %s447_s0, 4  ;;  %s444_s21 = scalar_lea.sflag [#allocation9], %s7232_s7  ;;  %s455_s20 = int_to_ptr.vmem [resolvable:$true] %s454_s20 }
  0xb2   : > { %s5884_s30 = scalar_lea.hbm %s6346_s14, 128  ;;  %s5889_s13 = scalar_lea.hbm %s7167_s3, 256 }
  0xb3   : > { %p5885_p11 = scmp.ne.s32.totalorder %s6346_s14, %s5884_s30  ;;  %p5890_p1 = scmp.lt.u32.totalorder %s6346_s14, %s7167_s3 }
  0xb4   : > { %p5891_p4 = scmp.lt.u32.totalorder %s5889_s13, %s5884_s30  ;;  %p5893_p3 = scmp.lt.u32.totalorder %s5884_s30, %s6346_s14 }
  0xb5   : > { %p5887_p13 = pnand %p5885_p11, %p6293_p0 }
  0xb6   : > { %p5892_p8 = por %p5891_p4, %p5890_p1 }
  0xb7   : > { %p5888_p2 = pneg %p5887_p13 }
  0xb8   : > { %p5894_p7 = por %p5893_p3, %p5892_p8 }
  0xba   : > { %p5895_p10 = pnand %p5894_p7, %p5888_p2 }
  0xbc   : > { %5898 = shalt.err (!%p5895_p10)
}
  0xbd   : > { %s5899_s11 = scalar_lea.vmem %s455_s20, 128  ;;  %s6041_s8 = smov [#allocation8]  }
  0xbe   : > { %p5900_p6 = scmp.ne.s32.totalorder %s455_s20, %s5899_s11  ;;  %s5904_s28 = sshll.u32 %s6041_s8, 4  ;;  %s5905_s28 = int_to_ptr.vmem [resolvable:$false] %s5904_s28 }
  0xbf   : > { %s5906_s0 = scalar_lea.vmem %s5905_s28, 256  ;;  %p5907_p11 = scmp.lt.s32.totalorder %s455_s20, %s5905_s28 }
  0xc0   : > { %p5902_p5 = pnand %p5900_p6, %p6293_p0  ;;  %p5908_p13 = scmp.lt.s32.totalorder %s5906_s0, %s5899_s11 }
  0xc2   : > { %p5903_p9 = pneg %p5902_p5  ;;  %p5909_p12 = por %p5908_p13, %p5907_p11 }
  0xc4   : > { %p5910_p1 = pnand %p5909_p12, %p5903_p9 }
  0xc6   : > { %5913 = shalt.err (!%p5910_p1)
}
  0xc7   : > { %p7233_p4 = scmp.ne.s32.totalorder %s7229_s15, 0  ;;  %p7234_p2 = scmp.ne.s32.totalorder %s7219_s29, 0 }
  0xc8   : > { %s6371_s12 = sand.u32 (!%p7234_p2), 1, %s6024_s22   ;;  %p7235_p0 = scmp.ne.s32.totalorder (!%p7234_p2), %s7216_s27, 0 }
  0xc9   : > { %5573 = dma.hbm_to_vmem [thread:$0]  (!%p7233_p4), %s6346_s14, 128, %s455_s20, %s444_s21  }
  0xca   : > { %463 = sbr.rel (%p7234_p2) target bundleno = 8739 (0x2223), region = 64  ;;  %s6374_s7 = sshll.u32 (!%p7234_p2), %s6371_s12, 3 }
  0xcb   : > { %s466_s30 = scalar_lea.sflag (!%p7234_p2), [#allocation3], %s6371_s12  ;;  %s469_s16 = scalar_lea.vmem (!%p7234_p2), [#allocation2], %s6374_s7 }
  0xd1   : > { %5987 = dma.done.wait (%p7235_p0), %s466_s30, 128  }
  0xd2   : > { %5989 = vsyncadd (%p7235_p0), %s466_s30, 4294967168  ;;  %s474_s29 = sand.u32 1, %s6148_s25   ;;  %s478_s14 = scalar_lea.vmem [#allocation5], %s6374_s7 }
  0xd3   : > { %s475_s15 = scalar_lea.sflag [#allocation6], %s474_s29 }
  0xd4   : > { %5991 = dma.done.wait (%p7235_p0), %s475_s15, 128  }
  0xd5   : > { %5993 = vsyncadd (%p7235_p0), %s475_s15, 4294967168  ;;  %p7236_p12 = scmp.eq.s32.totalorder %s6148_s25, 0 }
  0xd7   : > { %5995 = dma.done.wait (%p7236_p12), [#allocation6], 128   ;;  %p7237_p8 = pmov %p7236_p12 }
  0xd8   : > { %s488_s20 = scalar_lea.sflag [#allocation9], %s474_s29  ;;  %s491_s21 = scalar_lea.vmem [#allocation8], %s6374_s7 }
  0xd9   : > { %5997 = vsyncadd (%p7237_p8), [#allocation6], 4294967168 }
  0xda   : > { %5999 = dma.done.wait (%p7235_p0), %s488_s20, 128  }
  0xdb   : > { %6001 = vsyncadd (%p7235_p0), %s488_s20, 4294967168  ;;  %p7238_p3 = pmov %p7237_p8 }
  0xdd   : > { %6003 = dma.done.wait (%p7238_p3), [#allocation9], 1024   ;;  %p7239_p7 = pmov %p7238_p3 }
  0xde   : > { %p7240_p10 = pmov %p7238_p3 }
  0xdf   : > { %6005 = vsyncadd (%p7239_p7), [#allocation9], 4294966272 }
  0xe0   : > { %6007 = dma.done.wait (%p7240_p10), [#allocation12], 1024   ;;  %p7241_p6 = pmov %p7238_p3 }
  0xe1   : > { %v6042_v0 = vmov 0.0|0.0   ;;  %vm6043_vm0 = vmmov 0   ;;  %v6044_v1 = vmov 0.0   ;;  %v561_v2 = vld [vmem:[%s7168_s4] sm:$0xff]  ;;  %v562_v3 = vld [vmem:[%s7168_s4 + $0x8] sm:$0xff]  ;;  %v563_v4 = vld [vmem:[%s7168_s4 + $0x10] sm:$0xff]  ;;  %v569_v9 = vlaneseq }
  0xe2   : > { %6009 = vsyncadd (%p7241_p6), [#allocation12], 4294966272  ;;  %5436 = vmatprep.subr.bf16.mxu1 %v6042_v0  ;;  %5114 = vmatprep.mubr.msk.f32.mxu1 %vm6043_vm0, %v6044_v1  ;;  %v5437_v5 = vpack.c.bf16 %v562_v3, %v561_v2  ;;  %v564_v6 = vld [vmem:[%s7168_s4 + $0x18] sm:$0xff]  ;;  %v6426_v8 = vld [vmem:[%s469_s16] sm:$0xff]  ;;  %vm573_vm1 = vcmask 261120   ;;  %s7204_s16 = smov 120  }
  0xe3   : > { %5127 = vmatprep.subr.mxu0 %v6044_v1  ;;  %5129 = vmatprep.mubr.msk.f32.mxu0 %vm6043_vm0, %v6044_v1  ;;  %v5440_v7 = vpack.c.bf16 %v564_v6, %v563_v4  ;;  %v6433_v10 = vshrl.u32 %v569_v9, 7  ;;  %v6441_v12 = vld [vmem:[%s7174_s10] sm:$0xff]  ;;  %s6046_s29 = smov 96   ;;  %s7200_s15 = smov 80   ;;  %vm650_vm2 = vcmask 64512   ;;  %vm1328_vm3 = vcmask 130048  }
  0xe4   : > { %5438 = vmatpush3.bf16.msra.mxu1 %v5437_v5  ;;  %s7206_s20 = smov 88   ;;  %s7198_s27 = smov 72   ;;  %v6482_v25 = vld [vmem:[#allocation7] sm:$0xff]  ;;  %vm1330_vm4 = vcmask 195584   ;;  %vm2500_vm5 = vcmask 523264  }
  0xe5   : > { %5439 = vmatprep.subr.bf16.mxu1 %v6042_v0  ;;  %v6436_v11 = vsub.s32 0, %v6433_v10  ;;  %s7207_s17 = smov 112   ;;  %s7202_s13 = smov 104  }
  0xe6   : > { %s7191_s18 = smov 56   ;;  %s7190_s19 = smov 64  }
  0xe7   : > { %v572_v13 = vrot.slane %v6441_v12, %v6436_v11  ;;  %s7189_s11 = smov 48   ;;  %s7188_s8 = smov 40  }
  0xe8   : > { %5441 = vmatpush3.bf16.msra.mxu1 %v5440_v7  ;;  %s7192_s30 = smov 24   ;;  %s7252_s28 = smov 40  }
  0xe9   : > { %5117 = vmatprep.subr.mxu1 %v6044_v1  ;;  %s4645_s0 = scalar_lea.sflag [#allocation15], %s6371_s12  ;;  %p7256_p9 = scmp.ne.s32.totalorder %s7227_s26, 0 }
  0xeb   : > { %5115 = vmatmul.mubr.msk.f32.vlgmr.msra.gmra.mrb[0].mxu1 %vm573_vm1, %v6426_v8 }
  0xec   : > { %5119 = vmatprep.mubr.msk.f32.mxu1 %vm6043_vm0, %v6044_v1 }
 0x1be   : > { %v643_v14 = vpop.f32.mrb[0].mxu1 }
 0x1bf   : > { %v6445_v15 = vadd.f32 %v643_v14, %v572_v13  ;;  %v5116_v16 = vpop.f32.mrb[1].mxu1 }
 0x1c1   : > { %814 = vrot.lane.b32.xlu1 %v6445_v15, %s7204_s16  ;;  %648 = vrot.lane.b32.xlu0 %v6445_v15, %s6046_s29 }
 0x1c5   : > { %983 = vrot.lane.b32.xlu1 %v6445_v15, %s7200_s15  ;;  %816 = vrot.lane.b32.xlu0 %v6445_v15, %s7206_s20 }
 0x1c9   : > { %1150 = vrot.lane.b32.xlu1 %v6445_v15, %s7198_s27  ;;  %981 = vrot.lane.b32.xlu0 %v6445_v15, %s7207_s17  ;;  %s7244_s27 = smov 16  }
 0x1cd   : > { %1148 = vrot.lane.b32.xlu0 %v6445_v15, %s7202_s13 }
 0x233   : > { %v815_v17 = vpop.permute.xlu1 %814  ;;  %v649_v18 = vpop.permute.xlu0 %648 }
 0x234   : > { %5118 = vmatpush3.xpose.msk.msra.mxu1 %vm650_vm2, %v649_v18 }
 0x235   : > { %5122 = vmatprep.subr.mxu1 %v6044_v1 }
 0x237   : > { %5120 = vmatmul.mubr.msk.f32.vlgmr.msra.gmra.mrb[2].mxu1 %vm650_vm2, %v6445_v15  ;;  %v817_v19 = vpop.permute.xlu0 %816  ;;  %v984_v20 = vpop.permute.xlu1 %983 }
 0x238   : > { %5128 = vmatpush3.xpose.msk.msra.mxu0 %vm650_vm2, %v817_v19  ;;  %5124 = vmatprep.mubr.msk.f32.mxu1 %vm6043_vm0, %v6044_v1 }
 0x239   : > { %5137 = vmatprep.subr.mxu0 %v6044_v1 }
 0x23b   : > { %5130 = vmatmul.mubr.msk.f32.vlgmr.msra.gmra.mrb[0].mxu0 %vm650_vm2, %v815_v17  ;;  %v982_v21 = vpop.permute.xlu0 %981  ;;  %v1151_v22 = vpop.permute.xlu1 %1150 }
 0x23c   : > { %5138 = vmatpush3.xpose.msk.msra.mxu0 %vm650_vm2, %v984_v20  ;;  %5139 = vmatprep.mubr.msk.f32.mxu0 %vm6043_vm0, %v6044_v1 }
 0x23d   : > { %5147 = vmatprep.subr.mxu0 %v6044_v1 }
 0x23f   : > { %5140 = vmatmul.mubr.msk.f32.vlgmr.msra.gmra.mrb[2].mxu0 %vm650_vm2, %v982_v21  ;;  %v1149_v23 = vpop.permute.xlu0 %1148 }
 0x240   : > { %5148 = vmatpush3.xpose.msk.msra.mxu0 %vm650_vm2, %v1151_v22  ;;  %5149 = vmatprep.mubr.msk.f32.mxu0 %vm6043_vm0, %v6044_v1 }
 0x241   : > { %5442 = vmatprep.subr.bf16.mxu0 %v6042_v0 }
 0x243   : > { %5150 = vmatmul.mubr.msk.f32.vlgmr.msra.gmra.mrb[4].mxu0 %vm650_vm2, %v1149_v23  ;;  %v565_v23 = vld [vmem:[%s7169_s5] sm:$0xff] }
 0x244   : > { %5165 = vmatprep.mubr.msk.f32.mxu0 %vm6043_vm0, %v6044_v1 }
 0x30a   : > { %v721_v24 = vpop.f32.mrb[2].mxu1 }
 0x30b   : > { %v725_v26 = vmul.f32 0.35355338, %v721_v24  ;;  %v5121_v27 = vpop.f32.mrb[3].mxu1  ;;  %v566_v24 = vld [vmem:[%s7169_s5 + $0x8] sm:$0xff] }
 0x30d   : > { %v726_v28 = vadd.f32 %v725_v26, %v6482_v25  ;;  %v5443_v26 = vpack.c.bf16 %v566_v24, %v565_v23 }
 0x30e   : > { %v888_v29 = vpop.f32.mrb[0].mxu0 }
 0x30f   : > { %v892_v30 = vmul.f32 0.35355338, %v888_v29  ;;  %v5131_v31 = vpop.f32.mrb[1].mxu0  ;;  %v727_v32 = vsel %vm650_vm2, %v726_v28, -inf  ;;  %5444 = vmatpush3.bf16.msra.mxu0 %v5443_v26 }
 0x310   : > { %728 = vmax.xlane.f32.xlu1 %v727_v32  ;;  %5445 = vmatprep.subr.bf16.mxu0 %v6042_v0  ;;  %v567_v31 = vld [vmem:[%s7169_s5 + $0x10] sm:$0xff]  ;;  %v568_v32 = vld [vmem:[%s7169_s5 + $0x18] sm:$0xff] }
 0x311   : > { %v893_v33 = vadd.f32 %v892_v30, %v6482_v25 }
 0x312   : > { %v1055_v34 = vpop.f32.mrb[2].mxu0 }
 0x313   : > { %v1059_v35 = vmul.f32 0.35355338, %v1055_v34  ;;  %v5141_v36 = vpop.f32.mrb[3].mxu0  ;;  %v894_v37 = vsel %vm650_vm2, %v893_v33, -inf }
 0x314   : > { %895 = vmax.xlane.f32.xlu0 %v894_v37 }
 0x315   : > { %v1060_v38 = vadd.f32 %v1059_v35, %v6482_v25 }
 0x316   : > { %v1222_v39 = vpop.f32.mrb[4].mxu0 }
 0x317   : > { %v1226_v40 = vmul.f32 0.35355338, %v1222_v39  ;;  %v5151_v41 = vpop.f32.mrb[5].mxu0  ;;  %v1061_v42 = vsel %vm650_vm2, %v1060_v38, -inf }
 0x318   : > { %1062 = vmax.xlane.f32.xlu0 %v1061_v42 }
 0x319   : > { %v1227_v43 = vadd.f32 %v1226_v40, %v6482_v25 }
 0x31b   : > { %v1228_v44 = vsel %vm650_vm2, %v1227_v43, -inf }
 0x31c   : > { %1229 = vmax.xlane.f32.xlu1 %v1228_v44  ;;  %v6544_v44 = vsub.s32 3, %v6433_v10 }
 0x32d   : > { %905 = vrot.lane.b32.xlu1 %v6445_v15, %s7191_s18  ;;  %s7247_s18 = smov 104  }
 0x39d   : > { %v729_v45 = vpop.xlane.xlu1 %728 }
 0x39e   : > { %v730_v46 = vsub.f32 %v726_v28, %v729_v45  ;;  %v1335_v45 = vrot.slane %v6441_v12, %v6544_v44 }
 0x3a0   : > { %v731_v47 = vmul.f32 1.442695, %v730_v46 }
 0x3a1   : > { %v896_v48 = vpop.xlane.xlu0 %895 }
 0x3a2   : > { %5664 = vpow2.f32 %v731_v47  ;;  %v897_v49 = vsub.f32 %v893_v33, %v896_v48  ;;  %v5446_v33 = vpack.c.bf16 %v568_v32, %v567_v31 }
 0x3a4   : > { %v898_v50 = vmul.f32 1.442695, %v897_v49  ;;  %5447 = vmatpush3.bf16.msra.mxu0 %v5446_v33 }
 0x3a5   : > { %v1063_v60 = vpop.xlane.xlu0 %1062  ;;  %5454 = vmatprep.subr.bf16.mxu0 %v6042_v0 }
 0x3a6   : > { %5666 = vpow2.f32 %v898_v50  ;;  %v1064_v61 = vsub.f32 %v1060_v38, %v1063_v60 }
 0x3a8   : > { %v1065_v62 = vmul.f32 1.442695, %v1064_v61 }
 0x3a9   : > { %v1230_v51 = vpop.xlane.xlu1 %1229 }
 0x3aa   : > { %v1231_v52 = vsub.f32 %v1227_v43, %v1230_v51  ;;  %v1434_v51 = vld [vmem:[%s7170_s6] sm:$0xff] }
 0x3ac   : > { %v5665_v53 = vpop.eup %5664  ;;  %v1232_v54 = vmul.f32 1.442695, %v1231_v52  ;;  %v1435_v52 = vld [vmem:[%s7170_s6 + $0x8] sm:$0xff] }
 0x3ad   : > { %v733_v55 = vsel %vm650_vm2, %v5665_v53, 0.0  ;;  %v906_v3 = vpop.permute.xlu1 %905 }
 0x3ae   : > { %5668 = vpow2.f32 %v1232_v54  ;;  %734 = vadd.xlane.f32.xlu0 %v733_v55  ;;  %v5644_v54 = vpack.i.bf16 %v1435_v52, %v1434_v51  ;;  %v5449_v55 = vpack.c.bf16 %v1435_v52, %v1434_v51 }
 0x3af   : > { %5670 = vpow2.f32 %v1065_v62 }
 0x3b0   : > { %v5667_v56 = vpop.eup %5666 }
 0x3b1   : > { %v900_v57 = vsel %vm650_vm2, %v5667_v56, 0.0 }
 0x3b2   : > { %901 = vadd.xlane.f32.xlu1 %v900_v57 }
 0x3b8   : > { %v5669_v58 = vpop.eup %5668 }
 0x3b9   : > { %v1234_v59 = vsel %vm650_vm2, %v5669_v58, 0.0  ;;  %v5671_v63 = vpop.eup %5670 }
 0x3ba   : > { %1235 = vadd.xlane.f32.xlu1 %v1234_v59  ;;  %v1067_v2 = vsel %vm650_vm2, %v5671_v63, 0.0 }
 0x3c4   : > { %738 = vrot.lane.b32.xlu0 %v6445_v15, %s7190_s19  ;;  %s7251_s19 = smov 48  }
 0x3cb   : > { %1072 = vrot.lane.b32.xlu1 %v6445_v15, %s7189_s11  ;;  %s7196_s11 = smov 8  }
 0x3e3   : > { %1068 = vadd.xlane.f32.xlu0 %v1067_v2 }
 0x3f9   : > { %1239 = vrot.lane.b32.xlu0 %v6445_v15, %s7188_s8  ;;  %s7194_s8 = smov 16  }
 0x43b   : > { %v735_v4 = vpop.xlane.xlu0 %734 }
 0x43c   : > { %5672 = vrcp.f32 %v735_v4 }
 0x43f   : > { %v739_v5 = vpop.permute.xlu0 %738  ;;  %v902_v6 = vpop.xlane.xlu1 %901 }
 0x440   : > { %5674 = vrcp.f32 %v902_v6  ;;  %5123 = vmatpush3.msra.mxu1 %v739_v5  ;;  %v6569_v5 = vsub.s32 1, %v6433_v10 }
 0x441   : > { %5132 = vmatprep.subr.mxu1 %v6044_v1 }
 0x442   : > { %v1445_v6 = vrot.slane %v6441_v12, %v6569_v5 }
 0x446   : > { %v5673_v7 = vpop.eup %5672 }
 0x447   : > { %v737_v9 = vmul.f32 %v5673_v7, %v5665_v53  ;;  %v1236_v13 = vpop.xlane.xlu1 %1235  ;;  %v1436_v53 = vld [vmem:[%s7170_s6 + $0x10] sm:$0xff] }
 0x449   : > { %5125 = vmatmul.mubr.msk.f32.vlgmr.msra.gmra.mrb[4].mxu1 %vm650_vm2, %v737_v9 }
 0x44a   : > { %v5675_v14 = vpop.eup %5674  ;;  %5133 = vmatpush3.msra.mxu1 %v906_v3  ;;  %5134 = vmatprep.mubr.msk.f32.mxu1 %vm6043_vm0, %v6044_v1 }
 0x44b   : > { %v904_v15 = vmul.f32 %v5675_v14, %v5667_v56  ;;  %v1073_v16 = vpop.permute.xlu1 %1072  ;;  %5142 = vmatprep.subr.mxu1 %v6044_v1 }
 0x44d   : > { %5135 = vmatmul.mubr.msk.f32.vlgmr.msra.gmra.mrb[6].mxu1 %vm650_vm2, %v904_v15 }
 0x44e   : > { %5143 = vmatpush3.msra.mxu1 %v1073_v16  ;;  %5144 = vmatprep.mubr.msk.f32.mxu1 %vm6043_vm0, %v6044_v1 }
 0x44f   : > { %5152 = vmatprep.subr.mxu1 %v6044_v1 }
 0x470   : > { %v1069_v17 = vpop.xlane.xlu0 %1068 }
 0x471   : > { %5676 = vrcp.f32 %v1069_v17 }
 0x472   : > { %5678 = vrcp.f32 %v1236_v13 }
 0x474   : > { %v1240_v21 = vpop.permute.xlu0 %1239 }
 0x47b   : > { %v5677_v18 = vpop.eup %5676 }
 0x47c   : > { %v1071_v19 = vmul.f32 %v5677_v18, %v5671_v63  ;;  %v5679_v20 = vpop.eup %5678  ;;  %v6576_v18 = vld [vmem:[%s478_s14] sm:$0xff]  ;;  %s7242_s14 = smov 72  }
 0x47d   : > { %v1238_v22 = vmul.f32 %v5679_v20, %v5669_v58  ;;  %v1431_v20 = vsub.s32 7, %v6433_v10 }
 0x47e   : > { %5145 = vmatmul.mubr.msk.f32.vlgmr.msra.gmra.mrb[8].mxu1 %vm650_vm2, %v1071_v19  ;;  %v1426_v19 = vsub.s32 6, %v6433_v10 }
 0x47f   : > { %5153 = vmatpush3.msra.mxu1 %v1240_v21  ;;  %5154 = vmatprep.mubr.msk.f32.mxu1 %vm6043_vm0, %v6044_v1  ;;  %v1432_v24 = vrot.slane %v6441_v12, %v1431_v20 }
 0x480   : > { %5448 = vmatprep.subr.bf16.mxu1 %v6042_v0  ;;  %v1427_v21 = vrot.slane %v6441_v12, %v1426_v19 }
 0x482   : > { %5155 = vmatmul.mubr.msk.f32.vlgmr.msra.gmra.mrb[10].mxu1 %vm650_vm2, %v1238_v22 }
 0x483   : > { %5176 = vmatprep.mubr.msk.f32.mxu1 %vm6043_vm0, %v6044_v1  ;;  %5450 = vmatpush3.bf16.msra.mxu1 %v5449_v55 }
 0x484   : > { %5451 = vmatprep.subr.bf16.mxu1 %v6042_v0 }
 0x51c   : > { %v810_v27 = vpop.f32.mrb[4].mxu1 }
 0x51d   : > { %v5126_v28 = vpop.f32.mrb[5].mxu1 }
 0x520   : > { %v977_v29 = vpop.f32.mrb[6].mxu1 }
 0x521   : > { %1316 = vrot.lane.b32.xlu1 %v977_v29, %s7196_s11  ;;  %v5136_v30 = vpop.f32.mrb[7].mxu1  ;;  %s7245_s11 = smov 24  }
 0x551   : > { %v1144_v34 = vpop.f32.mrb[8].mxu1 }
 0x552   : > { %1320 = vrot.lane.b32.xlu0 %v1144_v34, %s7194_s8  ;;  %v5146_v35 = vpop.f32.mrb[9].mxu1  ;;  %s4870_s8 = sshll.u32 %s6371_s12, 4 }
 0x555   : > { %v1311_v36 = vpop.f32.mrb[10].mxu1 }
 0x556   : > { %1324 = vrot.lane.b32.xlu1 %v1311_v36, %s7192_s30  ;;  %v5156_v37 = vpop.f32.mrb[11].mxu1  ;;  %s7246_s30 = smov 120  }
 0x593   : > { %v1317_v38 = vpop.permute.xlu1 %1316 }
 0x594   : > { %v1327_v40 = vsel %vm650_vm2, %v810_v27, %v1317_v38 }
 0x5c4   : > { %v1321_v39 = vpop.permute.xlu0 %1320 }
 0x5c5   : > { %v1329_v41 = vsel %vm1328_vm3, %v1327_v40, %v1321_v39 }
 0x5c8   : > { %v1325_v42 = vpop.permute.xlu1 %1324 }
 0x5c9   : > { %v1331_v43 = vsel %vm1330_vm4, %v1329_v41, %v1325_v42  ;;  %v6631_v42 = vld [vmem:[%s491_s21] sm:$0xff]  ;;  %s7243_s21 = smov 8  }
 0x5ca   : > { %5166 = vmatmul.mubr.msk.f32.vlgmr.msra.gmra.mrb[6].mxu0 %vm573_vm1, %v1331_v43 }
 0x5cb   : > { %5187 = vmatprep.mubr.msk.f32.mxu0 %vm6043_vm0, %v6044_v1 }
 0x69d   : > { %v1405_v46 = vpop.f32.mrb[6].mxu0 }
 0x69e   : > { %v1406_v47 = vadd.f32 %v1405_v46, %v1335_v45  ;;  %v5167_v48 = vpop.f32.mrb[7].mxu0 }
 0x6a0   : > { %v1409_v49 = vadd.f32 %v1406_v47, %v6426_v8  ;;  %v1437_v8 = vld [vmem:[%s7170_s6 + $0x18] sm:$0xff] }
 0x6a1   : > { %v5649_v56 = vpack.i.bf16 %v1437_v8, %v1436_v53  ;;  %v5452_v57 = vpack.c.bf16 %v1437_v8, %v1436_v53 }
 0x6a2   : > { %v1410_v50 = vsel %vm573_vm1, %v1409_v49, 0.0 }
 0x6a3   : > { %1411 = vadd.xlane.f32.xlu0 %v1410_v50  ;;  %5453 = vmatpush3.bf16.msra.mxu1 %v5452_v57 }
 0x6a4   : > { %5190 = vmatprep.subr.mxu1 %v6044_v1 }
 0x6b9   : > { %5645 = vrot.lane.b32.xlu0 %v5644_v54, %s6046_s29 }
 0x6bd   : > { %1536 = vrot.lane.b32.xlu0 %v1445_v6, %s6046_s29 }
 0x730   : > { %v1412_v58 = vpop.xlane.xlu0 %1411 }
 0x731   : > { %v1414_v59 = vmul.f32 0.03125, %v1412_v58 }
 0x733   : > { %v1415_v60 = vsub.f32 %v1409_v49, %v1414_v59 }
 0x734   : > { %v5646_v63 = vpop.permute.xlu0 %5645 }
 0x735   : > { %v1416_v61 = vmul.f32 %v1415_v60, %v1415_v60  ;;  %v5648_v2 = vunpack.i.h.bf16 %v5646_v63  ;;  %v5647_v3 = vunpack.i.l.bf16 %v5646_v63 }
 0x737   : > { %v1417_v62 = vsel %vm573_vm1, %v1416_v61, 0.0  ;;  %v5455_v4 = vpack.c.bf16 %v5648_v2, %v5647_v3 }
 0x738   : > { %1418 = vadd.xlane.f32.xlu1 %v1417_v62  ;;  %v1537_v28 = vpop.permute.xlu0 %1536 }
 0x739   : > { %5456 = vmatpush3.bf16.msra.mxu0 %v5455_v4 }
 0x73a   : > { %5457 = vmatprep.subr.bf16.mxu0 %v6042_v0 }
 0x749   : > { %5650 = vrot.lane.b32.xlu1 %v5649_v56, %s6046_s29 }
 0x7c5   : > { %v1419_v7 = vpop.xlane.xlu1 %1418 }
 0x7c6   : > { %v1420_v9 = vmul.f32 0.03125, %v1419_v7 }
 0x7c8   : > { %v1421_v13 = vadd.f32 1e-05, %v1420_v9 }
 0x7c9   : > { %v5651_v14 = vpop.permute.xlu1 %5650 }
 0x7ca   : > { %5680 = vrsqrt.f32 %v1421_v13  ;;  %v5653_v15 = vunpack.i.h.bf16 %v5651_v14  ;;  %v5652_v16 = vunpack.i.l.bf16 %v5651_v14 }
 0x7cc   : > { %v5458_v17 = vpack.c.bf16 %v5653_v15, %v5652_v16 }
 0x7ce   : > { %5459 = vmatpush3.bf16.msra.mxu0 %v5458_v17 }
 0x7cf   : > { %5200 = vmatprep.subr.mxu0 %v6044_v1 }
 0x7d1   : > { %5188 = vmatmul.mubr.msk.f32.vlgmr.msra.gmra.mrb[8].mxu0 %vm573_vm1, %v6576_v18 }
 0x7d2   : > { %5202 = vmatprep.mubr.msk.f32.mxu0 %vm6043_vm0, %v6044_v1 }
 0x7d4   : > { %v5681_v22 = vpop.eup %5680 }
 0x7d5   : > { %v1423_v23 = vmul.f32 %v5681_v22, %v1415_v60 }
 0x7d7   : > { %v1428_v26 = vmul.f32 %v1427_v21, %v1423_v23 }
 0x7d9   : > { %v6591_v27 = vadd.f32 %v1432_v24, %v1428_v26 }
 0x7db   : > { %5177 = vmatmul.mubr.msk.f32.vlgmr.msra.gmra.mrb[12].mxu1 %vm573_vm1, %v6591_v27 }
 0x7dc   : > { %5192 = vmatprep.mubr.msk.f32.mxu1 %vm6043_vm0, %v6044_v1 }
 0x8a4   : > { %v1608_v29 = vpop.f32.mrb[8].mxu0 }
 0x8a5   : > { %v6597_v30 = vadd.f32 %v1608_v29, %v1537_v28  ;;  %v5189_v31 = vpop.f32.mrb[9].mxu0 }
 0x8a7   : > { %1779 = vrot.lane.b32.xlu1 %v6597_v30, %s7204_s16  ;;  %5191 = vmatpush3.xpose.msk.msra.mxu1 %vm650_vm2, %v6597_v30 }
 0x8a8   : > { %5195 = vmatprep.subr.mxu1 %v6044_v1 }
 0x8ab   : > { %1946 = vrot.lane.b32.xlu1 %v6597_v30, %s7207_s17 }
 0x8ae   : > { %v1515_v32 = vpop.f32.mrb[12].mxu1 }
 0x8af   : > { %v1516_v33 = vadd.f32 %v1515_v32, %v1445_v6  ;;  %2113 = vrot.lane.b32.xlu1 %v6597_v30, %s7202_s13  ;;  %v5178_v34 = vpop.f32.mrb[13].mxu1 }
 0x8b1   : > { %1777 = vrot.lane.b32.xlu0 %v1516_v33, %s7204_s16  ;;  %5193 = vmatmul.mubr.msk.f32.vlgmr.msra.gmra.mrb[14].mxu1 %vm650_vm2, %v1516_v33  ;;  %s7250_s16 = smov 64  }
 0x8b2   : > { %5197 = vmatprep.mubr.msk.f32.mxu1 %vm6043_vm0, %v6044_v1 }
 0x8b5   : > { %1944 = vrot.lane.b32.xlu0 %v1516_v33, %s7207_s17 }
 0x8b9   : > { %2111 = vrot.lane.b32.xlu0 %v1516_v33, %s7202_s13  ;;  %s7249_s13 = smov 56  }
 0x919   : > { %v1780_v35 = vpop.permute.xlu1 %1779 }
 0x91a   : > { %5201 = vmatpush3.xpose.msk.msra.mxu0 %vm650_vm2, %v1780_v35 }
 0x91b   : > { %5210 = vmatprep.subr.mxu0 %v6044_v1 }
 0x91d   : > { %v1947_v36 = vpop.permute.xlu1 %1946 }
 0x921   : > { %v2114_v39 = vpop.permute.xlu1 %2113 }
 0x923   : > { %v1778_v37 = vpop.permute.xlu0 %1777 }
 0x924   : > { %5203 = vmatmul.mubr.msk.f32.vlgmr.msra.gmra.mrb[10].mxu0 %vm650_vm2, %v1778_v37 }
 0x925   : > { %5211 = vmatpush3.xpose.msk.msra.mxu0 %vm650_vm2, %v1947_v36  ;;  %5212 = vmatprep.mubr.msk.f32.mxu0 %vm6043_vm0, %v6044_v1 }
 0x926   : > { %5220 = vmatprep.subr.mxu0 %v6044_v1 }
 0x927   : > { %v1945_v38 = vpop.permute.xlu0 %1944 }
 0x928   : > { %5213 = vmatmul.mubr.msk.f32.vlgmr.msra.gmra.mrb[12].mxu0 %vm650_vm2, %v1945_v38 }
 0x929   : > { %5221 = vmatpush3.xpose.msk.msra.mxu0 %vm650_vm2, %v2114_v39  ;;  %5222 = vmatprep.mubr.msk.f32.mxu0 %vm6043_vm0, %v6044_v1 }
 0x92a   : > { %5460 = vmatprep.subr.bf16.mxu0 %v6042_v0 }
 0x92b   : > { %v2112_v40 = vpop.permute.xlu0 %2111 }
 0x92c   : > { %5223 = vmatmul.mubr.msk.f32.vlgmr.msra.gmra.mrb[14].mxu0 %vm650_vm2, %v2112_v40 }
 0x92d   : > { %5238 = vmatprep.mubr.msk.f32.mxu0 %vm6043_vm0, %v6044_v1 }
 0x984   : > { %v1684_v41 = vpop.f32.mrb[14].mxu1 }
 0x985   : > { %v1688_v43 = vmul.f32 0.35355338, %v1684_v41  ;;  %v5194_v45 = vpop.f32.mrb[15].mxu1 }
 0x987   : > { %v1689_v46 = vadd.f32 %v1688_v43, %v6631_v42 }
 0x989   : > { %v1690_v47 = vsel %vm650_vm2, %v1689_v46, -inf }
 0x98a   : > { %1691 = vmax.xlane.f32.xlu1 %v1690_v47 }
 0x9f7   : > { %v1851_v48 = vpop.f32.mrb[10].mxu0 }
 0x9f8   : > { %v1855_v49 = vmul.f32 0.35355338, %v1851_v48  ;;  %v5204_v50 = vpop.f32.mrb[11].mxu0 }
 0x9f9   : > { %v1438_v50 = vld [vmem:[#allocation10] sm:$0xff] }
 0x9fa   : > { %v1856_v51 = vadd.f32 %v1855_v49, %v6631_v42 }
 0x9fb   : > { %v2018_v52 = vpop.f32.mrb[12].mxu0 }
 0x9fc   : > { %v2022_v53 = vmul.f32 0.35355338, %v2018_v52  ;;  %v5214_v54 = vpop.f32.mrb[13].mxu0  ;;  %v1857_v55 = vsel %vm650_vm2, %v1856_v51, -inf }
 0x9fd   : > { %1858 = vmax.xlane.f32.xlu0 %v1857_v55  ;;  %v1441_v54 = vld [vmem:[#allocation10 + $0x18] sm:$0xff] }
 0x9fe   : > { %v2023_v8 = vadd.f32 %v2022_v53, %v6631_v42  ;;  %v1440_v53 = vld [vmem:[#allocation10 + $0x10] sm:$0xff] }
 0x9ff   : > { %v2185_v56 = vpop.f32.mrb[14].mxu0  ;;  %v5464_v55 = vpack.c.bf16 %v1441_v54, %v1440_v53 }
 0xa00   : > { %v2189_v57 = vmul.f32 0.35355338, %v2185_v56  ;;  %v5224_v58 = vpop.f32.mrb[15].mxu0  ;;  %v2024_v59 = vsel %vm650_vm2, %v2023_v8, -inf }
 0xa01   : > { %2025 = vmax.xlane.f32.xlu0 %v2024_v59 }
 0xa02   : > { %v2190_v60 = vadd.f32 %v2189_v57, %v6631_v42 }
 0xa04   : > { %v2191_v61 = vsel %vm650_vm2, %v2190_v60, -inf }
 0xa05   : > { %2192 = vmax.xlane.f32.xlu1 %v2191_v61 }
 0xa16   : > { %1868 = vrot.lane.b32.xlu1 %v6597_v30, %s7206_s20 }
 0xa17   : > { %v1692_v62 = vpop.xlane.xlu1 %1691 }
 0xa18   : > { %v1693_v63 = vsub.f32 %v1689_v46, %v1692_v62 }
 0xa1a   : > { %v1694_v2 = vmul.f32 1.442695, %v1693_v63 }
 0xa1c   : > { %5682 = vpow2.f32 %v1694_v2 }
 0xa26   : > { %v5683_v3 = vpop.eup %5682 }
 0xa27   : > { %v1696_v4 = vsel %vm650_vm2, %v5683_v3, 0.0 }
 0xa28   : > { %1697 = vadd.xlane.f32.xlu0 %v1696_v4 }
 0xa3e   : > { %1701 = vrot.lane.b32.xlu0 %v6597_v30, %s6046_s29 }
 0xa8a   : > { %v1859_v6 = vpop.xlane.xlu0 %1858 }
 0xa8b   : > { %v1860_v7 = vsub.f32 %v1856_v51, %v1859_v6  ;;  %v1439_v51 = vld [vmem:[#allocation10 + $0x8] sm:$0xff]  ;;  %v2295_v6 = vsub.s32 4, %v6433_v10 }
 0xa8c   : > { %v5461_v52 = vpack.c.bf16 %v1439_v51, %v1438_v50  ;;  %v560_v50 = vld [vmem:[%s7174_s10 + $0x8] sm:$0xf] }
 0xa8d   : > { %v1861_v9 = vmul.f32 1.442695, %v1860_v7  ;;  %v2296_v7 = vrot.slane %v6441_v12, %v2295_v6  ;;  %v2399_v51 = vrot.slane %v560_v50, %v6436_v11  ;;  %v2404_v54 = vrot.slane %v560_v50, %v6569_v5 }
 0xa8e   : > { %v2026_v13 = vpop.xlane.xlu0 %2025  ;;  %5462 = vmatpush3.bf16.msra.mxu0 %v5461_v52 }
 0xa8f   : > { %5684 = vpow2.f32 %v1861_v9  ;;  %v2027_v14 = vsub.f32 %v2023_v8, %v2026_v13  ;;  %5463 = vmatprep.subr.bf16.mxu0 %v6042_v0 }
 0xa91   : > { %v2028_v15 = vmul.f32 1.442695, %v2027_v14 }
 0xa92   : > { %v2193_v16 = vpop.xlane.xlu1 %2192  ;;  %5465 = vmatpush3.bf16.msra.mxu0 %v5464_v55 }
 0xa93   : > { %5686 = vpow2.f32 %v2028_v15  ;;  %v2194_v17 = vsub.f32 %v2190_v60, %v2193_v16  ;;  %5472 = vmatprep.subr.bf16.mxu0 %v6042_v0 }
 0xa95   : > { %v2195_v21 = vmul.f32 1.442695, %v2194_v17 }
 0xa96   : > { %v1869_v35 = vpop.permute.xlu1 %1868 }
 0xa97   : > { %5688 = vpow2.f32 %v2195_v21 }
 0xa99   : > { %v5685_v22 = vpop.eup %5684 }
 0xa9a   : > { %v1863_v23 = vsel %vm650_vm2, %v5685_v22, 0.0 }
 0xa9b   : > { %1864 = vadd.xlane.f32.xlu1 %v1863_v23 }
 0xa9d   : > { %v5687_v24 = vpop.eup %5686 }
 0xa9e   : > { %v2030_v26 = vsel %vm650_vm2, %v5687_v24, 0.0 }
 0xa9f   : > { %2031 = vadd.xlane.f32.xlu0 %v2030_v26  ;;  %v2406_v26 = vld [vmem:[#allocation11] sm:$0xff] }
 0xaa1   : > { %v5689_v28 = vpop.eup %5688 }
 0xaa2   : > { %v2197_v29 = vsel %vm650_vm2, %v5689_v28, 0.0 }
 0xaa3   : > { %2198 = vadd.xlane.f32.xlu1 %v2197_v29 }
 0xab4   : > { %2035 = vrot.lane.b32.xlu1 %v6597_v30, %s7200_s15  ;;  %s7248_s15 = smov 80  }
 0xab5   : > { %2202 = vrot.lane.b32.xlu0 %v6597_v30, %s7242_s14  ;;  %v1698_v31 = vpop.xlane.xlu0 %1697 }
 0xab6   : > { %5690 = vrcp.f32 %v1698_v31  ;;  %v2408_v31 = vld [vmem:[#allocation11 + $0x10] sm:$0xff] }
 0xab9   : > { %v1702_v32 = vpop.permute.xlu0 %1701 }
 0xaba   : > { %5196 = vmatpush3.msra.mxu1 %v1702_v32  ;;  %v2409_v32 = vld [vmem:[#allocation11 + $0x18] sm:$0xff] }
 0xabb   : > { %5205 = vmatprep.subr.mxu1 %v6044_v1 }
 0xac0   : > { %v5691_v33 = vpop.eup %5690 }
 0xac1   : > { %v6654_v34 = vmul.f32 %v5691_v33, %v5683_v3  ;;  %v5470_v33 = vpack.c.bf16 %v2409_v32, %v2408_v31 }
 0xac3   : > { %5198 = vmatmul.mubr.msk.f32.vlgmr.msra.gmra.mrb[16].mxu1 %vm650_vm2, %v6654_v34 }
 0xac4   : > { %5206 = vmatpush3.msra.mxu1 %v1869_v35  ;;  %5207 = vmatprep.mubr.msk.f32.mxu1 %vm6043_vm0, %v6044_v1  ;;  %v2489_v35 = vld [vmem:[%s7173_s9 + $0x8] sm:$0xff] }
 0xac5   : > { %5215 = vmatprep.subr.mxu1 %v6044_v1 }
 0xb28   : > { %v1865_v30 = vpop.xlane.xlu1 %1864 }
 0xb29   : > { %5692 = vrcp.f32 %v1865_v30  ;;  %v2490_v30 = vld [vmem:[%s7173_s9 + $0x10] sm:$0xff] }
 0xb2c   : > { %v2032_v36 = vpop.xlane.xlu0 %2031 }
 0xb2d   : > { %5694 = vrcp.f32 %v2032_v36 }
 0xb30   : > { %v2199_v37 = vpop.xlane.xlu1 %2198  ;;  %v2203_v45 = vpop.permute.xlu0 %2202 }
 0xb31   : > { %5696 = vrcp.f32 %v2199_v37  ;;  %v2491_v37 = vld [vmem:[%s7173_s9 + $0x18] sm:$0xff] }
 0xb33   : > { %v5693_v38 = vpop.eup %5692 }
 0xb34   : > { %v6661_v39 = vmul.f32 %v5693_v38, %v5685_v22  ;;  %v2036_v40 = vpop.permute.xlu1 %2035  ;;  %v5476_v38 = vpack.c.bf16 %v2491_v37, %v2490_v30  ;;  %v2596_v37 = vrot.slane %v560_v50, %v6544_v44 }
 0xb36   : > { %5208 = vmatmul.mubr.msk.f32.vlgmr.msra.gmra.mrb[18].mxu1 %vm650_vm2, %v6661_v39 }
 0xb37   : > { %v5695_v41 = vpop.eup %5694  ;;  %5216 = vmatpush3.msra.mxu1 %v2036_v40  ;;  %5217 = vmatprep.mubr.msk.f32.mxu1 %vm6043_vm0, %v6044_v1  ;;  %v2492_v40 = vld [vmem:[%s7173_s9 + $0x20] sm:$0xff] }
 0xb38   : > { %v6667_v43 = vmul.f32 %v5695_v41, %v5687_v24  ;;  %5225 = vmatprep.subr.mxu1 %v6044_v1  ;;  %v2493_v41 = vld [vmem:[%s7173_s9 + $0x28] sm:$0xff] }
 0xb3a   : > { %5218 = vmatmul.mubr.msk.f32.vlgmr.msra.gmra.mrb[20].mxu1 %vm650_vm2, %v6667_v43 }
 0xb3b   : > { %v5697_v46 = vpop.eup %5696  ;;  %5226 = vmatpush3.msra.mxu1 %v2203_v45  ;;  %5227 = vmatprep.mubr.msk.f32.mxu1 %vm6043_vm0, %v6044_v1  ;;  %v5479_v45 = vpack.c.bf16 %v2493_v41, %v2492_v40  ;;  %v6776_v41 = vld [vmem:[%s7174_s10 + $0x10] sm:$0xff] }
 0xb3c   : > { %v6674_v47 = vmul.f32 %v5697_v46, %v5689_v28  ;;  %5466 = vmatprep.subr.bf16.mxu1 %v6042_v0  ;;  %v2407_v28 = vld [vmem:[#allocation11 + $0x8] sm:$0xff] }
 0xb3d   : > { %v5467_v29 = vpack.c.bf16 %v2407_v28, %v2406_v26  ;;  %v4906_v28 = vld [vmem:[%s7168_s4 + $0x30] sm:$0xff] }
 0xb3e   : > { %5228 = vmatmul.mubr.msk.f32.vlgmr.msra.gmra.mrb[22].mxu1 %vm650_vm2, %v6674_v47 }
 0xb3f   : > { %5249 = vmatprep.mubr.msk.f32.mxu1 %vm6043_vm0, %v6044_v1  ;;  %5468 = vmatpush3.bf16.msra.mxu1 %v5467_v29  ;;  %v4907_v29 = vld [vmem:[%s7168_s4 + $0x38] sm:$0xff] }
 0xb40   : > { %5469 = vmatprep.subr.bf16.mxu1 %v6042_v0  ;;  %v5488_v31 = vpack.c.bf16 %v4907_v29, %v4906_v28 }
 0xb43   : > { %5471 = vmatpush3.bf16.msra.mxu1 %v5470_v33 }
 0xb44   : > { %5484 = vmatprep.subr.bf16.mxu1 %v6042_v0 }
 0xb96   : > { %v1773_v48 = vpop.f32.mrb[16].mxu1 }
 0xb97   : > { %v5199_v49 = vpop.f32.mrb[17].mxu1 }
 0xc09   : > { %v1940_v8 = vpop.f32.mrb[18].mxu1 }
 0xc0a   : > { %2279 = vrot.lane.b32.xlu1 %v1940_v8, %s7243_s21  ;;  %v5209_v56 = vpop.f32.mrb[19].mxu1 }
 0xc0b   : > { %v2494_v56 = vld [vmem:[%s7173_s9 + $0x30] sm:$0xff] }
 0xc0d   : > { %v2107_v57 = vpop.f32.mrb[20].mxu1 }
 0xc0e   : > { %2283 = vrot.lane.b32.xlu0 %v2107_v57, %s7244_s27  ;;  %v5219_v58 = vpop.f32.mrb[21].mxu1  ;;  %v2495_v57 = vld [vmem:[%s7173_s9 + $0x38] sm:$0xff] }
 0xc0f   : > { %v5482_v58 = vpack.c.bf16 %v2495_v57, %v2494_v56 }
 0xc11   : > { %v2274_v59 = vpop.f32.mrb[22].mxu1 }
 0xc12   : > { %2287 = vrot.lane.b32.xlu1 %v2274_v59, %s7245_s11  ;;  %v5229_v60 = vpop.f32.mrb[23].mxu1  ;;  %v6738_v59 = vsub.s32 2, %v6433_v10 }
 0xc14   : > { %v2413_v60 = vrot.slane %v6441_v12, %v6738_v59 }
 0xc7c   : > { %v2280_v61 = vpop.permute.xlu1 %2279 }
 0xc7d   : > { %v2290_v63 = vsel %vm650_vm2, %v1773_v48, %v2280_v61 }
 0xc80   : > { %v2284_v62 = vpop.permute.xlu0 %2283 }
 0xc81   : > { %v2291_v2 = vsel %vm1328_vm3, %v2290_v63, %v2284_v62 }
 0xc84   : > { %v2288_v3 = vpop.permute.xlu1 %2287 }
 0xc85   : > { %v2292_v4 = vsel %vm1330_vm4, %v2291_v2, %v2288_v3  ;;  %v2498_v3 = vsub.s32 5, %v6433_v10 }
 0xc86   : > { %5239 = vmatmul.mubr.msk.f32.vlgmr.msra.gmra.mrb[16].mxu0 %vm573_vm1, %v2292_v4 }
 0xc87   : > { %5268 = vmatprep.mubr.msk.f32.mxu0 %vm6043_vm0, %v6044_v1  ;;  %v2499_v4 = vrot.slane %v6441_v12, %v2498_v3  ;;  %v4905_v12 = vld [vmem:[%s7168_s4 + $0x28] sm:$0xff] }
 0xd59   : > { %v2366_v9 = vpop.f32.mrb[16].mxu0 }
 0xd5a   : > { %v2367_v13 = vadd.f32 %v2366_v9, %v2296_v7  ;;  %v5240_v14 = vpop.f32.mrb[17].mxu0 }
 0xd5c   : > { %v2382_v15 = vadd.f32 %v2367_v13, %v6591_v27  ;;  %v2488_v27 = vld [vmem:[%s7173_s9] sm:$0xff] }
 0xd5d   : > { %v5473_v36 = vpack.c.bf16 %v2489_v35, %v2488_v27  ;;  %v2591_v35 = vrot.slane %v560_v50, %v6738_v59 }
 0xd5e   : > { %v2383_v16 = vsel %vm573_vm1, %v2382_v15, 0.0 }
 0xd5f   : > { %2384 = vadd.xlane.f32.xlu0 %v2383_v16  ;;  %5474 = vmatpush3.bf16.msra.mxu0 %v5473_v36 }
 0xd60   : > { %5475 = vmatprep.subr.bf16.mxu0 %v6042_v0 }
 0xd63   : > { %5477 = vmatpush3.bf16.msra.mxu0 %v5476_v38 }
 0xd64   : > { %5478 = vmatprep.subr.bf16.mxu0 %v6042_v0 }
 0xd67   : > { %5480 = vmatpush3.bf16.msra.mxu0 %v5479_v45  ;;  %v2615_v45 = vrot.slane %v6776_v41, %v6436_v11 }
 0xd68   : > { %5481 = vmatprep.subr.bf16.mxu0 %v6042_v0 }
 0xd6b   : > { %5483 = vmatpush3.bf16.msra.mxu0 %v5482_v58 }
 0xd6c   : > { %5292 = vmatprep.subr.mxu0 %v6044_v1 }
 0xdec   : > { %v2385_v17 = vpop.xlane.xlu0 %2384 }
 0xded   : > { %v2386_v21 = vmul.f32 0.03125, %v2385_v17 }
 0xdef   : > { %v2387_v22 = vsub.f32 %v2382_v15, %v2386_v21 }
 0xdf1   : > { %v2388_v23 = vmul.f32 %v2387_v22, %v2387_v22 }
 0xdf3   : > { %v2389_v24 = vsel %vm573_vm1, %v2388_v23, 0.0 }
 0xdf4   : > { %2390 = vadd.xlane.f32.xlu1 %v2389_v24  ;;  %v4904_v24 = vld [vmem:[%s7168_s4 + $0x20] sm:$0xff] }
 0xdf5   : > { %v5485_v26 = vpack.c.bf16 %v4905_v12, %v4904_v24 }
 0xe81   : > { %v2391_v46 = vpop.xlane.xlu1 %2390 }
 0xe82   : > { %v2392_v48 = vmul.f32 0.03125, %v2391_v46 }
 0xe84   : > { %v2393_v49 = vadd.f32 1e-05, %v2392_v48 }
 0xe86   : > { %5698 = vrsqrt.f32 %v2393_v49 }
 0xe90   : > { %v5699_v52 = vpop.eup %5698 }
 0xe91   : > { %v2395_v53 = vmul.f32 %v5699_v52, %v2387_v22 }
 0xe93   : > { %v2400_v55 = vmul.f32 %v2399_v51, %v2395_v53 }
 0xe95   : > { %v2405_v8 = vadd.f32 %v2404_v54, %v2400_v55 }
 0xe97   : > { %5250 = vmatmul.mubr.msk.f32.vlgmr.msra.gmra.mrb[24].mxu1 %vm573_vm1, %v2405_v8 }
 0xe98   : > { %5279 = vmatprep.mubr.msk.f32.mxu1 %vm6043_vm0, %v6044_v1  ;;  %5486 = vmatpush3.bf16.msra.mxu1 %v5485_v26 }
 0xe99   : > { %5487 = vmatprep.subr.bf16.mxu1 %v6042_v0 }
 0xe9c   : > { %5489 = vmatpush3.bf16.msra.mxu1 %v5488_v31 }
 0xe9d   : > { %5282 = vmatprep.subr.mxu1 %v6044_v1 }
 0xf6a   : > { %v2483_v61 = vpop.f32.mrb[24].mxu1 }
 0xf6b   : > { %v2484_v62 = vadd.f32 %v2483_v61, %v2413_v60  ;;  %v5251_v63 = vpop.f32.mrb[25].mxu1 }
 0xf6d   : > { %v2487_v2 = vmax.f32 %v2484_v62, 0.0 }
 0xf6f   : > { %5269 = vmatmul.mubr.msk.f32.vlgmr.msra.gmra.mrb[18].mxu0 %vm2500_vm5, %v2487_v2 }
 0xf70   : > { %5294 = vmatprep.mubr.msk.f32.mxu0 %vm6043_vm0, %v6044_v1 }
0x1042   : > { %v2570_v7 = vpop.f32.mrb[18].mxu0 }
0x1043   : > { %v2571_v9 = vadd.f32 %v2570_v7, %v2499_v4  ;;  %v5270_v13 = vpop.f32.mrb[19].mxu0 }
0x1045   : > { %v2574_v14 = vadd.f32 %v2571_v9, %v2405_v8 }
0x1047   : > { %v2575_v15 = vsel %vm573_vm1, %v2574_v14, 0.0 }
0x1048   : > { %2576 = vadd.xlane.f32.xlu0 %v2575_v15 }
0x10d5   : > { %v2577_v16 = vpop.xlane.xlu0 %2576 }
0x10d6   : > { %v2578_v17 = vmul.f32 0.03125, %v2577_v16 }
0x10d8   : > { %v2579_v21 = vsub.f32 %v2574_v14, %v2578_v17 }
0x10da   : > { %v2580_v22 = vmul.f32 %v2579_v21, %v2579_v21 }
0x10dc   : > { %v2581_v23 = vsel %vm573_vm1, %v2580_v22, 0.0 }
0x10dd   : > { %2582 = vadd.xlane.f32.xlu0 %v2581_v23 }
0x116a   : > { %v2583_v32 = vpop.xlane.xlu0 %2582 }
0x116b   : > { %v2584_v33 = vmul.f32 0.03125, %v2583_v32 }
0x116d   : > { %v2585_v27 = vadd.f32 1e-05, %v2584_v33 }
0x116f   : > { %5700 = vrsqrt.f32 %v2585_v27 }
0x1179   : > { %v5701_v30 = vpop.eup %5700 }
0x117a   : > { %v2587_v36 = vmul.f32 %v5701_v30, %v2579_v21 }
0x117c   : > { %v2592_v38 = vmul.f32 %v2591_v35, %v2587_v36 }
0x117e   : > { %v6767_v40 = vadd.f32 %v2596_v37, %v2592_v38 }
0x1180   : > { %5280 = vmatmul.mubr.msk.f32.vlgmr.msra.gmra.mrb[26].mxu1 %vm573_vm1, %v6767_v40 }
0x1181   : > { %5284 = vmatprep.mubr.msk.f32.mxu1 %vm6043_vm0, %v6044_v1 }
0x1253   : > { %v2685_v46 = vpop.f32.mrb[26].mxu1 }
0x1254   : > { %v6780_v48 = vadd.f32 %v2685_v46, %v2615_v45  ;;  %v5281_v49 = vpop.f32.mrb[27].mxu1 }
0x1256   : > { %2857 = vrot.lane.b32.xlu0 %v6780_v48, %s7206_s20  ;;  %2690 = vrot.lane.b32.xlu1 %v6780_v48, %s6046_s29  ;;  %s7253_s20 = smov 112  }
0x125a   : > { %3022 = vrot.lane.b32.xlu0 %v6780_v48, %s7207_s17  ;;  %2855 = vrot.lane.b32.xlu1 %v6780_v48, %s7246_s30  ;;  %s7254_s17 = smov 88  }
0x125e   : > { %3189 = vrot.lane.b32.xlu0 %v6780_v48, %s7247_s18  ;;  %3024 = vrot.lane.b32.xlu1 %v6780_v48, %s7248_s15 }
0x1262   : > { %3191 = vrot.lane.b32.xlu1 %v6780_v48, %s7242_s14 }
0x12c8   : > { %v2858_v50 = vpop.permute.xlu0 %2857  ;;  %v2691_v51 = vpop.permute.xlu1 %2690 }
0x12c9   : > { %5283 = vmatpush3.xpose.msk.msra.mxu1 %vm650_vm2, %v2691_v51  ;;  %5293 = vmatpush3.xpose.msk.msra.mxu0 %vm650_vm2, %v2858_v50 }
0x12ca   : > { %5302 = vmatprep.subr.mxu0 %v6044_v1  ;;  %5287 = vmatprep.subr.mxu1 %v6044_v1 }
0x12cc   : > { %5285 = vmatmul.mubr.msk.f32.vlgmr.msra.gmra.mrb[28].mxu1 %vm650_vm2, %v6780_v48  ;;  %v2856_v52 = vpop.permute.xlu1 %2855  ;;  %v3023_v54 = vpop.permute.xlu0 %3022 }
0x12cd   : > { %5295 = vmatmul.mubr.msk.f32.vlgmr.msra.gmra.mrb[20].mxu0 %vm650_vm2, %v2856_v52  ;;  %5289 = vmatprep.mubr.msk.f32.mxu1 %vm6043_vm0, %v6044_v1 }
0x12ce   : > { %5304 = vmatprep.mubr.msk.f32.mxu0 %vm6043_vm0, %v6044_v1 }
0x12d0   : > { %v3025_v53 = vpop.permute.xlu1 %3024  ;;  %v3190_v8 = vpop.permute.xlu0 %3189 }
0x12d1   : > { %5303 = vmatpush3.xpose.msk.msra.mxu0 %vm650_vm2, %v3025_v53 }
0x12d2   : > { %5312 = vmatprep.subr.mxu0 %v6044_v1 }
0x12d4   : > { %5305 = vmatmul.mubr.msk.f32.vlgmr.msra.gmra.mrb[22].mxu0 %vm650_vm2, %v3023_v54  ;;  %v3192_v55 = vpop.permute.xlu1 %3191 }
0x12d5   : > { %5313 = vmatpush3.xpose.msk.msra.mxu0 %vm650_vm2, %v3192_v55  ;;  %5314 = vmatprep.mubr.msk.f32.mxu0 %vm6043_vm0, %v6044_v1 }
0x12d6   : > { %5490 = vmatprep.subr.bf16.mxu0 %v6042_v0 }
0x12d8   : > { %5315 = vmatmul.mubr.msk.f32.vlgmr.msra.gmra.mrb[24].mxu0 %vm650_vm2, %v3190_v8 }
0x12d9   : > { %5330 = vmatprep.mubr.msk.f32.mxu0 %vm6043_vm0, %v6044_v1 }
0x139f   : > { %v2762_v56 = vpop.f32.mrb[28].mxu1 }
0x13a0   : > { %v2766_v57 = vmul.f32 0.35355338, %v2762_v56  ;;  %v5286_v58 = vpop.f32.mrb[29].mxu1  ;;  %v2929_v60 = vpop.f32.mrb[20].mxu0 }
0x13a1   : > { %v2933_v61 = vmul.f32 0.35355338, %v2929_v60  ;;  %v5296_v62 = vpop.f32.mrb[21].mxu0 }
0x13a2   : > { %v2767_v63 = vadd.f32 %v2766_v57, %v6482_v25 }
0x13a3   : > { %v2934_v2 = vadd.f32 %v2933_v61, %v6482_v25 }
0x13a4   : > { %v2768_v4 = vsel %vm650_vm2, %v2767_v63, -inf }
0x13a5   : > { %2769 = vmax.xlane.f32.xlu1 %v2768_v4  ;;  %v2935_v7 = vsel %vm650_vm2, %v2934_v2, -inf }
0x13a6   : > { %2936 = vmax.xlane.f32.xlu0 %v2935_v7 }
0x13a7   : > { %v3096_v9 = vpop.f32.mrb[22].mxu0 }
0x13a8   : > { %v3100_v13 = vmul.f32 0.35355338, %v3096_v9  ;;  %v5306_v14 = vpop.f32.mrb[23].mxu0 }
0x13a9   : > { %v4909_v14 = vld [vmem:[%s7169_s5 + $0x28] sm:$0xff] }
0x13aa   : > { %v3101_v15 = vadd.f32 %v3100_v13, %v6482_v25  ;;  %v4908_v13 = vld [vmem:[%s7169_s5 + $0x20] sm:$0xff] }
0x13ab   : > { %v3263_v16 = vpop.f32.mrb[24].mxu0 }
0x13ac   : > { %v3267_v17 = vmul.f32 0.35355338, %v3263_v16  ;;  %v5316_v21 = vpop.f32.mrb[25].mxu0  ;;  %v3102_v22 = vsel %vm650_vm2, %v3101_v15, -inf }
0x13ad   : > { %3103 = vmax.xlane.f32.xlu0 %v3102_v22 }
0x13ae   : > { %v3268_v23 = vadd.f32 %v3267_v17, %v6482_v25 }
0x13b0   : > { %v3269_v24 = vsel %vm650_vm2, %v3268_v23, -inf }
0x13b1   : > { %3270 = vmax.xlane.f32.xlu1 %v3269_v24  ;;  %v4911_v24 = vld [vmem:[%s7169_s5 + $0x38] sm:$0xff] }
0x13c2   : > { %2946 = vrot.lane.b32.xlu1 %v6780_v48, %s7249_s13 }
0x1432   : > { %v2770_v12 = vpop.xlane.xlu1 %2769 }
0x1433   : > { %v2771_v26 = vsub.f32 %v2767_v63, %v2770_v12  ;;  %v2937_v28 = vpop.xlane.xlu0 %2936 }
0x1434   : > { %v2938_v29 = vsub.f32 %v2934_v2, %v2937_v28 }
0x1435   : > { %v2772_v31 = vmul.f32 1.442695, %v2771_v26 }
0x1436   : > { %v2939_v32 = vmul.f32 1.442695, %v2938_v29 }
0x1437   : > { %5702 = vpow2.f32 %v2772_v31 }
0x1438   : > { %5704 = vpow2.f32 %v2939_v32 }
0x143a   : > { %v3104_v46 = vpop.xlane.xlu0 %3103 }
0x143b   : > { %v3105_v49 = vsub.f32 %v3101_v15, %v3104_v46  ;;  %v5491_v15 = vpack.c.bf16 %v4909_v14, %v4908_v13 }
0x143d   : > { %v3106_v50 = vmul.f32 1.442695, %v3105_v49  ;;  %5492 = vmatpush3.bf16.msra.mxu0 %v5491_v15 }
0x143e   : > { %v3271_v33 = vpop.xlane.xlu1 %3270  ;;  %5493 = vmatprep.subr.bf16.mxu0 %v6042_v0 }
0x143f   : > { %v3272_v27 = vsub.f32 %v3268_v23, %v3271_v33  ;;  %v4910_v23 = vld [vmem:[%s7169_s5 + $0x30] sm:$0xff] }
0x1440   : > { %v5494_v12 = vpack.c.bf16 %v4911_v24, %v4910_v23  ;;  %v3470_v24 = vrot.slane %v6776_v41, %v1431_v20 }
0x1441   : > { %v5703_v35 = vpop.eup %5702  ;;  %v3273_v30 = vmul.f32 1.442695, %v3272_v27 }
0x1442   : > { %v5705_v36 = vpop.eup %5704  ;;  %v2774_v25 = vsel %vm650_vm2, %v5703_v35, 0.0  ;;  %v2947_v53 = vpop.permute.xlu1 %2946  ;;  %5495 = vmatpush3.bf16.msra.mxu0 %v5494_v12 }
0x1443   : > { %5706 = vpow2.f32 %v3273_v30  ;;  %2775 = vadd.xlane.f32.xlu0 %v2774_v25  ;;  %v2941_v37 = vsel %vm650_vm2, %v5705_v36, 0.0  ;;  %5502 = vmatprep.subr.bf16.mxu0 %v6042_v0  ;;  %v3374_v25 = vrot.slane %v6776_v41, %v6544_v44 }
0x1444   : > { %2942 = vadd.xlane.f32.xlu1 %v2941_v37  ;;  %5708 = vpow2.f32 %v3106_v50  ;;  %v4926_v50 = vld [vmem:[%s7170_s6 + $0x20] sm:$0xff] }
0x144d   : > { %v5707_v38 = vpop.eup %5706 }
0x144e   : > { %v3275_v45 = vsel %vm650_vm2, %v5707_v38, 0.0  ;;  %v5709_v51 = vpop.eup %5708 }
0x144f   : > { %3276 = vadd.xlane.f32.xlu1 %v3275_v45  ;;  %v3108_v52 = vsel %vm650_vm2, %v5709_v51, 0.0 }
0x1459   : > { %2779 = vrot.lane.b32.xlu0 %v6780_v48, %s7250_s16 }
0x1460   : > { %3113 = vrot.lane.b32.xlu1 %v6780_v48, %s7251_s19  ;;  %s7255_s19 = sld [smem:[#allocation32_spill]] }
0x1478   : > { %3109 = vadd.xlane.f32.xlu0 %v3108_v52  ;;  %v4928_v52 = vld [vmem:[%s7170_s6 + $0x30] sm:$0xff] }
0x148e   : > { %3280 = vrot.lane.b32.xlu0 %v6780_v48, %s7252_s28 }
0x14d0   : > { %v2776_v54 = vpop.xlane.xlu0 %2775 }
0x14d1   : > { %5710 = vrcp.f32 %v2776_v54  ;;  %v2943_v55 = vpop.xlane.xlu1 %2942 }
0x14d2   : > { %5712 = vrcp.f32 %v2943_v55 }
0x14d4   : > { %v2780_v8 = vpop.permute.xlu0 %2779 }
0x14d5   : > { %5288 = vmatpush3.msra.mxu1 %v2780_v8 }
0x14d6   : > { %5297 = vmatprep.subr.mxu1 %v6044_v1 }
0x14db   : > { %v5711_v56 = vpop.eup %5710 }
0x14dc   : > { %v2778_v57 = vmul.f32 %v5711_v56, %v5703_v35  ;;  %v3277_v58 = vpop.xlane.xlu1 %3276  ;;  %v5713_v60 = vpop.eup %5712 }
0x14dd   : > { %v2945_v48 = vmul.f32 %v5713_v60, %v5705_v36 }
0x14de   : > { %5290 = vmatmul.mubr.msk.f32.vlgmr.msra.gmra.mrb[30].mxu1 %vm650_vm2, %v2778_v57 }
0x14df   : > { %5298 = vmatpush3.msra.mxu1 %v2947_v53  ;;  %5299 = vmatprep.mubr.msk.f32.mxu1 %vm6043_vm0, %v6044_v1 }
0x14e0   : > { %v3114_v61 = vpop.permute.xlu1 %3113  ;;  %5307 = vmatprep.subr.mxu1 %v6044_v1 }
0x14e2   : > { %5300 = vmatmul.mubr.msk.f32.vlgmr.msra.gmra.mrb[32].mxu1 %vm650_vm2, %v2945_v48 }
0x14e3   : > { %5308 = vmatpush3.msra.mxu1 %v3114_v61  ;;  %5309 = vmatprep.mubr.msk.f32.mxu1 %vm6043_vm0, %v6044_v1 }
0x14e4   : > { %5317 = vmatprep.subr.mxu1 %v6044_v1 }
0x1505   : > { %v3110_v62 = vpop.xlane.xlu0 %3109 }
0x1506   : > { %5714 = vrcp.f32 %v3110_v62 }
0x1507   : > { %5716 = vrcp.f32 %v3277_v58 }
0x1509   : > { %v3281_v7 = vpop.permute.xlu0 %3280 }
0x1510   : > { %v5715_v63 = vpop.eup %5714 }
0x1511   : > { %v3112_v2 = vmul.f32 %v5715_v63, %v5709_v51  ;;  %v5717_v4 = vpop.eup %5716  ;;  %v4927_v51 = vld [vmem:[%s7170_s6 + $0x28] sm:$0xff] }
0x1512   : > { %v3279_v9 = vmul.f32 %v5717_v4, %v5707_v38  ;;  %v5654_v53 = vpack.i.bf16 %v4927_v51, %v4926_v50  ;;  %v5497_v54 = vpack.c.bf16 %v4927_v51, %v4926_v50  ;;  %v3485_v4 = vrot.slane %v6776_v41, %v6569_v5 }
0x1513   : > { %5310 = vmatmul.mubr.msk.f32.vlgmr.msra.gmra.mrb[34].mxu1 %vm650_vm2, %v3112_v2 }
0x1514   : > { %5318 = vmatpush3.msra.mxu1 %v3281_v7  ;;  %5319 = vmatprep.mubr.msk.f32.mxu1 %vm6043_vm0, %v6044_v1 }
0x1515   : > { %5496 = vmatprep.subr.bf16.mxu1 %v6042_v0 }
0x1517   : > { %5320 = vmatmul.mubr.msk.f32.vlgmr.msra.gmra.mrb[36].mxu1 %vm650_vm2, %v3279_v9 }
0x1518   : > { %5341 = vmatprep.mubr.msk.f32.mxu1 %vm6043_vm0, %v6044_v1  ;;  %5498 = vmatpush3.bf16.msra.mxu1 %v5497_v54 }
0x1519   : > { %5499 = vmatprep.subr.bf16.mxu1 %v6042_v0 }
0x15b1   : > { %v2851_v16 = vpop.f32.mrb[30].mxu1 }
0x15b2   : > { %v5291_v17 = vpop.f32.mrb[31].mxu1 }
0x15b5   : > { %v3018_v21 = vpop.f32.mrb[32].mxu1 }
0x15b6   : > { %3357 = vrot.lane.b32.xlu1 %v3018_v21, %s7243_s21  ;;  %v5301_v22 = vpop.f32.mrb[33].mxu1  ;;  %v3465_v21 = vrot.slane %v6776_v41, %v1426_v19 }
0x15e6   : > { %v3185_v26 = vpop.f32.mrb[34].mxu1 }
0x15e7   : > { %3361 = vrot.lane.b32.xlu0 %v3185_v26, %s7244_s27  ;;  %v5311_v28 = vpop.f32.mrb[35].mxu1 }
0x15ea   : > { %v3352_v29 = vpop.f32.mrb[36].mxu1 }
0x15eb   : > { %3365 = vrot.lane.b32.xlu1 %v3352_v29, %s7245_s11  ;;  %v5321_v31 = vpop.f32.mrb[37].mxu1 }
0x1628   : > { %v3358_v32 = vpop.permute.xlu1 %3357 }
0x1629   : > { %v3368_v27 = vsel %vm650_vm2, %v2851_v16, %v3358_v32 }
0x1659   : > { %v3362_v33 = vpop.permute.xlu0 %3361 }
0x165a   : > { %v3369_v35 = vsel %vm1328_vm3, %v3368_v27, %v3362_v33 }
0x165d   : > { %v3366_v30 = vpop.permute.xlu1 %3365 }
0x165e   : > { %v3370_v36 = vsel %vm1330_vm4, %v3369_v35, %v3366_v30 }
0x165f   : > { %5331 = vmatmul.mubr.msk.f32.vlgmr.msra.gmra.mrb[26].mxu0 %vm573_vm1, %v3370_v36 }
0x1660   : > { %5352 = vmatprep.mubr.msk.f32.mxu0 %vm6043_vm0, %v6044_v1 }
0x1732   : > { %v3444_v37 = vpop.f32.mrb[26].mxu0 }
0x1733   : > { %v3445_v38 = vadd.f32 %v3444_v37, %v3374_v25  ;;  %v5332_v45 = vpop.f32.mrb[27].mxu0 }
0x1735   : > { %v3448_v46 = vadd.f32 %v3445_v38, %v6767_v40  ;;  %v4929_v40 = vld [vmem:[%s7170_s6 + $0x38] sm:$0xff] }
0x1736   : > { %v5659_v55 = vpack.i.bf16 %v4929_v40, %v4928_v52  ;;  %v5500_v8 = vpack.c.bf16 %v4929_v40, %v4928_v52 }
0x1737   : > { %v3449_v49 = vsel %vm573_vm1, %v3448_v46, 0.0 }
0x1738   : > { %3450 = vadd.xlane.f32.xlu0 %v3449_v49  ;;  %5501 = vmatpush3.bf16.msra.mxu1 %v5500_v8 }
0x1739   : > { %5355 = vmatprep.subr.mxu1 %v6044_v1 }
0x174e   : > { %5655 = vrot.lane.b32.xlu0 %v5654_v53, %s6046_s29 }
0x1752   : > { %3576 = vrot.lane.b32.xlu0 %v3485_v4, %s6046_s29 }
0x17c5   : > { %v3451_v56 = vpop.xlane.xlu0 %3450 }
0x17c6   : > { %v3452_v57 = vmul.f32 0.03125, %v3451_v56 }
0x17c8   : > { %v3453_v58 = vsub.f32 %v3448_v46, %v3452_v57 }
0x17c9   : > { %v5656_v61 = vpop.permute.xlu0 %5655 }
0x17ca   : > { %v3454_v60 = vmul.f32 %v3453_v58, %v3453_v58  ;;  %v5658_v62 = vunpack.i.h.bf16 %v5656_v61  ;;  %v5657_v63 = vunpack.i.l.bf16 %v5656_v61 }
0x17cc   : > { %v3455_v48 = vsel %vm573_vm1, %v3454_v60, 0.0  ;;  %v5503_v2 = vpack.c.bf16 %v5658_v62, %v5657_v63 }
0x17cd   : > { %3456 = vadd.xlane.f32.xlu1 %v3455_v48 }
0x17ce   : > { %5504 = vmatpush3.bf16.msra.mxu0 %v5503_v2 }
0x17cf   : > { %5505 = vmatprep.subr.bf16.mxu0 %v6042_v0 }
0x17de   : > { %5660 = vrot.lane.b32.xlu1 %v5659_v55, %s6046_s29 }
0x185a   : > { %v3457_v7 = vpop.xlane.xlu1 %3456 }
0x185b   : > { %v3458_v9 = vmul.f32 0.03125, %v3457_v7 }
0x185d   : > { %v3459_v13 = vadd.f32 1e-05, %v3458_v9 }
0x185e   : > { %v5661_v14 = vpop.permute.xlu1 %5660 }
0x185f   : > { %5718 = vrsqrt.f32 %v3459_v13  ;;  %v5663_v15 = vunpack.i.h.bf16 %v5661_v14  ;;  %v5662_v16 = vunpack.i.l.bf16 %v5661_v14 }
0x1861   : > { %v5506_v17 = vpack.c.bf16 %v5663_v15, %v5662_v16 }
0x1863   : > { %5507 = vmatpush3.bf16.msra.mxu0 %v5506_v17 }
0x1864   : > { %5365 = vmatprep.subr.mxu0 %v6044_v1 }
0x1866   : > { %5353 = vmatmul.mubr.msk.f32.vlgmr.msra.gmra.mrb[28].mxu0 %vm573_vm1, %v6576_v18  ;;  %v3577_v18 = vpop.permute.xlu0 %3576 }
0x1867   : > { %5367 = vmatprep.mubr.msk.f32.mxu0 %vm6043_vm0, %v6044_v1 }
0x1869   : > { %v5719_v22 = vpop.eup %5718 }
0x186a   : > { %v3461_v23 = vmul.f32 %v5719_v22, %v3453_v58 }
0x186c   : > { %v3466_v12 = vmul.f32 %v3465_v21, %v3461_v23 }
0x186e   : > { %v6912_v26 = vadd.f32 %v3470_v24, %v3466_v12 }
0x1870   : > { %5342 = vmatmul.mubr.msk.f32.vlgmr.msra.gmra.mrb[38].mxu1 %vm573_vm1, %v6912_v26 }
0x1871   : > { %5357 = vmatprep.mubr.msk.f32.mxu1 %vm6043_vm0, %v6044_v1 }
0x1939   : > { %v3645_v28 = vpop.f32.mrb[28].mxu0 }
0x193a   : > { %v6918_v29 = vadd.f32 %v3645_v28, %v3577_v18  ;;  %v5354_v19 = vpop.f32.mrb[29].mxu0 }
0x193c   : > { %3816 = vrot.lane.b32.xlu1 %v6918_v29, %s7246_s30  ;;  %5356 = vmatpush3.xpose.msk.msra.mxu1 %vm650_vm2, %v6918_v29 }
0x193d   : > { %5360 = vmatprep.subr.mxu1 %v6044_v1 }
0x1940   : > { %3983 = vrot.lane.b32.xlu1 %v6918_v29, %s7253_s20 }
0x1943   : > { %v3555_v20 = vpop.f32.mrb[38].mxu1 }
0x1944   : > { %v3556_v31 = vadd.f32 %v3555_v20, %v3485_v4  ;;  %4150 = vrot.lane.b32.xlu1 %v6918_v29, %s7247_s18  ;;  %v5343_v32 = vpop.f32.mrb[39].mxu1 }
0x1946   : > { %3814 = vrot.lane.b32.xlu0 %v3556_v31, %s7246_s30  ;;  %5358 = vmatmul.mubr.msk.f32.vlgmr.msra.gmra.mrb[40].mxu1 %vm650_vm2, %v3556_v31 }
0x1947   : > { %5362 = vmatprep.mubr.msk.f32.mxu1 %vm6043_vm0, %v6044_v1 }
0x194a   : > { %3981 = vrot.lane.b32.xlu0 %v3556_v31, %s7253_s20  ;;  %s7042_s20 = scalar_lea.vmem [#allocation14], %s4870_s8 }
0x194e   : > { %4148 = vrot.lane.b32.xlu0 %v3556_v31, %s7247_s18 }
0x19ae   : > { %v3817_v33 = vpop.permute.xlu1 %3816 }
0x19af   : > { %5366 = vmatpush3.xpose.msk.msra.mxu0 %vm650_vm2, %v3817_v33 }
0x19b0   : > { %5375 = vmatprep.subr.mxu0 %v6044_v1 }
0x19b2   : > { %v3984_v27 = vpop.permute.xlu1 %3983 }
0x19b6   : > { %v4151_v36 = vpop.permute.xlu1 %4150 }
0x19b8   : > { %v3815_v35 = vpop.permute.xlu0 %3814 }
0x19b9   : > { %5368 = vmatmul.mubr.msk.f32.vlgmr.msra.gmra.mrb[30].mxu0 %vm650_vm2, %v3815_v35 }
0x19ba   : > { %5376 = vmatpush3.xpose.msk.msra.mxu0 %vm650_vm2, %v3984_v27  ;;  %5377 = vmatprep.mubr.msk.f32.mxu0 %vm6043_vm0, %v6044_v1 }
0x19bb   : > { %5385 = vmatprep.subr.mxu0 %v6044_v1 }
0x19bc   : > { %v3982_v30 = vpop.permute.xlu0 %3981 }
0x19bd   : > { %5378 = vmatmul.mubr.msk.f32.vlgmr.msra.gmra.mrb[32].mxu0 %vm650_vm2, %v3982_v30 }
0x19be   : > { %5386 = vmatpush3.xpose.msk.msra.mxu0 %vm650_vm2, %v4151_v36  ;;  %5387 = vmatprep.mubr.msk.f32.mxu0 %vm6043_vm0, %v6044_v1 }
0x19bf   : > { %5508 = vmatprep.subr.bf16.mxu0 %v6042_v0 }
0x19c0   : > { %v4149_v25 = vpop.permute.xlu0 %4148 }
0x19c1   : > { %5388 = vmatmul.mubr.msk.f32.vlgmr.msra.gmra.mrb[34].mxu0 %vm650_vm2, %v4149_v25 }
0x19c2   : > { %5403 = vmatprep.mubr.msk.f32.mxu0 %vm6043_vm0, %v6044_v1 }
0x1a19   : > { %v3721_v37 = vpop.f32.mrb[40].mxu1 }
0x1a1a   : > { %v3725_v38 = vmul.f32 0.35355338, %v3721_v37  ;;  %v5359_v45 = vpop.f32.mrb[41].mxu1 }
0x1a1c   : > { %v3726_v46 = vadd.f32 %v3725_v38, %v6631_v42 }
0x1a1e   : > { %v3727_v49 = vsel %vm650_vm2, %v3726_v46, -inf }
0x1a1f   : > { %3728 = vmax.xlane.f32.xlu1 %v3727_v49 }
0x1a8c   : > { %v3888_v50 = vpop.f32.mrb[30].mxu0 }
0x1a8d   : > { %v3892_v51 = vmul.f32 0.35355338, %v3888_v50  ;;  %v5369_v52 = vpop.f32.mrb[31].mxu0 }
0x1a8f   : > { %v3893_v53 = vadd.f32 %v3892_v51, %v6631_v42 }
0x1a90   : > { %v4055_v54 = vpop.f32.mrb[32].mxu0 }
0x1a91   : > { %v4059_v40 = vmul.f32 0.35355338, %v4055_v54  ;;  %v5379_v55 = vpop.f32.mrb[33].mxu0  ;;  %v3894_v8 = vsel %vm650_vm2, %v3893_v53, -inf  ;;  %v3478_v54 = vld [vmem:[#allocation10 + $0x20] sm:$0xff] }
0x1a92   : > { %3895 = vmax.xlane.f32.xlu0 %v3894_v8  ;;  %v3480_v8 = vld [vmem:[#allocation10 + $0x30] sm:$0xff] }
0x1a93   : > { %v4060_v56 = vadd.f32 %v4059_v40, %v6631_v42  ;;  %v3479_v40 = vld [vmem:[#allocation10 + $0x28] sm:$0xff] }
0x1a94   : > { %v4222_v57 = vpop.f32.mrb[34].mxu0  ;;  %v5509_v55 = vpack.c.bf16 %v3479_v40, %v3478_v54 }
0x1a95   : > { %v4226_v58 = vmul.f32 0.35355338, %v4222_v57  ;;  %v5389_v60 = vpop.f32.mrb[35].mxu0  ;;  %v4061_v48 = vsel %vm650_vm2, %v4060_v56, -inf }
0x1a96   : > { %4062 = vmax.xlane.f32.xlu0 %v4061_v48  ;;  %5510 = vmatpush3.bf16.msra.mxu0 %v5509_v55 }
0x1a97   : > { %v4227_v61 = vadd.f32 %v4226_v58, %v6631_v42  ;;  %5511 = vmatprep.subr.bf16.mxu0 %v6042_v0 }
0x1a99   : > { %v4228_v62 = vsel %vm650_vm2, %v4227_v61, -inf }
0x1a9a   : > { %4229 = vmax.xlane.f32.xlu1 %v4228_v62 }
0x1aab   : > { %3905 = vrot.lane.b32.xlu1 %v6918_v29, %s7254_s17  ;;  %s6059_s17 = smov [#allocation14]  }
0x1aac   : > { %v3729_v63 = vpop.xlane.xlu1 %3728 }
0x1aad   : > { %v3730_v2 = vsub.f32 %v3726_v46, %v3729_v63 }
0x1aaf   : > { %v3731_v4 = vmul.f32 1.442695, %v3730_v2 }
0x1ab1   : > { %5720 = vpow2.f32 %v3731_v4 }
0x1abb   : > { %v5721_v7 = vpop.eup %5720 }
0x1abc   : > { %v3733_v9 = vsel %vm650_vm2, %v5721_v7, 0.0 }
0x1abd   : > { %3734 = vadd.xlane.f32.xlu0 %v3733_v9 }
0x1ad3   : > { %3738 = vrot.lane.b32.xlu0 %v6918_v29, %s6046_s29  ;;  %s5918_s29 = sshll.u32 %s6059_s17, 4  ;;  %s5919_s29 = int_to_ptr.vmem [resolvable:$false] %s5918_s29 }
0x1b1f   : > { %v3896_v13 = vpop.xlane.xlu0 %3895 }
0x1b20   : > { %v3897_v14 = vsub.f32 %v3893_v53, %v3896_v13 }
0x1b22   : > { %v3898_v42 = vmul.f32 1.442695, %v3897_v14 }
0x1b23   : > { %v4063_v15 = vpop.xlane.xlu0 %4062 }
0x1b24   : > { %5722 = vpow2.f32 %v3898_v42  ;;  %v4064_v16 = vsub.f32 %v4060_v56, %v4063_v15  ;;  %v3481_v56 = vld [vmem:[#allocation10 + $0x38] sm:$0xff]  ;;  %v4333_v42 = vrot.slane %v6776_v41, %v2295_v6 }
0x1b25   : > { %v5512_v57 = vpack.c.bf16 %v3481_v56, %v3480_v8 }
0x1b26   : > { %v4065_v17 = vmul.f32 1.442695, %v4064_v16 }
0x1b27   : > { %v4230_v21 = vpop.xlane.xlu1 %4229  ;;  %5513 = vmatpush3.bf16.msra.mxu0 %v5512_v57 }
0x1b28   : > { %5724 = vpow2.f32 %v4065_v17  ;;  %v4231_v22 = vsub.f32 %v4227_v61, %v4230_v21  ;;  %5520 = vmatprep.subr.bf16.mxu0 %v6042_v0 }
0x1b2a   : > { %v4232_v23 = vmul.f32 1.442695, %v4231_v22 }
0x1b2b   : > { %v3906_v35 = vpop.permute.xlu1 %3905 }
0x1b2c   : > { %5726 = vpow2.f32 %v4232_v23 }
0x1b2e   : > { %v5723_v24 = vpop.eup %5722 }
0x1b2f   : > { %v3900_v12 = vsel %vm650_vm2, %v5723_v24, 0.0 }
0x1b30   : > { %3901 = vadd.xlane.f32.xlu1 %v3900_v12 }
0x1b32   : > { %v5725_v18 = vpop.eup %5724 }
0x1b33   : > { %v4067_v28 = vsel %vm650_vm2, %v5725_v18, 0.0 }
0x1b34   : > { %4068 = vadd.xlane.f32.xlu0 %v4067_v28  ;;  %v4447_v28 = vld [vmem:[#allocation11 + $0x38] sm:$0xff] }
0x1b36   : > { %v5727_v19 = vpop.eup %5726 }
0x1b37   : > { %v4234_v20 = vsel %vm650_vm2, %v5727_v19, 0.0 }
0x1b38   : > { %4235 = vadd.xlane.f32.xlu1 %v4234_v20  ;;  %v4946_v20 = vld [vmem:[%s7173_s9 + $0x40] sm:$0xff] }
0x1b49   : > { %4072 = vrot.lane.b32.xlu1 %v6918_v29, %s7248_s15  ;;  %s4963_s15 = sshll.u32 %s6148_s25, 8 }
0x1b4a   : > { %4239 = vrot.lane.b32.xlu0 %v6918_v29, %s7242_s14  ;;  %v3735_v31 = vpop.xlane.xlu0 %3734  ;;  %s7083_s28 = scalar_lea.hbm %s7255_s19, %s4963_s15 }
0x1b4b   : > { %5728 = vrcp.f32 %v3735_v31  ;;  %v4948_v31 = vld [vmem:[%s7173_s9 + $0x50] sm:$0xff] }
0x1b4e   : > { %v3739_v32 = vpop.permute.xlu0 %3738 }
0x1b4f   : > { %5361 = vmatpush3.msra.mxu1 %v3739_v32 }
0x1b50   : > { %5370 = vmatprep.subr.mxu1 %v6044_v1 }
0x1b55   : > { %v5729_v33 = vpop.eup %5728 }
0x1b56   : > { %v6971_v27 = vmul.f32 %v5729_v33, %v5721_v7  ;;  %v4949_v33 = vld [vmem:[%s7173_s9 + $0x58] sm:$0xff] }
0x1b58   : > { %5363 = vmatmul.mubr.msk.f32.vlgmr.msra.gmra.mrb[42].mxu1 %vm650_vm2, %v6971_v27 }
0x1b59   : > { %5371 = vmatpush3.msra.mxu1 %v3906_v35  ;;  %5372 = vmatprep.mubr.msk.f32.mxu1 %vm6043_vm0, %v6044_v1  ;;  %v5524_v35 = vpack.c.bf16 %v4949_v33, %v4948_v31 }
0x1b5a   : > { %5380 = vmatprep.subr.mxu1 %v6044_v1 }
0x1bbd   : > { %v3902_v29 = vpop.xlane.xlu1 %3901 }
0x1bbe   : > { %5730 = vrcp.f32 %v3902_v29  ;;  %v4950_v29 = vld [vmem:[%s7173_s9 + $0x60] sm:$0xff] }
0x1bc1   : > { %v4069_v30 = vpop.xlane.xlu0 %4068 }
0x1bc2   : > { %5732 = vrcp.f32 %v4069_v30  ;;  %v4951_v30 = vld [vmem:[%s7173_s9 + $0x68] sm:$0xff] }
0x1bc5   : > { %v4236_v36 = vpop.xlane.xlu1 %4235  ;;  %v4240_v49 = vpop.permute.xlu0 %4239 }
0x1bc6   : > { %5734 = vrcp.f32 %v4236_v36  ;;  %v5527_v36 = vpack.c.bf16 %v4951_v30, %v4950_v29 }
0x1bc8   : > { %v5731_v25 = vpop.eup %5730 }
0x1bc9   : > { %v3904_v37 = vmul.f32 %v5731_v25, %v5723_v24  ;;  %v4073_v38 = vpop.permute.xlu1 %4072 }
0x1bcb   : > { %5373 = vmatmul.mubr.msk.f32.vlgmr.msra.gmra.mrb[44].mxu1 %vm650_vm2, %v3904_v37 }
0x1bcc   : > { %v5733_v45 = vpop.eup %5732  ;;  %5381 = vmatpush3.msra.mxu1 %v4073_v38  ;;  %5382 = vmatprep.mubr.msk.f32.mxu1 %vm6043_vm0, %v6044_v1 }
0x1bcd   : > { %v4071_v46 = vmul.f32 %v5733_v45, %v5725_v18  ;;  %5390 = vmatprep.subr.mxu1 %v6044_v1 }
0x1bcf   : > { %5383 = vmatmul.mubr.msk.f32.vlgmr.msra.gmra.mrb[46].mxu1 %vm650_vm2, %v4071_v46 }
0x1bd0   : > { %v5735_v50 = vpop.eup %5734  ;;  %5391 = vmatpush3.msra.mxu1 %v4240_v49  ;;  %5392 = vmatprep.mubr.msk.f32.mxu1 %vm6043_vm0, %v6044_v1 }
0x1bd1   : > { %v4238_v51 = vmul.f32 %v5735_v50, %v5727_v19  ;;  %5514 = vmatprep.subr.bf16.mxu1 %v6042_v0 }
0x1bd3   : > { %5393 = vmatmul.mubr.msk.f32.vlgmr.msra.gmra.mrb[48].mxu1 %vm650_vm2, %v4238_v51 }
0x1bd4   : > { %5414 = vmatprep.mubr.msk.f32.mxu1 %vm6043_vm0, %v6044_v1 }
0x1c2b   : > { %v3810_v52 = vpop.f32.mrb[42].mxu1 }
0x1c2c   : > { %v5364_v53 = vpop.f32.mrb[43].mxu1 }
0x1c9e   : > { %v3977_v58 = vpop.f32.mrb[44].mxu1 }
0x1c9f   : > { %4316 = vrot.lane.b32.xlu1 %v3977_v58, %s7243_s21  ;;  %v5374_v60 = vpop.f32.mrb[45].mxu1 }
0x1ca2   : > { %v4144_v48 = vpop.f32.mrb[46].mxu1 }
0x1ca3   : > { %4320 = vrot.lane.b32.xlu0 %v4144_v48, %s7244_s27  ;;  %v5384_v61 = vpop.f32.mrb[47].mxu1 }
0x1ca4   : > { %v4952_v61 = vld [vmem:[%s7173_s9 + $0x70] sm:$0xff] }
0x1ca6   : > { %v4311_v62 = vpop.f32.mrb[48].mxu1 }
0x1ca7   : > { %4324 = vrot.lane.b32.xlu1 %v4311_v62, %s7245_s11  ;;  %v5394_v63 = vpop.f32.mrb[49].mxu1  ;;  %v4953_v62 = vld [vmem:[%s7173_s9 + $0x78] sm:$0xff] }
0x1ca8   : > { %v5530_v63 = vpack.c.bf16 %v4953_v62, %v4952_v61 }
0x1d11   : > { %v4317_v2 = vpop.permute.xlu1 %4316 }
0x1d12   : > { %v4327_v7 = vsel %vm650_vm2, %v3810_v52, %v4317_v2 }
0x1d15   : > { %v4321_v4 = vpop.permute.xlu0 %4320 }
0x1d16   : > { %v4328_v9 = vsel %vm1328_vm3, %v4327_v7, %v4321_v4 }
0x1d19   : > { %v4325_v13 = vpop.permute.xlu1 %4324 }
0x1d1a   : > { %v4329_v14 = vsel %vm1330_vm4, %v4328_v9, %v4325_v13  ;;  %v4538_v9 = vrot.slane %v6776_v41, %v2498_v3 }
0x1d1b   : > { %5404 = vmatmul.mubr.msk.f32.vlgmr.msra.gmra.mrb[36].mxu0 %vm573_vm1, %v4329_v14 }
0x1d1c   : > { %5433 = vmatprep.mubr.msk.f32.mxu0 %vm6043_vm0, %v6044_v1 }
0x1dee   : > { %v4403_v15 = vpop.f32.mrb[36].mxu0 }
0x1def   : > { %v4404_v16 = vadd.f32 %v4403_v15, %v4333_v42  ;;  %v5405_v17 = vpop.f32.mrb[37].mxu0 }
0x1df1   : > { %v4419_v21 = vadd.f32 %v4404_v16, %v6912_v26  ;;  %v4445_v26 = vld [vmem:[#allocation11 + $0x28] sm:$0xff] }
0x1df3   : > { %v4420_v22 = vsel %vm573_vm1, %v4419_v21, 0.0 }
0x1df4   : > { %4421 = vadd.xlane.f32.xlu0 %v4420_v22 }
0x1e0a   : > { %2370 = vrot.lane.b32.xlu0 %v6661_v39, %s7243_s21  ;;  %v4444_v39 = vld [vmem:[#allocation11 + $0x20] sm:$0xff] }
0x1e0b   : > { %v5515_v18 = vpack.c.bf16 %v4445_v26, %v4444_v39 }
0x1e0d   : > { %5516 = vmatpush3.bf16.msra.mxu1 %v5515_v18 }
0x1e0e   : > { %2376 = vrot.lane.b32.xlu0 %v6674_v47, %s7245_s11  ;;  %v4446_v47 = vld [vmem:[#allocation11 + $0x30] sm:$0xff]  ;;  %5517 = vmatprep.subr.bf16.mxu1 %v6042_v0 }
0x1e0f   : > { %v5518_v19 = vpack.c.bf16 %v4447_v28, %v4446_v47 }
0x1e11   : > { %5519 = vmatpush3.bf16.msra.mxu1 %v5518_v19 }
0x1e12   : > { %4410 = vrot.lane.b32.xlu0 %v4071_v46, %s7244_s27 }
0x1e81   : > { %v4422_v1 = vpop.xlane.xlu0 %4421 }
0x1e82   : > { %v4423_v23 = vmul.f32 0.03125, %v4422_v1 }
0x1e84   : > { %v4424_v24 = vsub.f32 %v4419_v21, %v4423_v23 }
0x1e85   : > { %v2371_v25 = vpop.permute.xlu0 %2370 }
0x1e86   : > { %v4425_v6 = vmul.f32 %v4424_v24, %v4424_v24  ;;  %v2379_v46 = vsel %vm650_vm2, %v6654_v34, %v2371_v25  ;;  %v7051_v34 = vld [vmem:[%s7174_s10 + $0x18] sm:$0xf] }
0x1e87   : > { %v4436_v56 = vrot.slane %v7051_v34, %v6436_v11  ;;  %v4451_v11 = vrot.slane %v6776_v41, %v6738_v59 }
0x1e88   : > { %v4426_v12 = vsel %vm573_vm1, %v4425_v6, 0.0 }
0x1e89   : > { %4427 = vadd.xlane.f32.xlu1 %v4426_v12  ;;  %v2377_v50 = vpop.permute.xlu0 %2376 }
0x1e8d   : > { %v4411_v54 = vpop.permute.xlu0 %4410 }
0x1e9a   : > { %2373 = vrot.lane.b32.xlu1 %v6667_v43, %s7244_s27  ;;  %v4947_v43 = vld [vmem:[%s7173_s9 + $0x48] sm:$0xff] }
0x1e9b   : > { %v5521_v32 = vpack.c.bf16 %v4947_v43, %v4946_v20 }
0x1e9d   : > { %5522 = vmatpush3.bf16.msra.mxu0 %v5521_v32 }
0x1e9e   : > { %4407 = vrot.lane.b32.xlu1 %v3904_v37, %s7243_s21  ;;  %5523 = vmatprep.subr.bf16.mxu0 %v6042_v0 }
0x1ea1   : > { %5525 = vmatpush3.bf16.msra.mxu0 %v5524_v35 }
0x1ea2   : > { %4413 = vrot.lane.b32.xlu1 %v4238_v51, %s7245_s11  ;;  %5526 = vmatprep.subr.bf16.mxu0 %v6042_v0  ;;  %s4671_s11 = sshll.u32 %s7042_s20, 4  ;;  %s7077_s11 = int_to_ptr.vmem [resolvable:$true] %s4671_s11 }
0x1ea3   : > { %s5914_s8 = scalar_lea.vmem %s7077_s11, 256  ;;  %p5921_p1 = scmp.lt.s32.totalorder %s7077_s11, %s5919_s29 }
0x1ea4   : > { %p5915_p5 = scmp.ne.s32.totalorder %s7077_s11, %s5914_s8 }
0x1ea5   : > { %5528 = vmatpush3.bf16.msra.mxu0 %v5527_v36 }
0x1ea6   : > { %5529 = vmatprep.subr.bf16.mxu0 %v6042_v0  ;;  %p5916_p11 = pnand %p5915_p5, %p7256_p9 }
0x1ea8   : > { %p5917_p13 = pneg %p5916_p11 }
0x1ea9   : > { %5531 = vmatpush3.bf16.msra.mxu0 %v5530_v63 }
0x1f16   : > { %v4428_v37 = vpop.xlane.xlu1 %4427 }
0x1f17   : > { %v4429_v38 = vmul.f32 0.03125, %v4428_v37 }
0x1f19   : > { %v4430_v45 = vadd.f32 1e-05, %v4429_v38 }
0x1f1a   : > { %v2374_v49 = vpop.permute.xlu1 %2373 }
0x1f1b   : > { %5736 = vrsqrt.f32 %v4430_v45  ;;  %v2380_v51 = vsel %vm1328_vm3, %v2379_v46, %v2374_v49 }
0x1f1c   : > { %v2381_v52 = vsel %vm1330_vm4, %v2380_v51, %v2377_v50 }
0x1f1d   : > { %2598 = vst.msk [vmem:[%s7042_s20] sm:$0xff] %vm573_vm1, %v2381_v52 }
0x1f1e   : > { %v4408_v0 = vpop.permute.xlu1 %4407 }
0x1f1f   : > { %v4416_v53 = vsel %vm650_vm2, %v6971_v27, %v4408_v0  ;;  %v4441_v27 = vrot.slane %v7051_v34, %v6569_v5 }
0x1f20   : > { %v4417_v55 = vsel %vm1328_vm3, %v4416_v53, %v4411_v54 }
0x1f22   : > { %v4414_v40 = vpop.permute.xlu1 %4413 }
0x1f23   : > { %v4418_v8 = vsel %vm1330_vm4, %v4417_v55, %v4414_v40 }
0x1f24   : > { %4955 = vst.msk [vmem:[%s7042_s20 + $0x8] sm:$0xff] %vm573_vm1, %v4418_v8  ;;  %s5920_s20 = scalar_lea.vmem %s5919_s29, 512 }
0x1f25   : > { %v5737_v57 = vpop.eup %5736  ;;  %p5922_p4 = scmp.lt.s32.totalorder %s5920_s20, %s5914_s8 }
0x1f26   : > { %v4432_v58 = vmul.f32 %v5737_v57, %v4424_v24 }
0x1f27   : > { %p5923_p2 = por %p5922_p4, %p5921_p1 }
0x1f28   : > { %v4437_v60 = vmul.f32 %v4436_v56, %v4432_v58 }
0x1f29   : > { %p5924_p0 = pnand %p5923_p2, %p5917_p13 }
0x1f2a   : > { %v4442_v48 = vadd.f32 %v4441_v27, %v4437_v60 }
0x1f2c   : > { %5415 = vmatmul.mubr.msk.f32.vlgmr.msra.gmra.mrb[50].mxu1 %vm573_vm1, %v4442_v48 }
0x1fff   : > { %v4521_v2 = vpop.f32.mrb[50].mxu1 }
0x2000   : > { %v4522_v4 = vadd.f32 %v4521_v2, %v4451_v11  ;;  %v5416_v5 = vpop.f32.mrb[51].mxu1 }
0x2002   : > { %v4525_v7 = vmax.f32 %v4522_v4, 0.0 }
0x2004   : > { %5434 = vmatmul.mubr.msk.f32.vlgmr.msra.gmra.mrb[38].mxu0 %vm2500_vm5, %v4525_v7 }
0x20d7   : > { %v4608_v13 = vpop.f32.mrb[38].mxu0 }
0x20d8   : > { %v4609_v14 = vadd.f32 %v4608_v13, %v4538_v9  ;;  %v5435_v42 = vpop.f32.mrb[39].mxu0 }
0x20da   : > { %v4612_v15 = vadd.f32 %v4609_v14, %v4442_v48 }
0x20dc   : > { %v4613_v16 = vsel %vm573_vm1, %v4612_v15, 0.0 }
0x20dd   : > { %4614 = vadd.xlane.f32.xlu0 %v4613_v16 }
0x216a   : > { %v4615_v17 = vpop.xlane.xlu0 %4614 }
0x216b   : > { %v4616_v21 = vmul.f32 0.03125, %v4615_v17 }
0x216d   : > { %v4617_v22 = vsub.f32 %v4612_v15, %v4616_v21 }
0x216f   : > { %v4618_v1 = vmul.f32 %v4617_v22, %v4617_v22 }
0x2171   : > { %v4619_v23 = vsel %vm573_vm1, %v4618_v1, 0.0 }
0x2172   : > { %4620 = vadd.xlane.f32.xlu1 %v4619_v23 }
0x2173   : > { %5927 = shalt.err (!%p5924_p0)
}
0x2174   : > { %s5928_s14 = scalar_lea.hbm %s7083_s28, 256  ;;  %s5932_s18 = scalar_lea.hbm %s7255_s19, 512 }
0x2175   : > { %p5929_p12 = scmp.ne.s32.totalorder %s7083_s28, %s5928_s14  ;;  %p5933_p7 = scmp.lt.u32.totalorder %s7083_s28, %s7255_s19 }
0x2176   : > { %p5934_p10 = scmp.lt.u32.totalorder %s5932_s18, %s5928_s14  ;;  %p5936_p5 = scmp.lt.u32.totalorder %s5928_s14, %s7083_s28 }
0x2177   : > { %p5930_p8 = pnand %p5929_p12, %p7256_p9 }
0x2178   : > { %p5935_p6 = por %p5934_p10, %p5933_p7 }
0x2179   : > { %p5931_p3 = pneg %p5930_p8 }
0x217a   : > { %p5937_p11 = por %p5936_p5, %p5935_p6 }
0x217c   : > { %p5938_p13 = pnand %p5937_p11, %p5931_p3 }
0x217e   : > { %5941 = shalt.err (!%p5938_p13)
}
0x217f   : > { %s6060_s16 = smov 128   ;;  %v4629_v24 = vrot.slane %v7051_v34, %v6738_v59  ;;  %v4634_v39 = vrot.slane %v7051_v34, %v6544_v44  ;;  %s4958_s8 = sshll.u32 %s6148_s25, 7 }
0x2180   : > { %5551 = dma.vmem_to_hbm [thread:$0]  (%p7256_p9), %s7077_s11, 256, %s7083_s28, %s4645_s0, %s6060_s16, %s6060_s16, %s7243_s21  }
0x2181   : > { %s547_s17 = scalar_lea.vmem [#allocation13], %s6374_s7  ;;  %s7257_s28 = sld [smem:[#allocation31_spill]] }
0x2182   : > { %s4658_s29 = sshll.u32 %s547_s17, 4  ;;  %s4640_s20 = scalar_lea.sflag [#allocation4], %s6371_s12  ;;  %s7121_s29 = int_to_ptr.vmem [resolvable:$true] %s4658_s29 }
0x2183   : > { %s5942_s14 = scalar_lea.vmem %s7121_s29, 128  ;;  %s6061_s25 = smov [#allocation13]  }
0x2184   : > { %p5943_p1 = scmp.ne.s32.totalorder %s7121_s29, %s5942_s14  ;;  %s5946_s7 = sshll.u32 %s6061_s25, 4  ;;  %s5947_s7 = int_to_ptr.vmem [resolvable:$false] %s5946_s7 }
0x2185   : > { %s5948_s30 = scalar_lea.vmem %s5947_s7, 256  ;;  %p5949_p0 = scmp.lt.s32.totalorder %s7121_s29, %s5947_s7 }
0x2186   : > { %p5944_p4 = pnand %p5943_p1, %p7256_p9  ;;  %p5950_p12 = scmp.lt.s32.totalorder %s5948_s30, %s5942_s14 }
0x2187   : > { %s7119_s0 = scalar_lea.hbm %s7257_s28, %s4958_s8 }
0x2188   : > { %p5945_p2 = pneg %p5944_p4  ;;  %p5951_p8 = por %p5950_p12, %p5949_p0 }
0x218a   : > { %p5952_p3 = pnand %p5951_p8, %p5945_p2 }
0x21ff   : > { %v4621_v10 = vpop.xlane.xlu1 %4620 }
0x2200   : > { %v4622_v3 = vmul.f32 0.03125, %v4621_v10 }
0x2202   : > { %v4623_v41 = vadd.f32 1e-05, %v4622_v3 }
0x2204   : > { %5738 = vrsqrt.f32 %v4623_v41 }
0x220e   : > { %v5739_v6 = vpop.eup %5738 }
0x220f   : > { %v4625_v12 = vmul.f32 %v5739_v6, %v4617_v22 }
0x2211   : > { %v4630_v26 = vmul.f32 %v4629_v24, %v4625_v12 }
0x2213   : > { %v4635_v18 = vadd.f32 %v4634_v39, %v4630_v26 }
0x2215   : > { %4638 = vst.msk [vmem:[%s547_s17] sm:$0xff] %vm573_vm1, %v4635_v18 }
0x2216   : > { %5955 = shalt.err (!%p5952_p3)
}
0x2217   : > { %s5956_s12 = scalar_lea.hbm %s7119_s0, 128  ;;  %s5960_s15 = scalar_lea.hbm %s7257_s28, 256 }
0x2218   : > { %p5957_p7 = scmp.ne.s32.totalorder %s7119_s0, %s5956_s12  ;;  %p5961_p5 = scmp.lt.u32.totalorder %s7119_s0, %s7257_s28 }
0x2219   : > { %p5962_p11 = scmp.lt.u32.totalorder %s5960_s15, %s5956_s12  ;;  %p5964_p1 = scmp.lt.u32.totalorder %s5956_s12, %s7119_s0 }
0x221a   : > { %p5958_p10 = pnand %p5957_p7, %p7256_p9 }
0x221b   : > { %p5963_p13 = por %p5962_p11, %p5961_p5 }
0x221c   : > { %p5959_p6 = pneg %p5958_p10 }
0x221d   : > { %p5965_p4 = por %p5964_p1, %p5963_p13 }
0x221f   : > { %p5966_p2 = pnand %p5965_p4, %p5959_p6 }
0x2221   : > { %5969 = shalt.err (!%p5966_p2)
}
0x2222   : > { %5550 = dma.vmem_to_hbm [thread:$0]  (%p7256_p9), %s7121_s29, 128, %s7119_s0, %s4640_s20  }
0x2223 PF: > { %s7258_s8 = sld [smem:[#allocation24_spill]]  ;;  %s7259_s17 = sld [smem:[#allocation25_spill]] }
0x2224   : > { %p7261_p12 = scmp.ge.s32.totalorder %s6032_s24, 2 }
0x2229   : > { %s4686_s21 = sand.u32 1, %s7258_s8   ;;  %p7260_p0 = scmp.ne.s32.totalorder %s7259_s17, 0 }
0x222a   : > { %s4687_s11 = scalar_lea.sflag [#allocation4], %s4686_s21 }
0x222b   : > { %p5575_p8 = pnand %p7261_p12, %p7260_p0 }
0x222d   : > { %6011 = dma.done.wait (!%p5575_p8), %s4687_s11, 128  }
0x222e   : > { %6013 = vsyncadd (!%p5575_p8), %s4687_s11, 4294967168  ;;  %s4696_s14 = scalar_lea.sflag [#allocation15], %s4686_s21 }
0x222f   : > { %6015 = dma.done.wait (!%p5575_p8), %s4696_s14, 256  }
0x2230   : > { %6017 = vsyncadd (!%p5575_p8), %s4696_s14, 4294967040  ;;  %s7262_s26 = sld [smem:[#allocation26_spill]]  ;;  %p36_p9 = scmp.ge.s32.totalorder %s6251_s2, 4  }
0x2231   : > { %s7263_s21 = smov %s6024_s22  ;;  %s7264_s22 = smov %s6028_s23 }
0x2232   : > { %s7266_s24 = smov %s6251_s2  ;;  %38 = sbr.rel (!%p36_p9) target bundleno = 19 (0x13), region = 172 }
0x2236   : > { %s7265_s23 = smov %s7262_s26 }
0x2239   :  { %4701 = vsyncpa [#allocation3], 1 }
0x223a   :  { %4703 = vsyncpa [#allocation3 + $0x1], 1 }
0x223b   :  { %4704 = vsyncpa [#allocation6], 1 }
0x223c   :  { %4706 = vsyncpa [#allocation6 + $0x1], 1 }
0x223d   :  { %4707 = vsyncpa [#allocation9], 1 }
0x223e   :  { %4709 = vsyncpa [#allocation9 + $0x1], 1 }
0x223f   :  { %4710 = vsyncpa [#allocation12], 1 }
0x2240   :  { %4711 = vsyncpa [#allocation4], 1 }
0x2241   :  { %4713 = vsyncpa [#allocation4 + $0x1], 1 }
0x2242   :  { %4714 = vsyncpa [#allocation15], 1 }
0x2243   :  { %4716 = vsyncpa [#allocation15 + $0x1], 1 }

</bundles_post_ra>
